<compile_context>
chip_gen: v5e
topology: v5e:2x2
jax: 0.10.0
libtpu: 0.0.40
codegen_flags: <defaults>
</compile_context>

<pallas_src>
import functools

import jax
import jax.numpy as jnp
from jax.experimental import pallas as pl
from jax.experimental.pallas import tpu as pltpu

BN_EPS = 1e-5
_NEG_PAD = -1e30  # bias for padded mu lanes -> exp() underflows to 0 in softmax


def _round_up(n, m):
    return ((n + m - 1) // m) * m


def _softplus(x):
    # Matches torch.nn.functional.softplus(x, beta=1, threshold=20).
    t = jnp.minimum(x, 20.0)
    return jnp.where(x > 20.0, x, jnp.log1p(jnp.exp(t)))


def _batchnorm_eval(v, p):
    gamma, beta, rmean, rvar = p[0:1, :], p[1:2, :], p[2:3, :], p[3:4, :]
    return (v - rmean) * jax.lax.rsqrt(rvar + BN_EPS) * gamma + beta


def _fold_bn(w, b, bn):
    """Fold eval-mode BatchNorm into a Linear.  w:(H,K), b:(1,K), bn:(4,K)."""
    gamma, beta, rmean, rvar = bn[0], bn[1], bn[2], bn[3]
    scale = gamma * jax.lax.rsqrt(rvar + BN_EPS)
    return w * scale[None, :], (b - rmean[None, :]) * scale[None, :] + beta[None, :]


def _prepare_params(params, k_pad, compute_dtype):
    """Fold BN into the heads, fuse fc21+fc22 into one [H, 2*k_pad] matmul, cast to bf16."""
    H = params["w12"].shape[0]
    K = params["w21"].shape[1]
    w_mu, b_mu = _fold_bn(params["w21"], params["b21"], params["bn_mu"])
    w_lv, b_lv = _fold_bn(params["w22"], params["b22"], params["bn_lv"])

    w_head = jnp.zeros((H, 2 * k_pad), jnp.float32)
    w_head = w_head.at[:, 0:K].set(w_mu)
    w_head = w_head.at[:, k_pad:k_pad + K].set(w_lv)

    b_head = jnp.zeros((1, 2 * k_pad), jnp.float32)
    b_head = b_head.at[:, 0:K].set(b_mu)
    b_head = b_head.at[:, k_pad:k_pad + K].set(b_lv)
    if K < k_pad:
        # Padded mu lanes get a huge negative bias so the in-kernel softmax
        # ignores them without any explicit masking.
        b_head = b_head.at[:, K:k_pad].set(_NEG_PAD)

    return {
        "w11": params["w11"].astype(compute_dtype),
        "b11": params["b11"].astype(jnp.float32),
        "w12": params["w12"].astype(compute_dtype),
        "b12": params["b12"].astype(jnp.float32),
        "w_head": w_head.astype(compute_dtype),
        "b_head": b_head,  # f32 (holds the -1e30 padding bias)
    }


def mlp_encoder_kernel(x_ref, w11_ref, b11_ref, w12_ref, b12_ref,
                       w_head_ref, b_head_ref, out_ref, acc_ref, *, k_pad):
    v = pl.program_id(1)

    @pl.when(v == 0)
    def _init():
        acc_ref[...] = jnp.zeros_like(acc_ref)

    # fc11 partial product, accumulated over the (tiled) vocab axis in f32.
    acc_ref[...] += jnp.dot(x_ref[...], w11_ref[...],
                            preferred_element_type=jnp.float32)

    @pl.when(v == pl.num_programs(1) - 1)
    def _tail():
        cdt = w12_ref.dtype  # bf16 compute dtype for MXU operands
        # e1 = softplus(fc11(x)); e1 = softplus(fc12(e1)); dropout = identity (eval)
        e1 = _softplus(acc_ref[...] + b11_ref[...])
        e1 = _softplus(
            jnp.dot(e1.astype(cdt), w12_ref[...],
                    preferred_element_type=jnp.float32) + b12_ref[...])

        # Fused heads: [mu | logvar]; BN already folded into weights/bias.
        head = jnp.dot(e1.astype(cdt), w_head_ref[...],
                       preferred_element_type=jnp.float32) + b_head_ref[...]
        mu = head[:, 0:k_pad]
        logvar = head[:, k_pad:2 * k_pad]

        # theta = softmax(reparameterize(mu, logvar)); eval -> reparameterize = mu.
        # TODO(synk): training-mode reparameterization (randn eps) / dropout not implemented.
        m = jnp.max(mu, axis=1, keepdims=True)
        p = jnp.exp(mu - m)
        theta = p * pl.reciprocal(jnp.sum(p, axis=1, keepdims=True), approx=True)

        # Single lane-dense output slab: [theta | mu | logvar], each k_pad wide.
        out_ref[:, 0:k_pad] = theta.astype(out_ref.dtype)
        out_ref[:, k_pad:2 * k_pad] = mu.astype(out_ref.dtype)
        out_ref[:, 2 * k_pad:3 * k_pad] = logvar.astype(out_ref.dtype)


@functools.partial(jax.jit, static_argnames=("tile_b", "tile_v", "compute_dtype"))
def mlp_encoder_forward(x, params, *, tile_b=128, tile_v=None,
                        compute_dtype=jnp.bfloat16):
    B, V = x.shape
    H = params["w11"].shape[1]
    K = params["w21"].shape[1]
    Kp = _round_up(K, 128)

    # Vocab (reduction) tiling: fully resident by default; when streamed it must
    # be a multiple of 128 and divide V (padding a reduction axis would corrupt).
    if tile_v is None or tile_v >= V:
        tile_v = V
    else:
        assert tile_v % 128 == 0 and V % tile_v == 0

    # Batch tiling: full-dim block if B is small, otherwise a multiple of 8.
    if B <= tile_b:
        tile_b = B
    else:
        assert tile_b % 8 == 0
    grid = (pl.cdiv(B, tile_b), V // tile_v)  # partial last batch tile is OK

    prep = _prepare_params(params, Kp, compute_dtype)
    xc = x.astype(compute_dtype)

    const = lambda shape: pl.BlockSpec(shape, lambda i, v: (0, 0))
    in_specs = [
        pl.BlockSpec((tile_b, tile_v), lambda i, v: (i, v)),  # x
        pl.BlockSpec((tile_v, H), lambda i, v: (v, 0)),       # w11 (streamed over V)
        const((1, H)),                                        # b11
        const((H, H)), const((1, H)),                         # fc12
        const((H, 2 * Kp)), const((1, 2 * Kp)),               # fused fc21+fc22 (+BN)
    ]
    out_spec = pl.BlockSpec((tile_b, 3 * Kp), lambda i, v: (i, 0))

    out = pl.pallas_call(
        functools.partial(mlp_encoder_kernel, k_pad=Kp),
        out_shape=jax.ShapeDtypeStruct((B, 3 * Kp), jnp.float32),
        grid_spec=pltpu.PrefetchScalarGridSpec(
            num_scalar_prefetch=0,
            grid=grid,
            in_specs=in_specs,
            out_specs=out_spec,
            scratch_shapes=[pltpu.VMEM((tile_b, H), jnp.float32)],
        ),
        compiler_params=pltpu.CompilerParams(
            dimension_semantics=("parallel", "arbitrary"),
            vmem_limit_bytes=64 * 1024 * 1024,
        ),
    )(xc, prep["w11"], prep["b11"], prep["w12"], prep["b12"],
      prep["w_head"], prep["b_head"])

    theta = out[:, 0:K]
    mu = out[:, Kp:Kp + K]
    logvar = out[:, 2 * Kp:2 * Kp + K]
    return theta, mu, logvar


def init_params(key, vocab_size, num_topic, hidden_dim):
    ks = jax.random.split(key, 10)

    def lin(kw, kb, fan_in, fan_out):
        bound = 1.0 / jnp.sqrt(fan_in)
        w = jax.random.uniform(kw, (fan_in, fan_out), jnp.float32, -bound, bound)
        b = jax.random.uniform(kb, (1, fan_out), jnp.float32, -bound, bound)
        return w, b

    w11, b11 = lin(ks[0], ks[1], vocab_size, hidden_dim)
    w12, b12 = lin(ks[2], ks[3], hidden_dim, hidden_dim)
    w21, b21 = lin(ks[4], ks[5], hidden_dim, num_topic)
    w22, b22 = lin(ks[6], ks[7], hidden_dim, num_topic)

    # BN params packed (gamma, beta, running_mean, running_var); gamma=1, beta=0
    # (gamma frozen by requires_grad=False in the module).
    def bn_pack(k):
        rmean = 0.1 * jax.random.normal(k, (num_topic,), jnp.float32)
        rvar = 1.0 + 0.05 * jnp.abs(jax.random.normal(jax.random.fold_in(k, 1),
                                                      (num_topic,), jnp.float32))
        gamma = jnp.ones((num_topic,), jnp.float32)
        beta = jnp.zeros((num_topic,), jnp.float32)
        return jnp.stack([gamma, beta, rmean, rvar], axis=0)

    return {
        "w11": w11, "b11": b11,
        "w12": w12, "b12": b12,
        "w21": w21, "b21": b21,
        "w22": w22, "b22": b22,
        "bn_mu": bn_pack(ks[8]),
        "bn_lv": bn_pack(ks[9]),
    }


def reference_forward(x, params):
    """Pure f32 reference with exact PyTorch eval-mode semantics (unfused BN)."""
    e1 = jax.nn.softplus(x @ params["w11"] + params["b11"])
    e1 = jax.nn.softplus(e1 @ params["w12"] + params["b12"])
    mu = _batchnorm_eval(e1 @ params["w21"] + params["b21"], params["bn_mu"])
    lv = _batchnorm_eval(e1 @ params["w22"] + params["b22"], params["bn_lv"])
    theta = jax.nn.softmax(mu, axis=1)
    return theta, mu, lv


def matched_reference(x, params, compute_dtype=jnp.bfloat16):
    """Mirrors the kernel numerics (bf16 MXU operands, f32 accumulation, folded BN)."""
    K = params["w21"].shape[1]
    Kp = _round_up(K, 128)
    prep = _prepare_params(params, Kp, compute_dtype)

    def mm(a, w):
        return jnp.dot(a.astype(compute_dtype), w, preferred_element_type=jnp.float32)

    e1 = _softplus(mm(x, prep["w11"]) + prep["b11"])
    e1 = _softplus(mm(e1, prep["w12"]) + prep["b12"])
    head = mm(e1, prep["w_head"]) + prep["b_head"]
    mu = head[:, :Kp]
    lv = head[:, Kp:]
    theta = jax.nn.softmax(mu, axis=1)
    return theta[:, :K], mu[:, :K], lv[:, :K]


if __name__ == "__main__":
    vocab_size, num_topic, hidden_dim = 512, 50, 256
    batch = 256

    key = jax.random.PRNGKey(0)
    kx, kp = jax.random.split(key)
    # Bag-of-words style non-negative input, like a topic-model BoW matrix.
    x = jnp.abs(jax.random.normal(kx, (batch, vocab_size), jnp.float32))
    params = init_params(kp, vocab_size, num_topic, hidden_dim)

    # tile_b=128 -> 2 parallel batch steps; tile_v=256 exercises the V-reduction
    # pipeline (v7x-friendly streaming of w11).
    theta, mu, logvar = mlp_encoder_forward(x, params, tile_b=128, tile_v=256)
    jax.block_until_ready((theta, mu, logvar))

    # Tight check vs a reference that mirrors the kernel's numerics.
    t_m, mu_m, lv_m = matched_reference(x, params)
    assert jnp.allclose(mu, mu_m, atol=2e-3, rtol=2e-3)
    assert jnp.allclose(logvar, lv_m, atol=2e-3, rtol=2e-3)
    assert jnp.allclose(theta, t_m, atol=5e-3, rtol=5e-3)

    # Looser check vs the exact f32 module semantics (bf16 weights perturb ~1e-3).
    t_r, mu_r, lv_r = reference_forward(x, params)
    assert jnp.allclose(mu, mu_r, atol=2e-2, rtol=2e-2)
    assert jnp.allclose(logvar, lv_r, atol=2e-2, rtol=2e-2)
    assert jnp.allclose(theta, t_r, atol=2e-2, rtol=2e-2)
    assert jnp.allclose(jnp.sum(theta, axis=1), 1.0, atol=1e-2)

    print("KERNEL_OK")
</pallas_src>

<mosaic_0001>
module attributes {stable_mosaic.version = 11 : i64} {
  func.func @mlp_encoder_kernel(%arg0: i32, %arg1: i32, %arg2: memref<128x256xbf16, #tpu.memory_space<vmem>>, %arg3: memref<256x256xbf16, #tpu.memory_space<vmem>>, %arg4: memref<1x256xf32, #tpu.memory_space<vmem>>, %arg5: memref<256x256xbf16, #tpu.memory_space<vmem>>, %arg6: memref<1x256xf32, #tpu.memory_space<vmem>>, %arg7: memref<256x256xbf16, #tpu.memory_space<vmem>>, %arg8: memref<1x256xf32, #tpu.memory_space<vmem>>, %arg9: memref<128x384xf32, #tpu.memory_space<vmem>>, %arg10: memref<128x256xf32, #tpu.memory_space<vmem>>) attributes {dimension_semantics = [#tpu.dimension_semantics<parallel>, #tpu.dimension_semantics<arbitrary>], iteration_bounds = array<i64: 2, 2>, scalar_prefetch = 0 : i64, scratch_operands = 1 : i64, tpu.core_type = #tpu.core_type<tc>, window_params = [{transform_indices = @transform_0, window_bounds = array<i64: 128, 256>}, {transform_indices = @transform_1, window_bounds = array<i64: 256, 256>}, {pipeline_mode = #tpu.pipeline_mode<synchronous>, transform_indices = @transform_2, window_bounds = array<i64: 1, 256>}, {pipeline_mode = #tpu.pipeline_mode<synchronous>, transform_indices = @transform_3, window_bounds = array<i64: 256, 256>}, {pipeline_mode = #tpu.pipeline_mode<synchronous>, transform_indices = @transform_4, window_bounds = array<i64: 1, 256>}, {pipeline_mode = #tpu.pipeline_mode<synchronous>, transform_indices = @transform_5, window_bounds = array<i64: 256, 256>}, {pipeline_mode = #tpu.pipeline_mode<synchronous>, transform_indices = @transform_6, window_bounds = array<i64: 1, 256>}, {transform_indices = @transform_7, window_bounds = array<i64: 128, 384>}]} {
    %c0_i32 = arith.constant 0 : i32
    %0 = arith.cmpi eq, %arg1, %c0_i32 : i32
    %1 = arith.extui %0 : i1 to i32
    %c0_i32_0 = arith.constant 0 : i32
    %2 = arith.cmpi ne, %1, %c0_i32_0 : i32
    scf.if %2 {
      %cst_9 = arith.constant 0.000000e+00 : f32
      %12 = vector.broadcast %cst_9 : f32 to vector<128x256xf32>
      %c0_10 = arith.constant 0 : index
      %c0_11 = arith.constant 0 : index
      %13 = vector.load %arg10[%c0_10, %c0_11] : memref<128x256xf32, #tpu.memory_space<vmem>>, vector<128x256xf32>
      tpu.vector_store %arg10[%c0_10, %c0_11], %12 {strides = array<i32>} : memref<128x256xf32, #tpu.memory_space<vmem>>, vector<128x256xf32>,
    } else {
    }
    %c0 = arith.constant 0 : index
    %c0_1 = arith.constant 0 : index
    %3 = vector.load %arg10[%c0, %c0_1] : memref<128x256xf32, #tpu.memory_space<vmem>>, vector<128x256xf32>
    %c0_2 = arith.constant 0 : index
    %c0_3 = arith.constant 0 : index
    %4 = vector.load %arg2[%c0_2, %c0_3] : memref<128x256xbf16, #tpu.memory_space<vmem>>, vector<128x256xbf16>
    %c0_4 = arith.constant 0 : index
    %c0_5 = arith.constant 0 : index
    %5 = vector.load %arg3[%c0_4, %c0_5] : memref<256x256xbf16, #tpu.memory_space<vmem>>, vector<256x256xbf16>
    %cst = arith.constant dense<0.000000e+00> : vector<128x256xf32>
    %6 = tpu.matmul %4, %5, %cst {dimension_numbers = #tpu.dot_dimension_numbers<[1], [0], [0], [1], [0, 0, 1, 1], [], []>} : vector<128x256xbf16>, vector<256x256xbf16>, vector<128x256xf32> -> vector<128x256xf32>
    %7 = arith.addf %3, %6 : vector<128x256xf32>
    %c0_6 = arith.constant 0 : index
    %c0_7 = arith.constant 0 : index
    %8 = vector.load %arg10[%c0_6, %c0_7] : memref<128x256xf32, #tpu.memory_space<vmem>>, vector<128x256xf32>
    tpu.vector_store %arg10[%c0_6, %c0_7], %7 {strides = array<i32>} : memref<128x256xf32, #tpu.memory_space<vmem>>, vector<128x256xf32>,
    %c1_i32 = arith.constant 1 : i32
    %9 = arith.cmpi eq, %arg1, %c1_i32 : i32
    %10 = arith.extui %9 : i1 to i32
    %c0_i32_8 = arith.constant 0 : i32
    %11 = arith.cmpi ne, %10, %c0_i32_8 : i32
    scf.if %11 {
      %c0_9 = arith.constant 0 : index
      %c0_10 = arith.constant 0 : index
      %12 = vector.load %arg10[%c0_9, %c0_10] : memref<128x256xf32, #tpu.memory_space<vmem>>, vector<128x256xf32>
      %c0_11 = arith.constant 0 : index
      %c0_12 = arith.constant 0 : index
      %13 = vector.load %arg4[%c0_11, %c0_12] : memref<1x256xf32, #tpu.memory_space<vmem>>, vector<1x256xf32>
      %14 = vector.broadcast %13 : vector<1x256xf32> to vector<128x256xf32>
      %15 = arith.addf %12, %14 : vector<128x256xf32>
      %cst_13 = arith.constant 2.000000e+01 : f32
      %16 = vector.broadcast %cst_13 : f32 to vector<128x256xf32>
      %17 = arith.minimumf %15, %16 : vector<128x256xf32>
      %cst_14 = arith.constant 2.000000e+01 : f32
      %18 = vector.broadcast %cst_14 : f32 to vector<128x256xf32>
      %19 = arith.cmpf ogt, %15, %18 : vector<128x256xf32>
      %20 = math.exp %17 : vector<128x256xf32>
      %21 = math.log1p %20 : vector<128x256xf32>
      %22 = arith.select %19, %15, %21 : vector<128x256xi1>, vector<128x256xf32>
      %23 = arith.truncf %22 : vector<128x256xf32> to vector<128x256xbf16>
      %c0_15 = arith.constant 0 : index
      %c0_16 = arith.constant 0 : index
      %24 = vector.load %arg5[%c0_15, %c0_16] : memref<256x256xbf16, #tpu.memory_space<vmem>>, vector<256x256xbf16>
      %cst_17 = arith.constant dense<0.000000e+00> : vector<128x256xf32>
      %25 = tpu.matmul %23, %24, %cst_17 {dimension_numbers = #tpu.dot_dimension_numbers<[1], [0], [0], [1], [0, 0, 1, 1], [], []>} : vector<128x256xbf16>, vector<256x256xbf16>, vector<128x256xf32> -> vector<128x256xf32>
      %c0_18 = arith.constant 0 : index
      %c0_19 = arith.constant 0 : index
      %26 = vector.load %arg6[%c0_18, %c0_19] : memref<1x256xf32, #tpu.memory_space<vmem>>, vector<1x256xf32>
      %27 = vector.broadcast %26 : vector<1x256xf32> to vector<128x256xf32>
      %28 = arith.addf %25, %27 : vector<128x256xf32>
      %cst_20 = arith.constant 2.000000e+01 : f32
      %29 = vector.broadcast %cst_20 : f32 to vector<128x256xf32>
      %30 = arith.minimumf %28, %29 : vector<128x256xf32>
      %cst_21 = arith.constant 2.000000e+01 : f32
      %31 = vector.broadcast %cst_21 : f32 to vector<128x256xf32>
      %32 = arith.cmpf ogt, %28, %31 : vector<128x256xf32>
      %33 = math.exp %30 : vector<128x256xf32>
      %34 = math.log1p %33 : vector<128x256xf32>
      %35 = arith.select %32, %28, %34 : vector<128x256xi1>, vector<128x256xf32>
      %36 = arith.truncf %35 : vector<128x256xf32> to vector<128x256xbf16>
      %c0_22 = arith.constant 0 : index
      %c0_23 = arith.constant 0 : index
      %37 = vector.load %arg7[%c0_22, %c0_23] : memref<256x256xbf16, #tpu.memory_space<vmem>>, vector<256x256xbf16>
      %cst_24 = arith.constant dense<0.000000e+00> : vector<128x256xf32>
      %38 = tpu.matmul %36, %37, %cst_24 {dimension_numbers = #tpu.dot_dimension_numbers<[1], [0], [0], [1], [0, 0, 1, 1], [], []>} : vector<128x256xbf16>, vector<256x256xbf16>, vector<128x256xf32> -> vector<128x256xf32>
      %c0_25 = arith.constant 0 : index
      %c0_26 = arith.constant 0 : index
      %39 = vector.load %arg8[%c0_25, %c0_26] : memref<1x256xf32, #tpu.memory_space<vmem>>, vector<1x256xf32>
      %40 = vector.broadcast %39 : vector<1x256xf32> to vector<128x256xf32>
      %41 = arith.addf %38, %40 : vector<128x256xf32>
      %42 = vector.extract_strided_slice %41 {offsets = [0, 0], sizes = [128, 128], strides = [1, 1]} : vector<128x256xf32> to vector<128x128xf32>
      %43 = vector.extract_strided_slice %41 {offsets = [0, 128], sizes = [128, 128], strides = [1, 1]} : vector<128x256xf32> to vector<128x128xf32>
      %cst_27 = arith.constant dense<0xFF800000> : vector<128xf32>
      %44 = vector.multi_reduction <maximumf>, %42, %cst_27 [1] : vector<128x128xf32> to vector<128xf32>
      %45 = vector.shape_cast %44 : vector<128xf32> to vector<128x1xf32>
      %46 = vector.broadcast %45 : vector<128x1xf32> to vector<128x128xf32>
      %47 = arith.subf %42, %46 : vector<128x128xf32>
      %48 = math.exp %47 : vector<128x128xf32>
      %cst_28 = arith.constant dense<0.000000e+00> : vector<128xf32>
      %49 = vector.multi_reduction <add>, %48, %cst_28 [1] : vector<128x128xf32> to vector<128xf32>
      %50 = vector.shape_cast %49 : vector<128xf32> to vector<128x1xf32>
      %51 = tpu.reciprocal %50 {approx = true} : vector<128x1xf32> -> vector<128x1xf32>
      %52 = vector.broadcast %51 : vector<128x1xf32> to vector<128x128xf32>
      %53 = arith.mulf %48, %52 : vector<128x128xf32>
      %c0_29 = arith.constant 0 : index
      %c0_30 = arith.constant 0 : index
      %54 = vector.load %arg9[%c0_29, %c0_30] : memref<128x384xf32, #tpu.memory_space<vmem>>, vector<128x128xf32>
      tpu.vector_store %arg9[%c0_29, %c0_30], %53 {strides = array<i32>} : memref<128x384xf32, #tpu.memory_space<vmem>>, vector<128x128xf32>,
      %c0_31 = arith.constant 0 : index
      %c128 = arith.constant 128 : index
      %55 = vector.load %arg9[%c0_31, %c128] : memref<128x384xf32, #tpu.memory_space<vmem>>, vector<128x128xf32>
      tpu.vector_store %arg9[%c0_31, %c128], %42 {strides = array<i32>} : memref<128x384xf32, #tpu.memory_space<vmem>>, vector<128x128xf32>,
      %c0_32 = arith.constant 0 : index
      %c256 = arith.constant 256 : index
      %56 = vector.load %arg9[%c0_32, %c256] : memref<128x384xf32, #tpu.memory_space<vmem>>, vector<128x128xf32>
      tpu.vector_store %arg9[%c0_32, %c256], %43 {strides = array<i32>} : memref<128x384xf32, #tpu.memory_space<vmem>>, vector<128x128xf32>,
    } else {
    }
    return
  }
  func.func @transform_0(%arg0: i32, %arg1: i32) -> (i32, i32) {
    %c0_i32 = arith.constant 0 : i32
    return %arg0, %arg1 : i32, i32
  }
  func.func @transform_1(%arg0: i32, %arg1: i32) -> (i32, i32) {
    %c0_i32 = arith.constant 0 : i32
    %c0_i32_0 = arith.constant 0 : i32
    return %arg1, %c0_i32 : i32, i32
  }
  func.func @transform_2(%arg0: i32, %arg1: i32) -> (i32, i32) {
    %c0_i32 = arith.constant 0 : i32
    %c0_i32_0 = arith.constant 0 : i32
    %c0_i32_1 = arith.constant 0 : i32
    return %c0_i32, %c0_i32_0 : i32, i32
  }
  func.func @transform_3(%arg0: i32, %arg1: i32) -> (i32, i32) {
    %c0_i32 = arith.constant 0 : i32
    %c0_i32_0 = arith.constant 0 : i32
    %c0_i32_1 = arith.constant 0 : i32
    return %c0_i32, %c0_i32_0 : i32, i32
  }
  func.func @transform_4(%arg0: i32, %arg1: i32) -> (i32, i32) {
    %c0_i32 = arith.constant 0 : i32
    %c0_i32_0 = arith.constant 0 : i32
    %c0_i32_1 = arith.constant 0 : i32
    return %c0_i32, %c0_i32_0 : i32, i32
  }
  func.func @transform_5(%arg0: i32, %arg1: i32) -> (i32, i32) {
    %c0_i32 = arith.constant 0 : i32
    %c0_i32_0 = arith.constant 0 : i32
    %c0_i32_1 = arith.constant 0 : i32
    return %c0_i32, %c0_i32_0 : i32, i32
  }
  func.func @transform_6(%arg0: i32, %arg1: i32) -> (i32, i32) {
    %c0_i32 = arith.constant 0 : i32
    %c0_i32_0 = arith.constant 0 : i32
    %c0_i32_1 = arith.constant 0 : i32
    return %c0_i32, %c0_i32_0 : i32, i32
  }
  func.func @transform_7(%arg0: i32, %arg1: i32) -> (i32, i32) {
    %c0_i32 = arith.constant 0 : i32
    %c0_i32_0 = arith.constant 0 : i32
    return %arg0, %c0_i32 : i32, i32
  }
}

</mosaic_0001>

<bundles_post_ra>
// kernel: mlp_encoder_forward.1
= control target key start
LH: loop header
LB: loop body
LE: loop exit
PB: predicated region body
PF: predicated region fallthrough
CT: control target
= control target key end

     0   :  { %s4168_s24 = smov 0   ;;  %s4170_s25 = smov 0   ;;  %s5960_s0 = inlined_call_operand.vmem [shape: bf16[256,512], index: 0, kind: input, shape index: {}]   ;;  %s5961_s1 = inlined_call_operand.vmem [shape: bf16[512,256], index: 1, kind: input, shape index: {}]   ;;  %s5962_s2 = inlined_call_operand.vmem [shape: f32[1,256], index: 2, kind: input, shape index: {}]   ;;  %s5963_s3 = inlined_call_operand.vmem [shape: bf16[256,256], index: 3, kind: input, shape index: {}]   ;;  %s5964_s4 = inlined_call_operand.vmem [shape: f32[1,256], index: 4, kind: input, shape index: {}]   ;;  %s5965_s5 = inlined_call_operand.vmem [shape: bf16[256,256], index: 5, kind: input, shape index: {}]   ;;  %s5966_s6 = inlined_call_operand.vmem [shape: f32[1,256], index: 6, kind: input, shape index: {}]   ;;  %s5967_s7 = inlined_call_operand.vmem [shape: f32[256,384], index: 7, kind: output, shape index: {}]  }
   0x1   :  { %s4172_s26 = smov 0   ;;  %s4174_s27 = smov 0  }
   0x2   :  { %s4176_s28 = smov 0   ;;  %s4178_s29 = smov 0  }
   0x3   :  { %s4180_s30 = smov 0  }
   0x4 LB: > { %s26_s8 = sadd.s32 1, %s4117_s28  ;;  %s29_s9 = sadd.s32 1, %s4121_s29  ;;  %s4125_s30 = sphi %s4180_s30, %s17_s30   ;;  %s4121_s29 = sphi %s4178_s29, %s6075_s29   ;;  %s4117_s28 = sphi %s4176_s28, %s6074_s28   ;;  %s4113_s27 = sphi %s4174_s27, %s6073_s27   ;;  %s4109_s26 = sphi %s4172_s26, %s6072_s26   ;;  %s4105_s25 = sphi %s4170_s25, %s6071_s25   ;;  %s4101_s24 = sphi %s4168_s24, %s6070_s24  }
   0x5   : > { %p27_p0 = scmp.ge.s32.totalorder %s26_s8, 2  ;;  %p45_p1 = scmp.ne.s32.totalorder %s4105_s25, %s4101_s24 }
   0x6   : > { %p46_p2 = scmp.eq.s32.totalorder %s4125_s30, 0  ;;  %s38_s13 = sadd.s32 1, %s4105_s25 }
   0x7   : > { %s6077_s8 = smov (%p27_p0, %s26_s8), 0  ;;  %s6079_s9 = smov (!%p27_p0, %s29_s9), %s4121_s29 }
   0x8   : > { %p47_p3 = por %p46_p2, %p45_p1  ;;  %p31_p4 = scmp.ge.s32.totalorder %s6079_s9, 2 }
   0x9   : > { %s34_s10 = ssub.s32 %s4117_s28, %s6077_s8  ;;  %p3114_p6 = scmp.ge.s32.totalorder %s4125_s30, 4 }
   0xa   : > { %s6081_s9 = smov (%p31_p4, %s6079_s9), 0 }
   0xb   : > { %s33_s11 = ssub.s32 %s4121_s29, %s6081_s9  ;;  %243 = sbr.rel (%p3114_p6) target bundleno = 39 (0x27), region = 36 }
   0xc   : > { %s35_s12 = sor.u32 %s34_s10, %s33_s11 }
   0xd   : > { %p36_p5 = scmp.eq.s32.totalorder %s35_s12, 0 }
   0xf   : > { %s4219_s14 = scalar_select %p36_p5, %s4105_s25, %s38_s13  }
  0x10   : > { %246 = sbr.rel (!%p47_p3) target bundleno = 39 (0x27), region = 40  ;;  %s248_s15 = sand.u32 (%p47_p3), 1, %s4105_s25  }
  0x11   : > { %s3117_s16 = sshll.u32 (%p47_p3), %s4117_s28, 1  ;;  %s3115_s17 = sshll.u32 (%p47_p3), %s248_s15, 7 }
  0x12   : > { %s3579_s18 = sshll.u32 (%p47_p3), %s4121_s29, 6  ;;  %s250_s10 = scalar_lea.vmem (%p47_p3), [#allocation3], %s3115_s17 }
  0x13   : > { %s254_s19 = sadd.s32 (%p47_p3), %s3579_s18, %s3117_s16 }
  0x14   : > { %s3119_s20 = sshll.u32 (%p47_p3), %s254_s19, 2 }
  0x15   : > { %s4228_s23 = scalar_lea.vmem %s5960_s0, %s3119_s20 }
  0x16   : > { %v315_v0 = vld [vmem:[%s4228_s23] sm:$0xff]  ;;  %v317_v1 = vld [vmem:[%s4228_s23 + $0x10] sm:$0xff] }
  0x17   : > { %v319_v2 = vld [vmem:[%s4228_s23 + $0x20] sm:$0xff]  ;;  %316 = vst [vmem:[%s250_s10] sm:$0xff] %v315_v0  ;;  %v321_v3 = vld [vmem:[%s4228_s23 + $0x30] sm:$0xff] }
  0x18   : > { %318 = vst [vmem:[%s250_s10 + $0x8] sm:$0xff] %v317_v1  ;;  %v323_v4 = vld [vmem:[%s4228_s23 + $0x40] sm:$0xff]  ;;  %v325_v5 = vld [vmem:[%s4228_s23 + $0x50] sm:$0xff] }
  0x19   : > { %320 = vst [vmem:[%s250_s10 + $0x10] sm:$0xff] %v319_v2  ;;  %v327_v6 = vld [vmem:[%s4228_s23 + $0x60] sm:$0xff]  ;;  %v329_v7 = vld [vmem:[%s4228_s23 + $0x70] sm:$0xff] }
  0x1a   : > { %322 = vst [vmem:[%s250_s10 + $0x18] sm:$0xff] %v321_v3  ;;  %v331_v8 = vld [vmem:[%s4228_s23 + $0x80] sm:$0xff]  ;;  %v333_v9 = vld [vmem:[%s4228_s23 + $0x90] sm:$0xff] }
  0x1b   : > { %324 = vst [vmem:[%s250_s10 + $0x20] sm:$0xff] %v323_v4  ;;  %v335_v10 = vld [vmem:[%s4228_s23 + $0xa0] sm:$0xff]  ;;  %v337_v11 = vld [vmem:[%s4228_s23 + $0xb0] sm:$0xff] }
  0x1c   : > { %326 = vst [vmem:[%s250_s10 + $0x28] sm:$0xff] %v325_v5  ;;  %v339_v12 = vld [vmem:[%s4228_s23 + $0xc0] sm:$0xff]  ;;  %v341_v13 = vld [vmem:[%s4228_s23 + $0xd0] sm:$0xff] }
  0x1d   : > { %328 = vst [vmem:[%s250_s10 + $0x30] sm:$0xff] %v327_v6  ;;  %v343_v14 = vld [vmem:[%s4228_s23 + $0xe0] sm:$0xff]  ;;  %v345_v15 = vld [vmem:[%s4228_s23 + $0xf0] sm:$0xff] }
  0x1e   : > { %330 = vst [vmem:[%s250_s10 + $0x38] sm:$0xff] %v329_v7 }
  0x1f   : > { %332 = vst [vmem:[%s250_s10 + $0x40] sm:$0xff] %v331_v8 }
  0x20   : > { %334 = vst [vmem:[%s250_s10 + $0x48] sm:$0xff] %v333_v9 }
  0x21   : > { %336 = vst [vmem:[%s250_s10 + $0x50] sm:$0xff] %v335_v10 }
  0x22   : > { %338 = vst [vmem:[%s250_s10 + $0x58] sm:$0xff] %v337_v11 }
  0x23   : > { %340 = vst [vmem:[%s250_s10 + $0x60] sm:$0xff] %v339_v12 }
  0x24   : > { %342 = vst [vmem:[%s250_s10 + $0x68] sm:$0xff] %v341_v13 }
  0x25   : > { %344 = vst [vmem:[%s250_s10 + $0x70] sm:$0xff] %v343_v14 }
  0x26   : > { %346 = vst [vmem:[%s250_s10 + $0x78] sm:$0xff] %v345_v15 }
  0x27 PF: > { %p3120_p7 = scmp.ge.s32.totalorder %s4125_s30, 1  ;;  %p361_p8 = scmp.lt.s32.totalorder %s4125_s30, 5 }
  0x29   : > { %p362_p9 = pnand %p3120_p7, %p361_p8 }
  0x2a   : > { %s368_s11 = sand.u32 (!%p362_p9), 1, %s4101_s24   ;;  %s3122_s12 = sshll.u32 (!%p362_p9), %s4109_s26, 5 }
  0x2b   : > { %365 = sbr.rel (%p362_p9) target bundleno = 1109 (0x455), region = 82  ;;  %s3121_s13 = sshll.u32 (!%p362_p9), %s368_s11, 7 }
  0x2c   : > { %p409_p10 = scmp.lt.s32.totalorder (!%p362_p9), %s3122_s12, 63  ;;  %s3125_s15 = sshll.u32 (!%p362_p9), %s4113_s27, 4 }
  0x2d   : > { %p416_p11 = scmp.lt.s32.totalorder (!%p362_p9), %s3125_s15, 31  ;;  %s4261_s24 = scalar_lea.vmem (!%p362_p9), [#allocation3], %s3121_s13 }
  0x2e   : > { %p3127_p12 = scmp.ne.s32.totalorder (!%p362_p9), %s4109_s26, 0 }
  0x30   : > { %s6083_s12 = smov (!%p409_p10, %s3122_s12), 63  ;;  %s6085_s15 = smov (!%p416_p11, %s3125_s15), 31 }
  0x31   : > { %s3580_s16 = sshll.u32 %s6083_s12, 3  ;;  %s3693_s20 = smul.u32 24, %s6085_s15 }
  0x32   : > { %s4254_s19 = scalar_lea.vmem %s5961_s1, %s3580_s16  ;;  %425 = sbr.rel (%p3127_p12) target bundleno = 88 (0x58), region = 90 }
  0x33   : > { %s4259_s23 = scalar_lea.vmem %s5967_s7, %s3693_s20 }
  0x37   : > { %v4127_v16 = vmov 0.0  }
  0x38   : > { %426 = vst [vmem:[#allocation2 + $0xb0] sm:$0xff] %v4127_v16 }
  0x39   : > { %427 = vst [vmem:[#allocation2] sm:$0xff] %v4127_v16 }
  0x3a   : > { %428 = vst [vmem:[#allocation2 + $0xd8] sm:$0xff] %v4127_v16 }
  0x3b   : > { %429 = vst [vmem:[#allocation2 + $0x18] sm:$0xff] %v4127_v16 }
  0x3c   : > { %430 = vst [vmem:[#allocation2 + $0x50] sm:$0xff] %v4127_v16 }
  0x3d   : > { %431 = vst [vmem:[#allocation2 + $0x68] sm:$0xff] %v4127_v16 }
  0x3e   : > { %432 = vst [vmem:[#allocation2 + $0x30] sm:$0xff] %v4127_v16 }
  0x3f   : > { %433 = vst [vmem:[#allocation2 + $0x48] sm:$0xff] %v4127_v16 }
  0x40   : > { %434 = vst [vmem:[#allocation2 + $0x80] sm:$0xff] %v4127_v16 }
  0x41   : > { %435 = vst [vmem:[#allocation2 + $0x88] sm:$0xff] %v4127_v16 }
  0x42   : > { %436 = vst [vmem:[#allocation2 + $0xe8] sm:$0xff] %v4127_v16 }
  0x43   : > { %437 = vst [vmem:[#allocation2 + $0xb8] sm:$0xff] %v4127_v16 }
  0x44   : > { %438 = vst [vmem:[#allocation2 + $0x60] sm:$0xff] %v4127_v16 }
  0x45   : > { %439 = vst [vmem:[#allocation2 + $0xf0] sm:$0xff] %v4127_v16 }
  0x46   : > { %440 = vst [vmem:[#allocation2 + $0x8] sm:$0xff] %v4127_v16 }
  0x47   : > { %441 = vst [vmem:[#allocation2 + $0x78] sm:$0xff] %v4127_v16 }
  0x48   : > { %442 = vst [vmem:[#allocation2 + $0x38] sm:$0xff] %v4127_v16 }
  0x49   : > { %443 = vst [vmem:[#allocation2 + $0x58] sm:$0xff] %v4127_v16 }
  0x4a   : > { %444 = vst [vmem:[#allocation2 + $0x40] sm:$0xff] %v4127_v16 }
  0x4b   : > { %445 = vst [vmem:[#allocation2 + $0xc8] sm:$0xff] %v4127_v16 }
  0x4c   : > { %446 = vst [vmem:[#allocation2 + $0xe0] sm:$0xff] %v4127_v16 }
  0x4d   : > { %447 = vst [vmem:[#allocation2 + $0x90] sm:$0xff] %v4127_v16 }
  0x4e   : > { %448 = vst [vmem:[#allocation2 + $0x70] sm:$0xff] %v4127_v16 }
  0x4f   : > { %449 = vst [vmem:[#allocation2 + $0xc0] sm:$0xff] %v4127_v16 }
  0x50   : > { %450 = vst [vmem:[#allocation2 + $0xa8] sm:$0xff] %v4127_v16 }
  0x51   : > { %451 = vst [vmem:[#allocation2 + $0xd0] sm:$0xff] %v4127_v16 }
  0x52   : > { %452 = vst [vmem:[#allocation2 + $0x10] sm:$0xff] %v4127_v16 }
  0x53   : > { %453 = vst [vmem:[#allocation2 + $0x28] sm:$0xff] %v4127_v16 }
  0x54   : > { %454 = vst [vmem:[#allocation2 + $0xa0] sm:$0xff] %v4127_v16 }
  0x55   : > { %455 = vst [vmem:[#allocation2 + $0xf8] sm:$0xff] %v4127_v16 }
  0x56   : > { %456 = vst [vmem:[#allocation2 + $0x20] sm:$0xff] %v4127_v16 }
  0x57   : > { %457 = vst [vmem:[#allocation2 + $0x98] sm:$0xff] %v4127_v16 }
  0x58 PF: > { %v3250_v17 = vld [vmem:[%s4254_s19 + $0x70] sm:$0xf]  ;;  %v3612_v18 = vld [vmem:[%s4254_s19 + $0x74] sm:$0xf0]  ;;  %v3611_v22 = vld [vmem:[%s4254_s19 + $0x74] sm:$0xf] }
  0x59   : > { %v3314_v19 = vld [vmem:[%s4254_s19 + $0xf0] sm:$0xf]  ;;  %v3251_v20 = vor.u32 %v3612_v18, %v3250_v17  ;;  %v3628_v21 = vld [vmem:[%s4254_s19 + $0xf4] sm:$0xf0]  ;;  %v3252_v23 = vld [vmem:[%s4254_s19 + $0x78] sm:$0xf0] }
  0x5a   : > { %v3315_v24 = vor.u32 %v3628_v21, %v3314_v19  ;;  %v3255_v25 = vor.u32 %v3611_v22, %v3252_v23  ;;  %v3627_v26 = vld [vmem:[%s4254_s19 + $0xf4] sm:$0xf]  ;;  %v3316_v27 = vld [vmem:[%s4254_s19 + $0xf8] sm:$0xf0]  ;;  %v3242_v28 = vld [vmem:[%s4254_s19 + $0x60] sm:$0xf] }
  0x5b   : > { %778 = vmatpush.bf16.msra.mxu0 %v3251_v20  ;;  %v3319_v29 = vor.u32 %v3627_v26, %v3316_v27  ;;  %v3610_v30 = vld [vmem:[%s4254_s19 + $0x64] sm:$0xf0]  ;;  %v3306_v31 = vld [vmem:[%s4254_s19 + $0xe0] sm:$0xf]  ;;  %v3609_v35 = vld [vmem:[%s4254_s19 + $0x64] sm:$0xf] }
  0x5c   : > { %v3626_v32 = vld [vmem:[%s4254_s19 + $0xe4] sm:$0xf0]  ;;  %827 = vmatpush.bf16.msra.mxu1 %v3315_v24  ;;  %876 = vmatpush.bf16.msra.mxu2 %v3255_v25  ;;  %v3243_v33 = vor.u32 %v3610_v30, %v3242_v28  ;;  %v3244_v36 = vld [vmem:[%s4254_s19 + $0x68] sm:$0xf0]  ;;  %v3625_v37 = vld [vmem:[%s4254_s19 + $0xe4] sm:$0xf] }
  0x5d   : > { %v3307_v34 = vor.u32 %v3626_v32, %v3306_v31  ;;  %925 = vmatpush.bf16.msra.mxu3 %v3319_v29  ;;  %v3247_v38 = vor.u32 %v3609_v35, %v3244_v36  ;;  %v3308_v39 = vld [vmem:[%s4254_s19 + $0xe8] sm:$0xf0]  ;;  %v3234_v40 = vld [vmem:[%s4254_s19 + $0x50] sm:$0xf]  ;;  %v3608_v41 = vld [vmem:[%s4254_s19 + $0x54] sm:$0xf0] }
  0x5e   : > { %v3311_v42 = vor.u32 %v3625_v37, %v3308_v39  ;;  %v3298_v43 = vld [vmem:[%s4254_s19 + $0xd0] sm:$0xf]  ;;  %v3624_v44 = vld [vmem:[%s4254_s19 + $0xd4] sm:$0xf0]  ;;  %v3607_v45 = vld [vmem:[%s4254_s19 + $0x54] sm:$0xf]  ;;  %v3235_v46 = vor.u32 %v3608_v41, %v3234_v40 }
  0x5f   : > { %779 = vmatpush.bf16.msra.mxu0 %v3243_v33  ;;  %v3236_v47 = vld [vmem:[%s4254_s19 + $0x58] sm:$0xf0]  ;;  %v3623_v48 = vld [vmem:[%s4254_s19 + $0xd4] sm:$0xf]  ;;  %v3299_v50 = vor.u32 %v3624_v44, %v3298_v43  ;;  %v3226_v52 = vld [vmem:[%s4254_s19 + $0x40] sm:$0xf] }
  0x60   : > { %v3300_v49 = vld [vmem:[%s4254_s19 + $0xd8] sm:$0xf0]  ;;  %828 = vmatpush.bf16.msra.mxu1 %v3307_v34  ;;  %877 = vmatpush.bf16.msra.mxu2 %v3247_v38  ;;  %v3239_v51 = vor.u32 %v3607_v45, %v3236_v47  ;;  %v3606_v53 = vld [vmem:[%s4254_s19 + $0x44] sm:$0xf0]  ;;  %v3290_v54 = vld [vmem:[%s4254_s19 + $0xc0] sm:$0xf] }
  0x61   : > { %926 = vmatpush.bf16.msra.mxu3 %v3311_v42  ;;  %v3303_v55 = vor.u32 %v3623_v48, %v3300_v49  ;;  %v3622_v56 = vld [vmem:[%s4254_s19 + $0xc4] sm:$0xf0]  ;;  %v3605_v57 = vld [vmem:[%s4254_s19 + $0x44] sm:$0xf]  ;;  %v3228_v58 = vld [vmem:[%s4254_s19 + $0x48] sm:$0xf0]  ;;  %v3227_v61 = vor.u32 %v3606_v53, %v3226_v52 }
  0x62   : > { %v3621_v59 = vld [vmem:[%s4254_s19 + $0xc4] sm:$0xf]  ;;  %v3292_v60 = vld [vmem:[%s4254_s19 + $0xc8] sm:$0xf0]  ;;  %v3291_v62 = vor.u32 %v3622_v56, %v3290_v54  ;;  %v3231_v63 = vor.u32 %v3605_v57, %v3228_v58  ;;  %v3218_v0 = vld [vmem:[%s4254_s19 + $0x30] sm:$0xf] }
  0x63   : > { %780 = vmatpush.bf16.msra.mxu0 %v3235_v46  ;;  %v3604_v1 = vld [vmem:[%s4254_s19 + $0x34] sm:$0xf0]  ;;  %v3282_v2 = vld [vmem:[%s4254_s19 + $0xb0] sm:$0xf]  ;;  %v3295_v3 = vor.u32 %v3621_v59, %v3292_v60  ;;  %v3603_v5 = vld [vmem:[%s4254_s19 + $0x34] sm:$0xf] }
  0x64   : > { %829 = vmatpush.bf16.msra.mxu1 %v3299_v50  ;;  %878 = vmatpush.bf16.msra.mxu2 %v3239_v51  ;;  %v3620_v4 = vld [vmem:[%s4254_s19 + $0xb4] sm:$0xf0]  ;;  %v3220_v6 = vld [vmem:[%s4254_s19 + $0x38] sm:$0xf0]  ;;  %v3619_v7 = vld [vmem:[%s4254_s19 + $0xb4] sm:$0xf]  ;;  %v3219_v9 = vor.u32 %v3604_v1, %v3218_v0 }
  0x65   : > { %927 = vmatpush.bf16.msra.mxu3 %v3303_v55  ;;  %v3284_v8 = vld [vmem:[%s4254_s19 + $0xb8] sm:$0xf0]  ;;  %v3283_v10 = vor.u32 %v3620_v4, %v3282_v2  ;;  %v3223_v11 = vor.u32 %v3603_v5, %v3220_v6  ;;  %v3210_v12 = vld [vmem:[%s4254_s19 + $0x20] sm:$0xf]  ;;  %v3602_v13 = vld [vmem:[%s4254_s19 + $0x24] sm:$0xf0] }
  0x66   : > { %v3274_v14 = vld [vmem:[%s4254_s19 + $0xa0] sm:$0xf]  ;;  %v3287_v15 = vor.u32 %v3619_v7, %v3284_v8  ;;  %v3618_v16 = vld [vmem:[%s4254_s19 + $0xa4] sm:$0xf0]  ;;  %v3601_v17 = vld [vmem:[%s4254_s19 + $0x24] sm:$0xf]  ;;  %v3211_v21 = vor.u32 %v3602_v13, %v3210_v12 }
  0x67   : > { %781 = vmatpush.bf16.msra.mxu0 %v3227_v61  ;;  %v3212_v18 = vld [vmem:[%s4254_s19 + $0x28] sm:$0xf0]  ;;  %v3617_v19 = vld [vmem:[%s4254_s19 + $0xa4] sm:$0xf]  ;;  %v3275_v22 = vor.u32 %v3618_v16, %v3274_v14  ;;  %v3202_v24 = vld [vmem:[%s4254_s19 + $0x10] sm:$0xf] }
  0x68   : > { %830 = vmatpush.bf16.msra.mxu1 %v3291_v62  ;;  %879 = vmatpush.bf16.msra.mxu2 %v3231_v63  ;;  %v3276_v20 = vld [vmem:[%s4254_s19 + $0xa8] sm:$0xf0]  ;;  %v3215_v23 = vor.u32 %v3601_v17, %v3212_v18  ;;  %v3600_v25 = vld [vmem:[%s4254_s19 + $0x14] sm:$0xf0]  ;;  %v3266_v26 = vld [vmem:[%s4254_s19 + $0x90] sm:$0xf] }
  0x69   : > { %928 = vmatpush.bf16.msra.mxu3 %v3295_v3  ;;  %v3279_v27 = vor.u32 %v3617_v19, %v3276_v20  ;;  %v3616_v28 = vld [vmem:[%s4254_s19 + $0x94] sm:$0xf0]  ;;  %v3599_v29 = vld [vmem:[%s4254_s19 + $0x14] sm:$0xf]  ;;  %v3204_v30 = vld [vmem:[%s4254_s19 + $0x18] sm:$0xf0]  ;;  %v3203_v33 = vor.u32 %v3600_v25, %v3202_v24 }
  0x6a   : > { %v3615_v31 = vld [vmem:[%s4254_s19 + $0x94] sm:$0xf]  ;;  %v3268_v32 = vld [vmem:[%s4254_s19 + $0x98] sm:$0xf0]  ;;  %v3267_v34 = vor.u32 %v3616_v28, %v3266_v26  ;;  %v3207_v35 = vor.u32 %v3599_v29, %v3204_v30  ;;  %v3194_v36 = vld [vmem:[%s4254_s19] sm:$0xf] }
  0x6b   : > { %782 = vmatpush.bf16.msra.mxu0 %v3219_v9  ;;  %v3598_v37 = vld [vmem:[%s4254_s19 + $0x4] sm:$0xf0]  ;;  %v3258_v38 = vld [vmem:[%s4254_s19 + $0x80] sm:$0xf]  ;;  %v3271_v39 = vor.u32 %v3615_v31, %v3268_v32  ;;  %v3597_v41 = vld [vmem:[%s4254_s19 + $0x4] sm:$0xf] }
  0x6c   : > { %831 = vmatpush.bf16.msra.mxu1 %v3283_v10  ;;  %880 = vmatpush.bf16.msra.mxu2 %v3223_v11  ;;  %v3614_v40 = vld [vmem:[%s4254_s19 + $0x84] sm:$0xf0]  ;;  %v3196_v42 = vld [vmem:[%s4254_s19 + $0x8] sm:$0xf0]  ;;  %v3613_v43 = vld [vmem:[%s4254_s19 + $0x84] sm:$0xf]  ;;  %v3195_v45 = vor.u32 %v3598_v37, %v3194_v36 }
  0x6d   : > { %929 = vmatpush.bf16.msra.mxu3 %v3287_v15  ;;  %v3260_v44 = vld [vmem:[%s4254_s19 + $0x88] sm:$0xf0]  ;;  %v3130_v46 = vld [vmem:[%s4261_s24] sm:$0xf]  ;;  %v3582_v47 = vld [vmem:[%s4261_s24 + $0x4] sm:$0xf0]  ;;  %v3259_v48 = vor.u32 %v3614_v40, %v3258_v38  ;;  %v3199_v49 = vor.u32 %v3597_v41, %v3196_v42 }
  0x6e   : > { %v3581_v50 = vld [vmem:[%s4261_s24 + $0x4] sm:$0xf]  ;;  %v3132_v51 = vld [vmem:[%s4261_s24 + $0x8] sm:$0xf0]  ;;  %v3263_v52 = vor.u32 %v3613_v43, %v3260_v44  ;;  %v3131_v53 = vor.u32 %v3582_v47, %v3130_v46  ;;  %v3138_v55 = vld [vmem:[%s4261_s24 + $0x10] sm:$0xf] }
  0x6f   : > { %783 = vmatpush.bf16.msra.mxu0 %v3211_v21  ;;  %v3135_v54 = vor.u32 %v3581_v50, %v3132_v51  ;;  %v3584_v56 = vld [vmem:[%s4261_s24 + $0x14] sm:$0xf0]  ;;  %v3583_v57 = vld [vmem:[%s4261_s24 + $0x14] sm:$0xf]  ;;  %v3140_v58 = vld [vmem:[%s4261_s24 + $0x18] sm:$0xf0] }
  0x70   : > { %832 = vmatpush.bf16.msra.mxu1 %v3275_v22  ;;  %881 = vmatpush.bf16.msra.mxu2 %v3215_v23  ;;  %v3139_v59 = vor.u32 %v3584_v56, %v3138_v55  ;;  %v3143_v60 = vor.u32 %v3583_v57, %v3140_v58  ;;  %v3146_v61 = vld [vmem:[%s4261_s24 + $0x20] sm:$0xf]  ;;  %v3586_v62 = vld [vmem:[%s4261_s24 + $0x24] sm:$0xf0]  ;;  %v3585_v63 = vld [vmem:[%s4261_s24 + $0x24] sm:$0xf] }
  0x71   : > { %930 = vmatpush.bf16.msra.mxu3 %v3279_v27  ;;  %v3148_v0 = vld [vmem:[%s4261_s24 + $0x28] sm:$0xf0]  ;;  %v3147_v1 = vor.u32 %v3586_v62, %v3146_v61  ;;  %v3154_v3 = vld [vmem:[%s4261_s24 + $0x30] sm:$0xf]  ;;  %v3588_v4 = vld [vmem:[%s4261_s24 + $0x34] sm:$0xf0] }
  0x72   : > { %v3151_v2 = vor.u32 %v3585_v63, %v3148_v0  ;;  %v3587_v5 = vld [vmem:[%s4261_s24 + $0x34] sm:$0xf]  ;;  %v3156_v6 = vld [vmem:[%s4261_s24 + $0x38] sm:$0xf0]  ;;  %v3155_v7 = vor.u32 %v3588_v4, %v3154_v3  ;;  %v3162_v9 = vld [vmem:[%s4261_s24 + $0x40] sm:$0xf] }
  0x73   : > { %784 = vmatpush.bf16.msra.mxu0 %v3203_v33  ;;  %v3159_v8 = vor.u32 %v3587_v5, %v3156_v6  ;;  %v3590_v10 = vld [vmem:[%s4261_s24 + $0x44] sm:$0xf0]  ;;  %v3589_v11 = vld [vmem:[%s4261_s24 + $0x44] sm:$0xf]  ;;  %v3164_v12 = vld [vmem:[%s4261_s24 + $0x48] sm:$0xf0] }
  0x74   : > { %833 = vmatpush.bf16.msra.mxu1 %v3267_v34  ;;  %882 = vmatpush.bf16.msra.mxu2 %v3207_v35  ;;  %v3163_v13 = vor.u32 %v3590_v10, %v3162_v9  ;;  %v3167_v14 = vor.u32 %v3589_v11, %v3164_v12  ;;  %v3170_v15 = vld [vmem:[%s4261_s24 + $0x50] sm:$0xf]  ;;  %v3592_v16 = vld [vmem:[%s4261_s24 + $0x54] sm:$0xf0]  ;;  %v3591_v17 = vld [vmem:[%s4261_s24 + $0x54] sm:$0xf] }
  0x75   : > { %931 = vmatpush.bf16.msra.mxu3 %v3271_v39  ;;  %v3172_v18 = vld [vmem:[%s4261_s24 + $0x58] sm:$0xf0]  ;;  %v3171_v19 = vor.u32 %v3592_v16, %v3170_v15  ;;  %v3178_v21 = vld [vmem:[%s4261_s24 + $0x60] sm:$0xf]  ;;  %v3594_v22 = vld [vmem:[%s4261_s24 + $0x64] sm:$0xf0] }
  0x76   : > { %v3175_v20 = vor.u32 %v3591_v17, %v3172_v18  ;;  %v3593_v23 = vld [vmem:[%s4261_s24 + $0x64] sm:$0xf]  ;;  %v3180_v24 = vld [vmem:[%s4261_s24 + $0x68] sm:$0xf0]  ;;  %v3179_v25 = vor.u32 %v3594_v22, %v3178_v21  ;;  %v3186_v27 = vld [vmem:[%s4261_s24 + $0x70] sm:$0xf] }
  0x77   : > { %785 = vmatpush.bf16.msra.mxu0 %v3195_v45  ;;  %v3183_v26 = vor.u32 %v3593_v23, %v3180_v24  ;;  %v3596_v28 = vld [vmem:[%s4261_s24 + $0x74] sm:$0xf0]  ;;  %v3595_v29 = vld [vmem:[%s4261_s24 + $0x74] sm:$0xf]  ;;  %v3188_v30 = vld [vmem:[%s4261_s24 + $0x78] sm:$0xf0] }
  0x78   : > { %834 = vmatpush.bf16.msra.mxu1 %v3259_v48  ;;  %883 = vmatpush.bf16.msra.mxu2 %v3199_v49  ;;  %v3187_v31 = vor.u32 %v3596_v28, %v3186_v27  ;;  %v3191_v32 = vor.u32 %v3595_v29, %v3188_v30  ;;  %v458_v34 = vld [vmem:[#allocation2 + $0xb0] sm:$0xff]  ;;  %v459_v39 = vld [vmem:[#allocation2] sm:$0xff]  ;;  %v460_v43 = vld [vmem:[#allocation2 + $0xd8] sm:$0xff]  ;;  %p3320_p13 = scmp.ne.s32.totalorder %s4109_s26, 1 }
  0x79   : > { %932 = vmatpush.bf16.msra.mxu3 %v3263_v52  ;;  %v461_v49 = vld [vmem:[#allocation2 + $0x18] sm:$0xff]  ;;  %v464_v63 = vld [vmem:[#allocation2 + $0x30] sm:$0xff]  ;;  %v465_v5 = vld [vmem:[#allocation2 + $0x48] sm:$0xff] }
  0x7a   : > { %786 = vmatmul.bf16.vlgmr.msra.gmra.mxu0 %v3131_v53  ;;  %v466_v9 = vld [vmem:[#allocation2 + $0x80] sm:$0xff]  ;;  %v467_v15 = vld [vmem:[#allocation2 + $0x88] sm:$0xff] }
  0x7b   : > { %835 = vmatmul.bf16.vlgmr.msra.gmra.mxu1 %v3135_v54  ;;  %884 = vmatmul.bf16.vlgmr.msra.gmra.mxu2 %v3131_v53  ;;  %v462_v53 = vld [vmem:[#allocation2 + $0x50] sm:$0xff]  ;;  %v470_v29 = vld [vmem:[#allocation2 + $0x60] sm:$0xff] }
  0x7c   : > { %933 = vmatmul.bf16.vlgmr.msra.gmra.mxu3 %v3135_v54 }
  0x8a   : > { %791 = vmatmul.bf16.gmra.mxu0 %v3139_v59 }
  0x8b   : > { %840 = vmatmul.bf16.gmra.mxu1 %v3143_v60  ;;  %889 = vmatmul.bf16.gmra.mxu2 %v3139_v59  ;;  %v463_v59 = vld [vmem:[#allocation2 + $0x68] sm:$0xff] }
  0x8c   : > { %938 = vmatmul.bf16.gmra.mxu3 %v3143_v60 }
  0x9a   : > { %796 = vmatmul.bf16.gmra.mxu0 %v3147_v1 }
  0x9b   : > { %845 = vmatmul.bf16.gmra.mxu1 %v3151_v2  ;;  %894 = vmatmul.bf16.gmra.mxu2 %v3147_v1 }
  0x9c   : > { %943 = vmatmul.bf16.gmra.mxu3 %v3151_v2 }
  0xaa   : > { %801 = vmatmul.bf16.gmra.mxu0 %v3155_v7 }
  0xab   : > { %850 = vmatmul.bf16.gmra.mxu1 %v3159_v8  ;;  %899 = vmatmul.bf16.gmra.mxu2 %v3155_v7 }
  0xac   : > { %948 = vmatmul.bf16.gmra.mxu3 %v3159_v8 }
  0xba   : > { %806 = vmatmul.bf16.gmra.mxu0 %v3163_v13 }
  0xbb   : > { %855 = vmatmul.bf16.gmra.mxu1 %v3167_v14  ;;  %904 = vmatmul.bf16.gmra.mxu2 %v3163_v13 }
  0xbc   : > { %953 = vmatmul.bf16.gmra.mxu3 %v3167_v14 }
  0xca   : > { %811 = vmatmul.bf16.gmra.mxu0 %v3171_v19 }
  0xcb   : > { %860 = vmatmul.bf16.gmra.mxu1 %v3175_v20  ;;  %909 = vmatmul.bf16.gmra.mxu2 %v3171_v19  ;;  %v468_v19 = vld [vmem:[#allocation2 + $0xe8] sm:$0xff] }
  0xcc   : > { %958 = vmatmul.bf16.gmra.mxu3 %v3175_v20 }
  0xda   : > { %816 = vmatmul.bf16.gmra.mxu0 %v3179_v25 }
  0xdb   : > { %865 = vmatmul.bf16.gmra.mxu1 %v3183_v26  ;;  %914 = vmatmul.bf16.gmra.mxu2 %v3179_v25  ;;  %v469_v25 = vld [vmem:[#allocation2 + $0xb8] sm:$0xff] }
  0xdc   : > { %963 = vmatmul.bf16.gmra.mxu3 %v3183_v26 }
  0xea   : > { %821 = vmatmul.bf16.gmra.mxu0 %v3187_v31 }
  0xeb   : > { %870 = vmatmul.bf16.gmra.mxu1 %v3191_v32  ;;  %919 = vmatmul.bf16.gmra.mxu2 %v3187_v31 }
  0xec   : > { %968 = vmatmul.bf16.gmra.mxu3 %v3191_v32 }
  0xf7   : > { %v787_v33 = vpop.f32.mrf.mxu0 }
  0xf8   : > { %v836_v35 = vpop.f32.mrf.mxu1 }
  0xf9   : > { %v837_v36 = vadd.f32 %v836_v35, %v787_v33  ;;  %v471_v35 = vld [vmem:[#allocation2 + $0xf0] sm:$0xff] }
  0xfb   : > { %v974_v37 = vadd.f32 %v837_v36, %v458_v34 }
  0xfd   : > { %1006 = vst [vmem:[#allocation2 + $0xb0] sm:$0xff] %v974_v37 }
  0xfe   : > { %v885_v38 = vpop.f32.mrf.mxu2 }
  0xff   : > { %v934_v40 = vpop.f32.mrf.mxu3  ;;  %v789_v41 = vpop.f32.mrf.mxu0 }
 0x100   : > { %v935_v42 = vadd.f32 %v934_v40, %v885_v38  ;;  %v838_v44 = vpop.f32.mrf.mxu1 }
 0x101   : > { %v839_v45 = vadd.f32 %v838_v44, %v789_v41 }
 0x102   : > { %v975_v46 = vadd.f32 %v935_v42, %v459_v39  ;;  %v472_v39 = vld [vmem:[#allocation2 + $0x8] sm:$0xff] }
 0x103   : > { %v976_v47 = vadd.f32 %v839_v45, %v460_v43  ;;  %v473_v45 = vld [vmem:[#allocation2 + $0x78] sm:$0xff] }
 0x104   : > { %1007 = vst [vmem:[#allocation2] sm:$0xff] %v975_v46 }
 0x105   : > { %1008 = vst [vmem:[#allocation2 + $0xd8] sm:$0xff] %v976_v47 }
 0x106   : > { %v887_v48 = vpop.f32.mrf.mxu2 }
 0x107   : > { %v936_v50 = vpop.f32.mrf.mxu3  ;;  %v792_v51 = vpop.f32.mrf.mxu0 }
 0x108   : > { %v937_v52 = vadd.f32 %v936_v50, %v887_v48  ;;  %v841_v54 = vpop.f32.mrf.mxu1 }
 0x109   : > { %v842_v55 = vadd.f32 %v841_v54, %v792_v51 }
 0x10a   : > { %v977_v56 = vadd.f32 %v937_v52, %v461_v49  ;;  %v474_v49 = vld [vmem:[#allocation2 + $0x38] sm:$0xff] }
 0x10b   : > { %v978_v57 = vadd.f32 %v842_v55, %v462_v53  ;;  %v475_v55 = vld [vmem:[#allocation2 + $0x58] sm:$0xff] }
 0x10c   : > { %1009 = vst [vmem:[#allocation2 + $0x18] sm:$0xff] %v977_v56 }
 0x10d   : > { %1010 = vst [vmem:[#allocation2 + $0x50] sm:$0xff] %v978_v57 }
 0x10e   : > { %v890_v58 = vpop.f32.mrf.mxu2 }
 0x10f   : > { %v939_v60 = vpop.f32.mrf.mxu3  ;;  %v794_v61 = vpop.f32.mrf.mxu0 }
 0x110   : > { %v940_v62 = vadd.f32 %v939_v60, %v890_v58  ;;  %v843_v0 = vpop.f32.mrf.mxu1 }
 0x111   : > { %v844_v1 = vadd.f32 %v843_v0, %v794_v61 }
 0x112   : > { %v979_v2 = vadd.f32 %v940_v62, %v463_v59  ;;  %v476_v59 = vld [vmem:[#allocation2 + $0x40] sm:$0xff] }
 0x113   : > { %v980_v3 = vadd.f32 %v844_v1, %v464_v63  ;;  %v477_v1 = vld [vmem:[#allocation2 + $0xc8] sm:$0xff] }
 0x114   : > { %1011 = vst [vmem:[#allocation2 + $0x68] sm:$0xff] %v979_v2 }
 0x115   : > { %1012 = vst [vmem:[#allocation2 + $0x30] sm:$0xff] %v980_v3 }
 0x116   : > { %v892_v4 = vpop.f32.mrf.mxu2 }
 0x117   : > { %v941_v6 = vpop.f32.mrf.mxu3  ;;  %v797_v7 = vpop.f32.mrf.mxu0 }
 0x118   : > { %v942_v8 = vadd.f32 %v941_v6, %v892_v4  ;;  %v846_v10 = vpop.f32.mrf.mxu1 }
 0x119   : > { %v847_v11 = vadd.f32 %v846_v10, %v797_v7 }
 0x11a   : > { %v981_v12 = vadd.f32 %v942_v8, %v465_v5  ;;  %v478_v5 = vld [vmem:[#allocation2 + $0xe0] sm:$0xff] }
 0x11b   : > { %v982_v13 = vadd.f32 %v847_v11, %v466_v9  ;;  %v479_v11 = vld [vmem:[#allocation2 + $0x90] sm:$0xff] }
 0x11c   : > { %1013 = vst [vmem:[#allocation2 + $0x48] sm:$0xff] %v981_v12 }
 0x11d   : > { %1014 = vst [vmem:[#allocation2 + $0x80] sm:$0xff] %v982_v13 }
 0x11e   : > { %v895_v14 = vpop.f32.mrf.mxu2 }
 0x11f   : > { %v944_v16 = vpop.f32.mrf.mxu3  ;;  %v799_v17 = vpop.f32.mrf.mxu0 }
 0x120   : > { %v945_v18 = vadd.f32 %v944_v16, %v895_v14  ;;  %v848_v20 = vpop.f32.mrf.mxu1 }
 0x121   : > { %v849_v21 = vadd.f32 %v848_v20, %v799_v17 }
 0x122   : > { %v983_v22 = vadd.f32 %v945_v18, %v467_v15  ;;  %v480_v15 = vld [vmem:[#allocation2 + $0x70] sm:$0xff] }
 0x123   : > { %v984_v23 = vadd.f32 %v849_v21, %v468_v19  ;;  %v481_v21 = vld [vmem:[#allocation2 + $0xc0] sm:$0xff] }
 0x124   : > { %1015 = vst [vmem:[#allocation2 + $0x88] sm:$0xff] %v983_v22 }
 0x125   : > { %1016 = vst [vmem:[#allocation2 + $0xe8] sm:$0xff] %v984_v23 }
 0x126   : > { %v897_v24 = vpop.f32.mrf.mxu2 }
 0x127   : > { %v946_v26 = vpop.f32.mrf.mxu3  ;;  %v802_v27 = vpop.f32.mrf.mxu0 }
 0x128   : > { %v947_v28 = vadd.f32 %v946_v26, %v897_v24  ;;  %v851_v30 = vpop.f32.mrf.mxu1 }
 0x129   : > { %v852_v31 = vadd.f32 %v851_v30, %v802_v27 }
 0x12a   : > { %v985_v32 = vadd.f32 %v947_v28, %v469_v25  ;;  %v482_v25 = vld [vmem:[#allocation2 + $0xa8] sm:$0xff] }
 0x12b   : > { %v986_v33 = vadd.f32 %v852_v31, %v470_v29  ;;  %v483_v31 = vld [vmem:[#allocation2 + $0xd0] sm:$0xff] }
 0x12c   : > { %1017 = vst [vmem:[#allocation2 + $0xb8] sm:$0xff] %v985_v32 }
 0x12d   : > { %1018 = vst [vmem:[#allocation2 + $0x60] sm:$0xff] %v986_v33 }
 0x12e   : > { %v900_v34 = vpop.f32.mrf.mxu2 }
 0x12f   : > { %v949_v36 = vpop.f32.mrf.mxu3  ;;  %v804_v37 = vpop.f32.mrf.mxu0 }
 0x130   : > { %v950_v38 = vadd.f32 %v949_v36, %v900_v34  ;;  %v853_v40 = vpop.f32.mrf.mxu1 }
 0x131   : > { %v854_v41 = vadd.f32 %v853_v40, %v804_v37 }
 0x132   : > { %v987_v42 = vadd.f32 %v950_v38, %v471_v35  ;;  %v484_v35 = vld [vmem:[#allocation2 + $0x10] sm:$0xff] }
 0x133   : > { %v988_v43 = vadd.f32 %v854_v41, %v472_v39  ;;  %v485_v41 = vld [vmem:[#allocation2 + $0x28] sm:$0xff] }
 0x134   : > { %1019 = vst [vmem:[#allocation2 + $0xf0] sm:$0xff] %v987_v42 }
 0x135   : > { %1020 = vst [vmem:[#allocation2 + $0x8] sm:$0xff] %v988_v43 }
 0x136   : > { %v902_v44 = vpop.f32.mrf.mxu2 }
 0x137   : > { %v951_v46 = vpop.f32.mrf.mxu3  ;;  %v807_v47 = vpop.f32.mrf.mxu0 }
 0x138   : > { %v952_v48 = vadd.f32 %v951_v46, %v902_v44  ;;  %v856_v50 = vpop.f32.mrf.mxu1 }
 0x139   : > { %v857_v51 = vadd.f32 %v856_v50, %v807_v47 }
 0x13a   : > { %v989_v52 = vadd.f32 %v952_v48, %v473_v45  ;;  %v486_v45 = vld [vmem:[#allocation2 + $0xa0] sm:$0xff] }
 0x13b   : > { %v990_v53 = vadd.f32 %v857_v51, %v474_v49  ;;  %v487_v51 = vld [vmem:[#allocation2 + $0xf8] sm:$0xff] }
 0x13c   : > { %1021 = vst [vmem:[#allocation2 + $0x78] sm:$0xff] %v989_v52 }
 0x13d   : > { %1022 = vst [vmem:[#allocation2 + $0x38] sm:$0xff] %v990_v53 }
 0x13e   : > { %v905_v54 = vpop.f32.mrf.mxu2 }
 0x13f   : > { %v954_v56 = vpop.f32.mrf.mxu3  ;;  %v809_v57 = vpop.f32.mrf.mxu0 }
 0x140   : > { %v955_v58 = vadd.f32 %v954_v56, %v905_v54  ;;  %v858_v60 = vpop.f32.mrf.mxu1 }
 0x141   : > { %v859_v61 = vadd.f32 %v858_v60, %v809_v57 }
 0x142   : > { %v991_v62 = vadd.f32 %v955_v58, %v475_v55  ;;  %v488_v55 = vld [vmem:[#allocation2 + $0x20] sm:$0xff] }
 0x143   : > { %v992_v63 = vadd.f32 %v859_v61, %v476_v59  ;;  %v489_v61 = vld [vmem:[#allocation2 + $0x98] sm:$0xff] }
 0x144   : > { %1023 = vst [vmem:[#allocation2 + $0x58] sm:$0xff] %v991_v62 }
 0x145   : > { %1024 = vst [vmem:[#allocation2 + $0x40] sm:$0xff] %v992_v63 }
 0x146   : > { %v907_v0 = vpop.f32.mrf.mxu2 }
 0x147   : > { %v956_v2 = vpop.f32.mrf.mxu3  ;;  %v812_v3 = vpop.f32.mrf.mxu0 }
 0x148   : > { %v957_v4 = vadd.f32 %v956_v2, %v907_v0  ;;  %v861_v6 = vpop.f32.mrf.mxu1 }
 0x149   : > { %v862_v7 = vadd.f32 %v861_v6, %v812_v3 }
 0x14a   : > { %v993_v8 = vadd.f32 %v957_v4, %v477_v1 }
 0x14b   : > { %v994_v9 = vadd.f32 %v862_v7, %v478_v5 }
 0x14c   : > { %1025 = vst [vmem:[#allocation2 + $0xc8] sm:$0xff] %v993_v8 }
 0x14d   : > { %1026 = vst [vmem:[#allocation2 + $0xe0] sm:$0xff] %v994_v9 }
 0x14e   : > { %v910_v10 = vpop.f32.mrf.mxu2 }
 0x14f   : > { %v959_v12 = vpop.f32.mrf.mxu3  ;;  %v814_v13 = vpop.f32.mrf.mxu0 }
 0x150   : > { %v960_v14 = vadd.f32 %v959_v12, %v910_v10  ;;  %v863_v16 = vpop.f32.mrf.mxu1 }
 0x151   : > { %v864_v17 = vadd.f32 %v863_v16, %v814_v13 }
 0x152   : > { %v995_v18 = vadd.f32 %v960_v14, %v479_v11 }
 0x153   : > { %v996_v19 = vadd.f32 %v864_v17, %v480_v15 }
 0x154   : > { %1027 = vst [vmem:[#allocation2 + $0x90] sm:$0xff] %v995_v18 }
 0x155   : > { %1028 = vst [vmem:[#allocation2 + $0x70] sm:$0xff] %v996_v19 }
 0x156   : > { %v912_v20 = vpop.f32.mrf.mxu2 }
 0x157   : > { %v961_v22 = vpop.f32.mrf.mxu3  ;;  %v817_v23 = vpop.f32.mrf.mxu0 }
 0x158   : > { %v962_v24 = vadd.f32 %v961_v22, %v912_v20  ;;  %v866_v26 = vpop.f32.mrf.mxu1 }
 0x159   : > { %v867_v27 = vadd.f32 %v866_v26, %v817_v23 }
 0x15a   : > { %v997_v28 = vadd.f32 %v962_v24, %v481_v21 }
 0x15b   : > { %v998_v29 = vadd.f32 %v867_v27, %v482_v25 }
 0x15c   : > { %1029 = vst [vmem:[#allocation2 + $0xc0] sm:$0xff] %v997_v28 }
 0x15d   : > { %1030 = vst [vmem:[#allocation2 + $0xa8] sm:$0xff] %v998_v29 }
 0x15e   : > { %v915_v30 = vpop.f32.mrf.mxu2 }
 0x15f   : > { %v964_v32 = vpop.f32.mrf.mxu3  ;;  %v819_v33 = vpop.f32.mrf.mxu0 }
 0x160   : > { %v965_v34 = vadd.f32 %v964_v32, %v915_v30  ;;  %v868_v36 = vpop.f32.mrf.mxu1 }
 0x161   : > { %v869_v37 = vadd.f32 %v868_v36, %v819_v33 }
 0x162   : > { %v999_v38 = vadd.f32 %v965_v34, %v483_v31 }
 0x163   : > { %v1000_v39 = vadd.f32 %v869_v37, %v484_v35 }
 0x164   : > { %1031 = vst [vmem:[#allocation2 + $0xd0] sm:$0xff] %v999_v38 }
 0x165   : > { %1032 = vst [vmem:[#allocation2 + $0x10] sm:$0xff] %v1000_v39 }
 0x166   : > { %v917_v40 = vpop.f32.mrf.mxu2 }
 0x167   : > { %v966_v42 = vpop.f32.mrf.mxu3  ;;  %v822_v43 = vpop.f32.mrf.mxu0 }
 0x168   : > { %v967_v44 = vadd.f32 %v966_v42, %v917_v40  ;;  %v871_v46 = vpop.f32.mrf.mxu1 }
 0x169   : > { %v872_v47 = vadd.f32 %v871_v46, %v822_v43 }
 0x16a   : > { %v1001_v48 = vadd.f32 %v967_v44, %v485_v41 }
 0x16b   : > { %v1002_v49 = vadd.f32 %v872_v47, %v486_v45 }
 0x16c   : > { %1033 = vst [vmem:[#allocation2 + $0x28] sm:$0xff] %v1001_v48 }
 0x16d   : > { %1034 = vst [vmem:[#allocation2 + $0xa0] sm:$0xff] %v1002_v49 }
 0x16e   : > { %v920_v50 = vpop.f32.mrf.mxu2 }
 0x16f   : > { %v969_v52 = vpop.f32.mrf.mxu3  ;;  %v824_v53 = vpop.f32.mrf.mxu0 }
 0x170   : > { %v970_v54 = vadd.f32 %v969_v52, %v920_v50  ;;  %v873_v56 = vpop.f32.mrf.mxu1 }
 0x171   : > { %v874_v57 = vadd.f32 %v873_v56, %v824_v53 }
 0x172   : > { %v1003_v58 = vadd.f32 %v970_v54, %v487_v51 }
 0x173   : > { %v1004_v59 = vadd.f32 %v874_v57, %v488_v55 }
 0x174   : > { %1035 = vst [vmem:[#allocation2 + $0xf8] sm:$0xff] %v1003_v58 }
 0x175   : > { %1036 = vst [vmem:[#allocation2 + $0x20] sm:$0xff] %v1004_v59 }
 0x176   : > { %v922_v60 = vpop.f32.mrf.mxu2 }
 0x177   : > { %v971_v62 = vpop.f32.mrf.mxu3 }
 0x178   : > { %v972_v63 = vadd.f32 %v971_v62, %v922_v60  ;;  %1041 = sbr.rel (%p3320_p13) target bundleno = 1109 (0x455), region = 94 }
 0x17a   : > { %v1005_v0 = vadd.f32 %v972_v63, %v489_v61 }
 0x17c   : > { %1037 = vst [vmem:[#allocation2 + $0x98] sm:$0xff] %v1005_v0 }
 0x17d   : > { %v3379_v1 = vld [vmem:[%s5963_s3 + $0x70] sm:$0xf]  ;;  %v3644_v2 = vld [vmem:[%s5963_s3 + $0x74] sm:$0xf0]  ;;  %v3643_v6 = vld [vmem:[%s5963_s3 + $0x74] sm:$0xf] }
 0x17e   : > { %v3443_v3 = vld [vmem:[%s5963_s3 + $0xf0] sm:$0xf]  ;;  %v3380_v4 = vor.u32 %v3644_v2, %v3379_v1  ;;  %v3660_v5 = vld [vmem:[%s5963_s3 + $0xf4] sm:$0xf0]  ;;  %v3381_v7 = vld [vmem:[%s5963_s3 + $0x78] sm:$0xf0] }
 0x17f   : > { %v3444_v8 = vor.u32 %v3660_v5, %v3443_v3  ;;  %v3384_v9 = vor.u32 %v3643_v6, %v3381_v7  ;;  %v3659_v10 = vld [vmem:[%s5963_s3 + $0xf4] sm:$0xf]  ;;  %v3445_v11 = vld [vmem:[%s5963_s3 + $0xf8] sm:$0xf0]  ;;  %v3371_v12 = vld [vmem:[%s5963_s3 + $0x60] sm:$0xf] }
 0x180   : > { %1774 = vmatpush.bf16.msra.mxu0 %v3380_v4  ;;  %v3448_v13 = vor.u32 %v3659_v10, %v3445_v11  ;;  %v3642_v14 = vld [vmem:[%s5963_s3 + $0x64] sm:$0xf0]  ;;  %v3435_v15 = vld [vmem:[%s5963_s3 + $0xe0] sm:$0xf]  ;;  %v3641_v19 = vld [vmem:[%s5963_s3 + $0x64] sm:$0xf] }
 0x181   : > { %v3658_v16 = vld [vmem:[%s5963_s3 + $0xe4] sm:$0xf0]  ;;  %1823 = vmatpush.bf16.msra.mxu1 %v3444_v8  ;;  %1872 = vmatpush.bf16.msra.mxu2 %v3384_v9  ;;  %v3372_v17 = vor.u32 %v3642_v14, %v3371_v12  ;;  %v3373_v20 = vld [vmem:[%s5963_s3 + $0x68] sm:$0xf0]  ;;  %v3657_v21 = vld [vmem:[%s5963_s3 + $0xe4] sm:$0xf] }
 0x182   : > { %v3436_v18 = vor.u32 %v3658_v16, %v3435_v15  ;;  %1921 = vmatpush.bf16.msra.mxu3 %v3448_v13  ;;  %v3376_v22 = vor.u32 %v3641_v19, %v3373_v20  ;;  %v3437_v23 = vld [vmem:[%s5963_s3 + $0xe8] sm:$0xf0]  ;;  %v3363_v24 = vld [vmem:[%s5963_s3 + $0x50] sm:$0xf]  ;;  %v3640_v25 = vld [vmem:[%s5963_s3 + $0x54] sm:$0xf0] }
 0x183   : > { %v3440_v26 = vor.u32 %v3657_v21, %v3437_v23  ;;  %v3427_v27 = vld [vmem:[%s5963_s3 + $0xd0] sm:$0xf]  ;;  %v3656_v28 = vld [vmem:[%s5963_s3 + $0xd4] sm:$0xf0]  ;;  %v3639_v29 = vld [vmem:[%s5963_s3 + $0x54] sm:$0xf]  ;;  %v3364_v30 = vor.u32 %v3640_v25, %v3363_v24 }
 0x184   : > { %1775 = vmatpush.bf16.msra.mxu0 %v3372_v17  ;;  %v3365_v31 = vld [vmem:[%s5963_s3 + $0x58] sm:$0xf0]  ;;  %v3655_v32 = vld [vmem:[%s5963_s3 + $0xd4] sm:$0xf]  ;;  %v3428_v34 = vor.u32 %v3656_v28, %v3427_v27  ;;  %v3355_v36 = vld [vmem:[%s5963_s3 + $0x40] sm:$0xf] }
 0x185   : > { %v3429_v33 = vld [vmem:[%s5963_s3 + $0xd8] sm:$0xf0]  ;;  %1824 = vmatpush.bf16.msra.mxu1 %v3436_v18  ;;  %1873 = vmatpush.bf16.msra.mxu2 %v3376_v22  ;;  %v3368_v35 = vor.u32 %v3639_v29, %v3365_v31  ;;  %v3638_v37 = vld [vmem:[%s5963_s3 + $0x44] sm:$0xf0]  ;;  %v3419_v38 = vld [vmem:[%s5963_s3 + $0xc0] sm:$0xf] }
 0x186   : > { %1922 = vmatpush.bf16.msra.mxu3 %v3440_v26  ;;  %v3432_v39 = vor.u32 %v3655_v32, %v3429_v33  ;;  %v3654_v40 = vld [vmem:[%s5963_s3 + $0xc4] sm:$0xf0]  ;;  %v3637_v41 = vld [vmem:[%s5963_s3 + $0x44] sm:$0xf]  ;;  %v3357_v42 = vld [vmem:[%s5963_s3 + $0x48] sm:$0xf0]  ;;  %v3356_v45 = vor.u32 %v3638_v37, %v3355_v36 }
 0x187   : > { %v3653_v43 = vld [vmem:[%s5963_s3 + $0xc4] sm:$0xf]  ;;  %v3421_v44 = vld [vmem:[%s5963_s3 + $0xc8] sm:$0xf0]  ;;  %v3420_v46 = vor.u32 %v3654_v40, %v3419_v38  ;;  %v3360_v47 = vor.u32 %v3637_v41, %v3357_v42  ;;  %v3347_v48 = vld [vmem:[%s5963_s3 + $0x30] sm:$0xf] }
 0x188   : > { %1776 = vmatpush.bf16.msra.mxu0 %v3364_v30  ;;  %v3636_v49 = vld [vmem:[%s5963_s3 + $0x34] sm:$0xf0]  ;;  %v3411_v50 = vld [vmem:[%s5963_s3 + $0xb0] sm:$0xf]  ;;  %v3424_v51 = vor.u32 %v3653_v43, %v3421_v44  ;;  %v3635_v53 = vld [vmem:[%s5963_s3 + $0x34] sm:$0xf] }
 0x189   : > { %1825 = vmatpush.bf16.msra.mxu1 %v3428_v34  ;;  %1874 = vmatpush.bf16.msra.mxu2 %v3368_v35  ;;  %v3652_v52 = vld [vmem:[%s5963_s3 + $0xb4] sm:$0xf0]  ;;  %v3349_v54 = vld [vmem:[%s5963_s3 + $0x38] sm:$0xf0]  ;;  %v3651_v55 = vld [vmem:[%s5963_s3 + $0xb4] sm:$0xf]  ;;  %v3348_v57 = vor.u32 %v3636_v49, %v3347_v48 }
 0x18a   : > { %1923 = vmatpush.bf16.msra.mxu3 %v3432_v39  ;;  %v3413_v56 = vld [vmem:[%s5963_s3 + $0xb8] sm:$0xf0]  ;;  %v3339_v58 = vld [vmem:[%s5963_s3 + $0x20] sm:$0xf]  ;;  %v3412_v59 = vor.u32 %v3652_v52, %v3411_v50  ;;  %v3352_v60 = vor.u32 %v3635_v53, %v3349_v54  ;;  %v3634_v61 = vld [vmem:[%s5963_s3 + $0x24] sm:$0xf0] }
 0x18b   : > { %v3403_v62 = vld [vmem:[%s5963_s3 + $0xa0] sm:$0xf]  ;;  %v3650_v63 = vld [vmem:[%s5963_s3 + $0xa4] sm:$0xf0]  ;;  %v3416_v0 = vor.u32 %v3651_v55, %v3413_v56  ;;  %v3633_v1 = vld [vmem:[%s5963_s3 + $0x24] sm:$0xf]  ;;  %v3340_v7 = vor.u32 %v3634_v61, %v3339_v58 }
 0x18c   : > { %1777 = vmatpush.bf16.msra.mxu0 %v3356_v45  ;;  %v3341_v2 = vld [vmem:[%s5963_s3 + $0x28] sm:$0xf0]  ;;  %v3649_v3 = vld [vmem:[%s5963_s3 + $0xa4] sm:$0xf]  ;;  %v3331_v5 = vld [vmem:[%s5963_s3 + $0x10] sm:$0xf]  ;;  %v3404_v11 = vor.u32 %v3650_v63, %v3403_v62 }
 0x18d   : > { %1826 = vmatpush.bf16.msra.mxu1 %v3420_v46  ;;  %1875 = vmatpush.bf16.msra.mxu2 %v3360_v47  ;;  %v3405_v4 = vld [vmem:[%s5963_s3 + $0xa8] sm:$0xf0]  ;;  %v3632_v6 = vld [vmem:[%s5963_s3 + $0x14] sm:$0xf0]  ;;  %v3395_v8 = vld [vmem:[%s5963_s3 + $0x90] sm:$0xf]  ;;  %v3344_v12 = vor.u32 %v3633_v1, %v3341_v2 }
 0x18e   : > { %1924 = vmatpush.bf16.msra.mxu3 %v3424_v51  ;;  %v3648_v9 = vld [vmem:[%s5963_s3 + $0x94] sm:$0xf0]  ;;  %v3631_v10 = vld [vmem:[%s5963_s3 + $0x14] sm:$0xf]  ;;  %v3333_v13 = vld [vmem:[%s5963_s3 + $0x18] sm:$0xf0]  ;;  %v3408_v16 = vor.u32 %v3649_v3, %v3405_v4  ;;  %v3332_v25 = vor.u32 %v3632_v6, %v3331_v5 }
 0x18f   : > { %v3647_v14 = vld [vmem:[%s5963_s3 + $0x94] sm:$0xf]  ;;  %v3397_v15 = vld [vmem:[%s5963_s3 + $0x98] sm:$0xf0]  ;;  %v3323_v17 = vld [vmem:[%s5963_s3] sm:$0xf]  ;;  %v3396_v31 = vor.u32 %v3648_v9, %v3395_v8  ;;  %v3336_v32 = vor.u32 %v3631_v10, %v3333_v13 }
 0x190   : > { %1778 = vmatpush.bf16.msra.mxu0 %v3348_v57  ;;  %v3630_v18 = vld [vmem:[%s5963_s3 + $0x4] sm:$0xf0]  ;;  %v3387_v19 = vld [vmem:[%s5963_s3 + $0x80] sm:$0xf]  ;;  %v1042_v20 = vld [vmem:[#allocation2 + $0xb0] sm:$0xff]  ;;  %v3400_v33 = vor.u32 %v3647_v14, %v3397_v15 }
 0x191   : > { %1827 = vmatpush.bf16.msra.mxu1 %v3412_v59  ;;  %1876 = vmatpush.bf16.msra.mxu2 %v3352_v60  ;;  %v1044_v21 = vld [vmem:[#allocation2 + $0xd8] sm:$0xff]  ;;  %v1074_v22 = vld [vmem:[%s5962_s2] sm:$0x3]  ;;  %v3646_v26 = vld [vmem:[%s5963_s3 + $0x84] sm:$0xf0]  ;;  %v3324_v44 = vor.u32 %v3630_v18, %v3323_v17 }
 0x192   : > { %1925 = vmatpush.bf16.msra.mxu3 %v3416_v0  ;;  %v1043_v23 = vld [vmem:[#allocation2] sm:$0xff]  ;;  %v1045_v24 = vld [vmem:[#allocation2 + $0x18] sm:$0xff]  ;;  %v4544_v27 = vperm.slane %v1074_v22, 0  ;;  %v4546_v28 = vperm.slane %v1074_v22, 1  ;;  %v1046_v29 = vld [vmem:[#allocation2 + $0x50] sm:$0xff]  ;;  %v3388_v45 = vor.u32 %v3646_v26, %v3387_v19 }
 0x193   : > { %v1048_v30 = vld [vmem:[#allocation2 + $0x30] sm:$0xff]  ;;  %v3629_v34 = vld [vmem:[%s5963_s3 + $0x4] sm:$0xf]  ;;  %v3325_v35 = vld [vmem:[%s5963_s3 + $0x8] sm:$0xf0] }
 0x194   : > { %1779 = vmatpush.bf16.msra.mxu0 %v3340_v7  ;;  %v1047_v36 = vld [vmem:[#allocation2 + $0x68] sm:$0xff]  ;;  %v3645_v37 = vld [vmem:[%s5963_s3 + $0x84] sm:$0xf]  ;;  %v4561_v39 = vadd.f32 %v4544_v27, %v1042_v20  ;;  %v4564_v40 = vadd.f32 %v4544_v27, %v1044_v21  ;;  %v4567_v41 = vadd.f32 %v4546_v28, %v1043_v23  ;;  %v4570_v42 = vadd.f32 %v4546_v28, %v1045_v24 }
 0x195   : > { %1828 = vmatpush.bf16.msra.mxu1 %v3404_v11  ;;  %1877 = vmatpush.bf16.msra.mxu2 %v3344_v12  ;;  %v3389_v38 = vld [vmem:[%s5963_s3 + $0x88] sm:$0xf0]  ;;  %v4573_v46 = vadd.f32 %v4544_v27, %v1046_v29  ;;  %v4576_v47 = vadd.f32 %v4544_v27, %v1048_v30  ;;  %v3328_v48 = vor.u32 %v3629_v34, %v3325_v35  ;;  %v1050_v56 = vld [vmem:[#allocation2 + $0x80] sm:$0xff]  ;;  %v1053_v11 = vld [vmem:[#allocation2 + $0xb8] sm:$0xff] }
 0x196   : > { %1926 = vmatpush.bf16.msra.mxu3 %v3408_v16  ;;  %v1049_v43 = vld [vmem:[#allocation2 + $0x48] sm:$0xff]  ;;  %v1112_v49 = vmin.f32 %v4561_v39, 20.0  ;;  %v1114_v50 = vmin.f32 %v4564_v40, 20.0  ;;  %v4581_v51 = vadd.f32 %v4546_v28, %v1047_v36  ;;  %v3392_v52 = vor.u32 %v3645_v37, %v3389_v38 }
 0x197   : > { %v1113_v53 = vmin.f32 %v4567_v41, 20.0  ;;  %v1115_v54 = vmin.f32 %v4570_v42, 20.0  ;;  %v4586_v55 = vadd.f32 %v4546_v28, %v1049_v43  ;;  %v1052_v57 = vld [vmem:[#allocation2 + $0xe8] sm:$0xff]  ;;  %v1116_v60 = vmin.f32 %v4573_v46, 20.0 }
 0x198   : > { %1780 = vmatpush.bf16.msra.mxu0 %v3332_v25  ;;  %v1176_v58 = vmul.f32 1.442695, %v1112_v49  ;;  %v1180_v59 = vmul.f32 1.442695, %v1114_v50  ;;  %v1118_v61 = vmin.f32 %v4576_v47, 20.0  ;;  %v1117_v2 = vmin.f32 %v4581_v51, 20.0 }
 0x199   : > { %1829 = vmatpush.bf16.msra.mxu1 %v3396_v31  ;;  %1878 = vmatpush.bf16.msra.mxu2 %v3336_v32  ;;  %v1178_v62 = vmul.f32 1.442695, %v1113_v53  ;;  %v1182_v63 = vmul.f32 1.442695, %v1115_v54  ;;  %v1184_v0 = vmul.f32 1.442695, %v1116_v60  ;;  %v4593_v5 = vadd.f32 %v4544_v27, %v1050_v56 }
 0x19a   : > { %1927 = vmatpush.bf16.msra.mxu3 %v3400_v33  ;;  %3751 = vpow2.f32 %v1176_v58  ;;  %v1188_v1 = vmul.f32 1.442695, %v1118_v61  ;;  %v1051_v3 = vld [vmem:[#allocation2 + $0x88] sm:$0xff]  ;;  %v1119_v4 = vmin.f32 %v4586_v55, 20.0  ;;  %v4596_v6 = vadd.f32 %v4544_v27, %v1052_v57 }
 0x19b   : > { %3753 = vpow2.f32 %v1180_v59  ;;  %v1186_v7 = vmul.f32 1.442695, %v1117_v2  ;;  %v4599_v8 = vadd.f32 %v4546_v28, %v1051_v3  ;;  %v1120_v10 = vmin.f32 %v4593_v5, 20.0 }
 0x19c   : > { %1781 = vmatpush.bf16.msra.mxu0 %v3324_v44  ;;  %3755 = vpow2.f32 %v1178_v62  ;;  %v1190_v9 = vmul.f32 1.442695, %v1119_v4  ;;  %v1122_v12 = vmin.f32 %v4596_v6, 20.0  ;;  %v4604_v15 = vadd.f32 %v4546_v28, %v1053_v11 }
 0x19d   : > { %1830 = vmatpush.bf16.msra.mxu1 %v3388_v45  ;;  %1879 = vmatpush.bf16.msra.mxu2 %v3328_v48  ;;  %3757 = vpow2.f32 %v1182_v63  ;;  %v1192_v13 = vmul.f32 1.442695, %v1120_v10  ;;  %v1121_v16 = vmin.f32 %v4599_v8, 20.0  ;;  %vm1144_vm0 = vcmp.gt.f32.partialorder %v4561_v39, 20.0 }
 0x19e   : > { %1928 = vmatpush.bf16.msra.mxu3 %v3392_v52  ;;  %3759 = vpow2.f32 %v1184_v0  ;;  %vm1146_vm1 = vcmp.gt.f32.partialorder %v4564_v40, 20.0  ;;  %v4609_v30 = vmul.f32 1.442695, %v1122_v12  ;;  %vm1145_vm3 = vcmp.gt.f32.partialorder %v4567_v41, 20.0 }
 0x19f   : > { %3761 = vpow2.f32 %v1188_v1  ;;  %vm1147_vm5 = vcmp.gt.f32.partialorder %v4570_v42, 20.0  ;;  %vm1148_vm9 = vcmp.gt.f32.partialorder %v4573_v46, 20.0  ;;  %vm1150_vm10 = vcmp.gt.f32.partialorder %v4576_v47, 20.0 }
 0x1a0   : > { %v3752_v14 = vpop.eup %3751  ;;  %3763 = vpow2.f32 %v1186_v7  ;;  %vm1149_vm12 = vcmp.gt.f32.partialorder %v4581_v51, 20.0  ;;  %v1056_v7 = vld [vmem:[#allocation2 + $0x8] sm:$0xff]  ;;  %vm1151_vm15 = vcmp.gt.f32.partialorder %v4586_v55, 20.0 }
 0x1a1   : > { %v3754_v17 = vpop.eup %3753  ;;  %v1240_v18 = vadd.f32 1.0, %v3752_v14  ;;  %v1243_v19 = vmul.f32 -0.5, %v3752_v14  ;;  %v1246_v20 = vand.u32 2147483647, %v3752_v14  ;;  %3765 = vpow2.f32 %v1190_v9 }
 0x1a2   : > { %v3756_v21 = vpop.eup %3755  ;;  %v1258_v22 = vadd.f32 1.0, %v3754_v17  ;;  %v1261_v23 = vmul.f32 -0.5, %v3754_v17  ;;  %v1264_v24 = vand.u32 2147483647, %v3754_v17  ;;  %3767 = vpow2.f32 %v1192_v13 }
 0x1a3   : > { %v3758_v25 = vpop.eup %3757  ;;  %3769 = vlog2.f32 %v1240_v18  ;;  %v1244_v26 = vadd.f32 1.0, %v1243_v19  ;;  %v1249_v29 = vadd.f32 1.0, %v3756_v21  ;;  %vm4611_vm2 = vcmp.lt.f32.partialorder %v1246_v20, 0.0004427343 }
 0x1a4   : > { %v3760_v31 = vpop.eup %3759  ;;  %3771 = vlog2.f32 %v1258_v22  ;;  %v1262_v33 = vadd.f32 1.0, %v1261_v23  ;;  %v1252_v34 = vmul.f32 -0.5, %v3756_v21  ;;  %vm4618_vm4 = vcmp.lt.f32.partialorder %v1264_v24, 0.0004427343 }
 0x1a5   : > { %v4616_v35 = vpop.eup %3761  ;;  %3773 = vlog2.f32 %v1249_v29  ;;  %v1255_v37 = vand.u32 2147483647, %v3756_v21  ;;  %v1267_v38 = vadd.f32 1.0, %v3758_v25  ;;  %v1245_v44 = vmul.f32 %v3752_v14, %v1244_v26 }
 0x1a6   : > { %v4622_v43 = vpop.eup %3763  ;;  %v1253_v45 = vadd.f32 1.0, %v1252_v34  ;;  %v1270_v48 = vmul.f32 -0.5, %v3758_v25  ;;  %v1273_v49 = vand.u32 2147483647, %v3758_v25  ;;  %v1263_v52 = vmul.f32 %v3754_v17, %v1262_v33 }
 0x1a7   : > { %v4625_v50 = vpop.eup %3765  ;;  %3775 = vlog2.f32 %v1267_v38  ;;  %v1276_v53 = vadd.f32 1.0, %v3760_v31  ;;  %v1279_v54 = vmul.f32 -0.5, %v3760_v31  ;;  %vm4629_vm6 = vcmp.lt.f32.partialorder %v1255_v37, 0.0004427343 }
 0x1a8   : > { %v4627_v56 = vpop.eup %3767  ;;  %v1254_v57 = vmul.f32 %v3756_v21, %v1253_v45  ;;  %v1271_v59 = vadd.f32 1.0, %v1270_v48  ;;  %v1282_v60 = vand.u32 2147483647, %v3760_v31  ;;  %v1294_v63 = vadd.f32 1.0, %v4616_v35 }
 0x1a9   : > { %v3770_v61 = vpop.eup %3769  ;;  %3777 = vlog2.f32 %v1276_v53  ;;  %v1280_v62 = vadd.f32 1.0, %v1279_v54  ;;  %v1297_v0 = vmul.f32 -0.5, %v4616_v35  ;;  %vm4635_vm7 = vcmp.lt.f32.partialorder %v1273_v49, 0.0004427343 }
 0x1aa   : > { %v3772_v1 = vpop.eup %3771  ;;  %v1242_v2 = vmul.f32 0.6931472, %v3770_v61  ;;  %v1272_v3 = vmul.f32 %v3758_v25, %v1271_v59  ;;  %vm4639_vm8 = vcmp.lt.f32.partialorder %v1282_v60, 0.0004427343  ;;  %3779 = vlog2.f32 %v1294_v63  ;;  %v1054_v63 = vld [vmem:[#allocation2 + $0x60] sm:$0xff]  ;;  %v1058_v59 = vld [vmem:[#allocation2 + $0x38] sm:$0xff] }
 0x1ab   : > { %v3774_v9 = vpop.eup %3773  ;;  %v1260_v10 = vmul.f32 0.6931472, %v3772_v1  ;;  %v1298_v11 = vadd.f32 1.0, %v1297_v0  ;;  %v1300_v12 = vand.u32 2147483647, %v4616_v35  ;;  %v1281_v17 = vmul.f32 %v3760_v31, %v1280_v62 }
 0x1ac   : > { %v1248_v13 = vsel %vm4611_vm2, %v1245_v44, %v1242_v2  ;;  %v1251_v14 = vmul.f32 0.6931472, %v3774_v9  ;;  %v1285_v18 = vadd.f32 1.0, %v4622_v43  ;;  %v1288_v23 = vmul.f32 -0.5, %v4622_v43  ;;  %v3676_v62 = vld [vmem:[%s5965_s5 + $0x74] sm:$0xf0] }
 0x1ad   : > { %v3776_v19 = vpop.eup %3775  ;;  %v1266_v20 = vsel %vm4618_vm4, %v1263_v52, %v1260_v10  ;;  %v1528_v21 = vsel %vm1144_vm0, %v4561_v39, %v1248_v13  ;;  %v1299_v22 = vmul.f32 %v4616_v35, %v1298_v11  ;;  %v1291_v33 = vand.u32 2147483647, %v4622_v43  ;;  %v3571_v1 = vld [vmem:[%s5965_s5 + $0xf0] sm:$0xf]  ;;  %v3692_v2 = vld [vmem:[%s5965_s5 + $0xf4] sm:$0xf0] }
 0x1ae   : > { %v1530_v24 = vsel %vm1146_vm1, %v4564_v40, %v1266_v20  ;;  %v1257_v25 = vsel %vm4629_vm6, %v1254_v57, %v1251_v14  ;;  %v1269_v26 = vmul.f32 0.6931472, %v3776_v19  ;;  %3781 = vlog2.f32 %v1285_v18 }
 0x1af   : > { %v3778_v29 = vpop.eup %3777  ;;  %v1560_v31 = vpack.c.bf16 %v1530_v24, %v1528_v21  ;;  %v1529_v32 = vsel %vm1145_vm3, %v4567_v41, %v1257_v25  ;;  %v1289_v39 = vadd.f32 1.0, %v1288_v23  ;;  %v1303_v40 = vadd.f32 1.0, %v4625_v50  ;;  %v1057_v21 = vld [vmem:[#allocation2 + $0x78] sm:$0xff] }
 0x1b0   : > { %v1275_v34 = vsel %vm4635_vm7, %v1272_v3, %v1269_v26  ;;  %v1278_v35 = vmul.f32 0.6931472, %v3778_v29  ;;  %v1306_v36 = vmul.f32 -0.5, %v4625_v50  ;;  %v3780_v37 = vpop.eup %3779  ;;  %vm4672_vm11 = vcmp.lt.f32.partialorder %v1300_v12, 0.0004427343 }
 0x1b1   : > { %1782 = vmatmul.bf16.vlgmr.msra.gmra.mxu0 %v1560_v31  ;;  %v1531_v38 = vsel %vm1147_vm5, %v4570_v42, %v1275_v34  ;;  %1880 = vmatmul.bf16.vlgmr.msra.gmra.mxu2 %v1560_v31  ;;  %v1123_v44 = vmin.f32 %v4604_v15, 20.0  ;;  %v1296_v48 = vmul.f32 0.6931472, %v3780_v37  ;;  %3783 = vlog2.f32 %v1303_v40 }
 0x1b2   : > { %v1561_v45 = vpack.c.bf16 %v1531_v38, %v1529_v32  ;;  %v1309_v49 = vand.u32 2147483647, %v4625_v50  ;;  %v1284_v52 = vsel %vm4639_vm8, %v1281_v17, %v1278_v35  ;;  %v1290_v53 = vmul.f32 %v4622_v43, %v1289_v39  ;;  %v3507_v43 = vld [vmem:[%s5965_s5 + $0x70] sm:$0xf] }
 0x1b3   : > { %v1307_v42 = vadd.f32 1.0, %v1306_v36  ;;  %v1194_v54 = vmul.f32 1.442695, %v1121_v16  ;;  %v1302_v58 = vsel %vm4672_vm11, %v1299_v22, %v1296_v48  ;;  %vm4686_vm13 = vcmp.lt.f32.partialorder %v1291_v33, 0.0004427343 }
 0x1b4   : > { %v3782_v57 = vpop.eup %3781  ;;  %1831 = vmatmul.bf16.vlgmr.msra.gmra.mxu1 %v1561_v45  ;;  %1929 = vmatmul.bf16.vlgmr.msra.gmra.mxu3 %v1561_v45  ;;  %3785 = vpow2.f32 %v4609_v30  ;;  %v1312_v60 = vadd.f32 1.0, %v4627_v56  ;;  %v1315_v16 = vmul.f32 -0.5, %v4627_v56  ;;  %v1532_v0 = vsel %vm1148_vm9, %v4573_v46, %v1284_v52 }
 0x1b5   : > { %v1287_v61 = vmul.f32 0.6931472, %v3782_v57  ;;  %vm4702_vm14 = vcmp.lt.f32.partialorder %v1309_v49, 0.0004427343  ;;  %v1534_v3 = vsel %vm1150_vm10, %v4576_v47, %v1302_v58  ;;  %v1308_v4 = vmul.f32 %v4625_v50, %v1307_v42  ;;  %v1055_v47 = vld [vmem:[#allocation2 + $0xf0] sm:$0xff] }
 0x1b6   : > { %3787 = vlog2.f32 %v1312_v60  ;;  %v1318_v46 = vand.u32 2147483647, %v4627_v56  ;;  %v1316_v11 = vadd.f32 1.0, %v1315_v16  ;;  %v1198_v12 = vmul.f32 1.442695, %v1123_v44 }
 0x1b7   : > { %3789 = vpow2.f32 %v1194_v54  ;;  %v3784_v9 = vpop.eup %3783  ;;  %v1293_v10 = vsel %vm4686_vm13, %v1290_v53, %v1287_v61  ;;  %v3508_v13 = vor.u32 %v3676_v62, %v3507_v43  ;;  %v3572_v17 = vor.u32 %v3692_v2, %v3571_v1  ;;  %v1060_v62 = vld [vmem:[#allocation2 + $0x40] sm:$0xff] }
 0x1b8   : > { %v1305_v14 = vmul.f32 0.6931472, %v3784_v9  ;;  %v4721_v18 = vadd.f32 %v4544_v27, %v1054_v63  ;;  %v1562_v19 = vpack.c.bf16 %v1534_v3, %v1532_v0  ;;  %vm1152_vm0 = vcmp.gt.f32.partialorder %v4593_v5, 20.0 }
 0x1b9   : > { %3791 = vpow2.f32 %v1198_v12  ;;  %2632 = vmatpush.bf16.msrb.mxu0 %v3508_v13  ;;  %v4725_v20 = vadd.f32 %v4544_v27, %v1056_v7  ;;  %v1533_v23 = vsel %vm1149_vm12, %v4581_v51, %v1293_v10  ;;  %2681 = vmatpush.bf16.msrb.mxu1 %v3572_v17  ;;  %v1317_v29 = vmul.f32 %v4627_v56, %v1316_v11  ;;  %v3690_v11 = vld [vmem:[%s5965_s5 + $0xe4] sm:$0xf0] }
 0x1ba   : > { %v3786_v50 = vpop.eup %3785  ;;  %v1311_v22 = vsel %vm4702_vm14, %v1308_v4, %v1305_v14  ;;  %vm4733_vm1 = vcmp.lt.f32.partialorder %v1318_v46, 0.0004427343  ;;  %v1124_v32 = vmin.f32 %v4721_v18, 20.0  ;;  %v4739_v39 = vadd.f32 %v4546_v28, %v1055_v47  ;;  %v3499_v4 = vld [vmem:[%s5965_s5 + $0x60] sm:$0xf] }
 0x1bb   : > { %v1330_v24 = vadd.f32 1.0, %v3786_v50  ;;  %v1333_v25 = vmul.f32 -0.5, %v3786_v50  ;;  %v1535_v51 = vsel %vm1151_vm15, %v4586_v55, %v1311_v22  ;;  %v4745_v35 = vadd.f32 %v4546_v28, %v1057_v21  ;;  %v3674_v46 = vld [vmem:[%s5965_s5 + $0x64] sm:$0xf0] }
 0x1bc   : > { %v3788_v26 = vpop.eup %3787  ;;  %v1126_v37 = vmin.f32 %v4725_v20, 20.0  ;;  %v1336_v38 = vand.u32 2147483647, %v3786_v50  ;;  %v1200_v44 = vmul.f32 1.442695, %v1124_v32  ;;  %v1563_v48 = vpack.c.bf16 %v1535_v51, %v1533_v23  ;;  %v1059_v23 = vld [vmem:[#allocation2 + $0x58] sm:$0xff] }
 0x1bd   : > { %v3790_v33 = vpop.eup %3789  ;;  %v1314_v34 = vmul.f32 0.6931472, %v3788_v26  ;;  %3793 = vlog2.f32 %v1330_v24  ;;  %v1334_v56 = vadd.f32 1.0, %v1333_v25  ;;  %vm1154_vm2 = vcmp.gt.f32.partialorder %v4596_v6, 20.0  ;;  %v3688_v26 = vld [vmem:[%s5965_s5 + $0xd4] sm:$0xf0] }
 0x1be   : > { %v1321_v40 = vadd.f32 1.0, %v3790_v33  ;;  %v1324_v36 = vmul.f32 -0.5, %v3790_v33  ;;  %v1327_v41 = vand.u32 2147483647, %v3790_v33  ;;  %v1204_v54 = vmul.f32 1.442695, %v1126_v37 }
 0x1bf   : > { %v3792_v45 = vpop.eup %3791  ;;  %v1320_v55 = vsel %vm4733_vm1, %v1317_v29, %v1314_v34  ;;  %v1335_v42 = vmul.f32 %v3786_v50, %v1334_v56  ;;  %v1125_v57 = vmin.f32 %v4739_v39, 20.0  ;;  %v1127_v58 = vmin.f32 %v4745_v35, 20.0 }
 0x1c0   : > { %3795 = vlog2.f32 %v1321_v40  ;;  %v1325_v49 = vadd.f32 1.0, %v1324_v36  ;;  %v1339_v52 = vadd.f32 1.0, %v3792_v45  ;;  %v1342_v53 = vmul.f32 -0.5, %v3792_v45 }
 0x1c1   : > { %1787 = vmatmul.bf16.gmra.mxu0 %v1562_v19  ;;  %1885 = vmatmul.bf16.gmra.mxu2 %v1562_v19  ;;  %3797 = vpow2.f32 %v1200_v44  ;;  %vm4753_vm3 = vcmp.lt.f32.partialorder %v1336_v38, 0.0004427343  ;;  %vm4757_vm4 = vcmp.lt.f32.partialorder %v1327_v41, 0.0004427343  ;;  %v1345_v0 = vand.u32 2147483647, %v3792_v45 }
 0x1c2   : > { %3799 = vlog2.f32 %v1339_v52  ;;  %v1343_v16 = vadd.f32 1.0, %v1342_v53  ;;  %v1202_v30 = vmul.f32 1.442695, %v1125_v57  ;;  %v1536_v1 = vsel %vm1152_vm0, %v4593_v5, %v1320_v55  ;;  %v3563_v5 = vld [vmem:[%s5965_s5 + $0xe0] sm:$0xf] }
 0x1c3   : > { %v3794_v60 = vpop.eup %3793  ;;  %3801 = vpow2.f32 %v1204_v54  ;;  %v1326_v2 = vmul.f32 %v3790_v33, %v1325_v49  ;;  %v1206_v3 = vmul.f32 1.442695, %v1127_v58  ;;  %v3500_v10 = vor.u32 %v3674_v46, %v3499_v4  ;;  %v1061_v49 = vld [vmem:[#allocation2 + $0xc8] sm:$0xff] }
 0x1c4   : > { %1836 = vmatmul.bf16.gmra.mxu1 %v1563_v48  ;;  %1934 = vmatmul.bf16.gmra.mxu3 %v1563_v48  ;;  %v1332_v63 = vmul.f32 0.6931472, %v3794_v60  ;;  %3803 = vpow2.f32 %v1202_v30  ;;  %v4779_v12 = vadd.f32 %v4544_v27, %v1058_v59  ;;  %v1344_v17 = vmul.f32 %v3792_v45, %v1343_v16 }
 0x1c5   : > { %3805 = vpow2.f32 %v1206_v3  ;;  %v3564_v47 = vor.u32 %v3690_v11, %v3563_v5  ;;  %2633 = vmatpush.bf16.msrb.mxu0 %v3500_v10  ;;  %v4785_v22 = vadd.f32 %v4544_v27, %v1060_v62  ;;  %vm1153_vm5 = vcmp.gt.f32.partialorder %v4599_v8, 20.0  ;;  %v3491_v11 = vld [vmem:[%s5965_s5 + $0x50] sm:$0xf] }
 0x1c6   : > { %v3796_v7 = vpop.eup %3795  ;;  %v1338_v9 = vsel %vm4753_vm3, %v1335_v42, %v1332_v63  ;;  %vm4790_vm6 = vcmp.lt.f32.partialorder %v1345_v0, 0.0004427343  ;;  %vm1155_vm7 = vcmp.gt.f32.partialorder %v4604_v15, 20.0  ;;  %v1128_v32 = vmin.f32 %v4779_v12, 20.0 }
 0x1c7   : > { %v3798_v13 = vpop.eup %3797  ;;  %v1323_v14 = vmul.f32 0.6931472, %v3796_v7  ;;  %v1538_v50 = vsel %vm1154_vm2, %v4596_v6, %v1338_v9  ;;  %2682 = vmatpush.bf16.msrb.mxu1 %v3564_v47  ;;  %v4797_v56 = vadd.f32 %v4546_v28, %v1059_v23  ;;  %vm1156_vm8 = vcmp.gt.f32.partialorder %v4721_v18, 20.0  ;;  %v1062_v7 = vld [vmem:[#allocation2 + $0xe0] sm:$0xff]  ;;  %v3672_v47 = vld [vmem:[%s5965_s5 + $0x54] sm:$0xf0] }
 0x1c8   : > { %v1348_v19 = vadd.f32 1.0, %v3798_v13  ;;  %v1351_v21 = vmul.f32 -0.5, %v3798_v13  ;;  %v3800_v24 = vpop.eup %3799  ;;  %v1354_v29 = vand.u32 2147483647, %v3798_v13  ;;  %v1564_v33 = vpack.c.bf16 %v1538_v50, %v1536_v1  ;;  %v3555_v50 = vld [vmem:[%s5965_s5 + $0xd0] sm:$0xf] }
 0x1c9   : > { %v1329_v25 = vsel %vm4757_vm4, %v1326_v2, %v1323_v14  ;;  %v3802_v6 = vpop.eup %3801  ;;  %v1341_v31 = vmul.f32 0.6931472, %v3800_v24  ;;  %v1130_v41 = vmin.f32 %v4785_v22, 20.0  ;;  %vm1158_vm10 = vcmp.gt.f32.partialorder %v4725_v20, 20.0 }
 0x1ca   : > { %3807 = vlog2.f32 %v1348_v19  ;;  %v1366_v51 = vadd.f32 1.0, %v3802_v6  ;;  %v1369_v34 = vmul.f32 -0.5, %v3802_v6  ;;  %v3804_v40 = vpop.eup %3803  ;;  %v1537_v37 = vsel %vm1153_vm5, %v4599_v8, %v1329_v25 }
 0x1cb   : > { %v1347_v36 = vsel %vm4790_vm6, %v1344_v17, %v1341_v31  ;;  %v1352_v38 = vadd.f32 1.0, %v1351_v21  ;;  %v3806_v44 = vpop.eup %3805  ;;  %vm4807_vm9 = vcmp.lt.f32.partialorder %v1354_v29, 0.0004427343  ;;  %v1372_v52 = vand.u32 2147483647, %v3802_v6 }
 0x1cc   : > { %v1539_v45 = vsel %vm1155_vm7, %v4604_v15, %v1347_v36  ;;  %3809 = vlog2.f32 %v1366_v51  ;;  %v1370_v55 = vadd.f32 1.0, %v1369_v34  ;;  %v1357_v53 = vadd.f32 1.0, %v3804_v40 }
 0x1cd   : > { %v1360_v8 = vmul.f32 -0.5, %v3804_v40  ;;  %v1208_v42 = vmul.f32 1.442695, %v1128_v32  ;;  %v1363_v54 = vand.u32 2147483647, %v3804_v40  ;;  %v1375_v57 = vadd.f32 1.0, %v3806_v44 }
 0x1ce   : > { %v1378_v58 = vmul.f32 -0.5, %v3806_v44  ;;  %v1381_v59 = vand.u32 2147483647, %v3806_v44  ;;  %v1565_v43 = vpack.c.bf16 %v1539_v45, %v1537_v37  ;;  %v1353_v15 = vmul.f32 %v3798_v13, %v1352_v38  ;;  %v1064_v13 = vld [vmem:[#allocation2 + $0x70] sm:$0xff] }
 0x1cf   : > { %vm1157_vm11 = vcmp.gt.f32.partialorder %v4739_v39, 20.0  ;;  %vm1159_vm12 = vcmp.gt.f32.partialorder %v4745_v35, 20.0  ;;  %3811 = vlog2.f32 %v1357_v53  ;;  %v1212_v61 = vmul.f32 1.442695, %v1130_v41 }
 0x1d0   : > { %v3808_v60 = vpop.eup %3807  ;;  %v1371_v62 = vmul.f32 %v3802_v6, %v1370_v55  ;;  %v1361_v63 = vadd.f32 1.0, %v1360_v8  ;;  %3813 = vlog2.f32 %v1375_v57  ;;  %v1379_v0 = vadd.f32 1.0, %v1378_v58 }
 0x1d1   : > { %1792 = vmatmul.bf16.gmra.mxu0 %v1564_v33  ;;  %1890 = vmatmul.bf16.gmra.mxu2 %v1564_v33  ;;  %v1350_v16 = vmul.f32 0.6931472, %v3808_v60  ;;  %3815 = vpow2.f32 %v1208_v42  ;;  %v4815_v30 = vadd.f32 %v4546_v28, %v1061_v49  ;;  %v1129_v1 = vmin.f32 %v4797_v56, 20.0 }
 0x1d2   : > { %v3810_v2 = vpop.eup %3809  ;;  %vm4818_vm13 = vcmp.lt.f32.partialorder %v1372_v52, 0.0004427343  ;;  %vm4822_vm14 = vcmp.lt.f32.partialorder %v1363_v54, 0.0004427343  ;;  %vm4826_vm15 = vcmp.lt.f32.partialorder %v1381_v59, 0.0004427343  ;;  %3817 = vpow2.f32 %v1212_v61 }
 0x1d3   : > { %v1356_v9 = vsel %vm4807_vm9, %v1353_v15, %v1350_v16  ;;  %v1368_v10 = vmul.f32 0.6931472, %v3810_v2  ;;  %v1131_v5 = vmin.f32 %v4815_v30, 20.0  ;;  %v1362_v14 = vmul.f32 %v3804_v40, %v1361_v63  ;;  %v1065_v52 = vld [vmem:[#allocation2 + $0xc0] sm:$0xff] }
 0x1d4   : > { %1841 = vmatmul.bf16.gmra.mxu1 %v1565_v43  ;;  %1939 = vmatmul.bf16.gmra.mxu3 %v1565_v43  ;;  %v1210_v17 = vmul.f32 1.442695, %v1129_v1  ;;  %v1380_v23 = vmul.f32 %v3806_v44, %v1379_v0  ;;  %v3492_v25 = vor.u32 %v3672_v47, %v3491_v11  ;;  %v1540_v6 = vsel %vm1156_vm8, %v4721_v18, %v1356_v9  ;;  %v1063_v44 = vld [vmem:[#allocation2 + $0x90] sm:$0xff] }
 0x1d5   : > { %v3812_v19 = vpop.eup %3811  ;;  %v1374_v21 = vsel %vm4818_vm13, %v1371_v62, %v1368_v10  ;;  %v1214_v24 = vmul.f32 1.442695, %v1131_v5  ;;  %v3556_v32 = vor.u32 %v3688_v26, %v3555_v50  ;;  %v4851_v34 = vadd.f32 %v4544_v27, %v1062_v7 }
 0x1d6   : > { %v3814_v29 = vpop.eup %3813  ;;  %v1359_v31 = vmul.f32 0.6931472, %v3812_v19  ;;  %3819 = vpow2.f32 %v1210_v17  ;;  %2634 = vmatpush.bf16.msrb.mxu0 %v3492_v25  ;;  %v4854_v40 = vadd.f32 %v4544_v27, %v1064_v13  ;;  %v1542_v37 = vsel %vm1158_vm10, %v4725_v20, %v1374_v21  ;;  %v1066_v19 = vld [vmem:[#allocation2 + $0xa8] sm:$0xff]  ;;  %v1068_v21 = vld [vmem:[#allocation2 + $0x10] sm:$0xff]  ;;  %v3483_v25 = vld [vmem:[%s5965_s5 + $0x40] sm:$0xf] }
 0x1d7   : > { %v3816_v33 = vpop.eup %3815  ;;  %v1377_v51 = vmul.f32 0.6931472, %v3814_v29  ;;  %3821 = vpow2.f32 %v1214_v24  ;;  %2683 = vmatpush.bf16.msrb.mxu1 %v3556_v32  ;;  %v1132_v54 = vmin.f32 %v4851_v34, 20.0  ;;  %v4871_v57 = vadd.f32 %v4546_v28, %v1063_v44  ;;  %v3670_v32 = vld [vmem:[%s5965_s5 + $0x44] sm:$0xf0] }
 0x1d8   : > { %v3818_v36 = vpop.eup %3817  ;;  %v1365_v18 = vsel %vm4822_vm14, %v1362_v14, %v1359_v31  ;;  %v1384_v38 = vadd.f32 1.0, %v3816_v33  ;;  %v1387_v41 = vmul.f32 -0.5, %v3816_v33  ;;  %v1390_v48 = vand.u32 2147483647, %v3816_v33 }
 0x1d9   : > { %v1383_v45 = vsel %vm4826_vm15, %v1380_v23, %v1377_v51  ;;  %v1402_v55 = vadd.f32 1.0, %v3818_v36  ;;  %v1405_v49 = vmul.f32 -0.5, %v3818_v36  ;;  %v1541_v53 = vsel %vm1157_vm11, %v4739_v39, %v1365_v18 }
 0x1da   : > { %v1543_v20 = vsel %vm1159_vm12, %v4745_v35, %v1383_v45  ;;  %3823 = vlog2.f32 %v1384_v38  ;;  %v1388_v8 = vadd.f32 1.0, %v1387_v41  ;;  %v1566_v59 = vpack.c.bf16 %v1542_v37, %v1540_v6  ;;  %v3686_v38 = vld [vmem:[%s5965_s5 + $0xc4] sm:$0xf0] }
 0x1db   : > { %3825 = vlog2.f32 %v1402_v55  ;;  %v1406_v42 = vadd.f32 1.0, %v1405_v49  ;;  %vm1160_vm0 = vcmp.gt.f32.partialorder %v4779_v12, 20.0  ;;  %vm1162_vm1 = vcmp.gt.f32.partialorder %v4785_v22, 20.0 }
 0x1dc   : > { %v3820_v58 = vpop.eup %3819  ;;  %v1408_v39 = vand.u32 2147483647, %v3818_v36  ;;  %v1134_v60 = vmin.f32 %v4854_v40, 20.0  ;;  %v4877_v35 = vadd.f32 %v4546_v28, %v1065_v52  ;;  %v1567_v15 = vpack.c.bf16 %v1543_v20, %v1541_v53 }
 0x1dd   : > { %v3822_v43 = vpop.eup %3821  ;;  %vm4879_vm2 = vcmp.lt.f32.partialorder %v1390_v48, 0.0004427343  ;;  %v1393_v16 = vadd.f32 1.0, %v3820_v58  ;;  %v1396_v62 = vmul.f32 -0.5, %v3820_v58  ;;  %v1389_v63 = vmul.f32 %v3816_v33, %v1388_v8  ;;  %v3547_v33 = vld [vmem:[%s5965_s5 + $0xc0] sm:$0xf] }
 0x1de   : > { %v1407_v0 = vmul.f32 %v3818_v36, %v1406_v42  ;;  %v1411_v1 = vadd.f32 1.0, %v3822_v43  ;;  %v1414_v2 = vmul.f32 -0.5, %v3822_v43  ;;  %v1399_v3 = vand.u32 2147483647, %v3820_v58 }
 0x1df   : > { %3827 = vlog2.f32 %v1393_v16  ;;  %v1216_v4 = vmul.f32 1.442695, %v1132_v54  ;;  %v1220_v46 = vmul.f32 1.442695, %v1134_v60  ;;  %vm4883_vm3 = vcmp.lt.f32.partialorder %v1408_v39, 0.0004427343 }
 0x1e0   : > { %v3824_v7 = vpop.eup %3823  ;;  %v1397_v10 = vadd.f32 1.0, %v1396_v62  ;;  %3829 = vlog2.f32 %v1411_v1  ;;  %v1417_v5 = vand.u32 2147483647, %v3822_v43  ;;  %v1415_v14 = vadd.f32 1.0, %v1414_v2 }
 0x1e1   : > { %1797 = vmatmul.bf16.gmra.mxu0 %v1566_v59  ;;  %1895 = vmatmul.bf16.gmra.mxu2 %v1566_v59  ;;  %v3826_v11 = vpop.eup %3825  ;;  %v1386_v13 = vmul.f32 0.6931472, %v3824_v7  ;;  %3831 = vpow2.f32 %v1216_v4  ;;  %v1133_v17 = vmin.f32 %v4871_v57, 20.0  ;;  %vm1161_vm4 = vcmp.gt.f32.partialorder %v4797_v56, 20.0 }
 0x1e2   : > { %v1404_v47 = vmul.f32 0.6931472, %v3826_v11  ;;  %3833 = vpow2.f32 %v1220_v46  ;;  %v1135_v50 = vmin.f32 %v4877_v35, 20.0  ;;  %vm4890_vm5 = vcmp.lt.f32.partialorder %v1399_v3, 0.0004427343  ;;  %v1069_v11 = vld [vmem:[#allocation2 + $0x28] sm:$0xff] }
 0x1e3   : > { %v1218_v24 = vmul.f32 1.442695, %v1133_v17  ;;  %v1392_v26 = vsel %vm4879_vm2, %v1389_v63, %v1386_v13  ;;  %v1398_v6 = vmul.f32 %v3820_v58, %v1397_v10  ;;  %v1416_v36 = vmul.f32 %v3822_v43, %v1415_v14  ;;  %v1067_v10 = vld [vmem:[#allocation2 + $0xd0] sm:$0xff] }
 0x1e4   : > { %1846 = vmatmul.bf16.gmra.mxu1 %v1567_v15  ;;  %1944 = vmatmul.bf16.gmra.mxu3 %v1567_v15  ;;  %v1410_v29 = vsel %vm4883_vm3, %v1407_v0, %v1404_v47  ;;  %v1222_v31 = vmul.f32 1.442695, %v1135_v50  ;;  %vm4907_vm6 = vcmp.lt.f32.partialorder %v1417_v5, 0.0004427343  ;;  %v3484_v18 = vor.u32 %v3670_v32, %v3483_v25 }
 0x1e5   : > { %v3828_v51 = vpop.eup %3827  ;;  %3835 = vpow2.f32 %v1218_v24  ;;  %v3548_v45 = vor.u32 %v3686_v38, %v3547_v33  ;;  %v4915_v48 = vadd.f32 %v4544_v27, %v1066_v19  ;;  %v1544_v49 = vsel %vm1160_vm0, %v4779_v12, %v1392_v26  ;;  %v3668_v38 = vld [vmem:[%s5965_s5 + $0x34] sm:$0xf0] }
 0x1e6   : > { %v3830_v41 = vpop.eup %3829  ;;  %v1395_v44 = vmul.f32 0.6931472, %v3828_v51  ;;  %3837 = vpow2.f32 %v1222_v31  ;;  %v1546_v52 = vsel %vm1162_vm1, %v4785_v22, %v1410_v29  ;;  %2635 = vmatpush.bf16.msrb.mxu0 %v3484_v18  ;;  %v4924_v20 = vadd.f32 %v4544_v27, %v1068_v21  ;;  %v3475_v18 = vld [vmem:[%s5965_s5 + $0x30] sm:$0xf] }
 0x1e7   : > { %v3832_v55 = vpop.eup %3831  ;;  %v1413_v53 = vmul.f32 0.6931472, %v3830_v41  ;;  %vm1163_vm7 = vcmp.gt.f32.partialorder %v4815_v30, 20.0  ;;  %2684 = vmatpush.bf16.msrb.mxu1 %v3548_v45  ;;  %v1568_v60 = vpack.c.bf16 %v1546_v52, %v1544_v49  ;;  %v1136_v15 = vmin.f32 %v4915_v48, 20.0  ;;  %v1072_v41 = vld [vmem:[#allocation2 + $0x20] sm:$0xff] }
 0x1e8   : > { %v3834_v8 = vpop.eup %3833  ;;  %v1401_v42 = vsel %vm4890_vm5, %v1398_v6, %v1395_v44  ;;  %v1420_v54 = vadd.f32 1.0, %v3832_v55  ;;  %v1423_v58 = vmul.f32 -0.5, %v3832_v55  ;;  %v1426_v59 = vand.u32 2147483647, %v3832_v55  ;;  %v1070_v6 = vld [vmem:[#allocation2 + $0xa0] sm:$0xff] }
 0x1e9   : > { %v1419_v12 = vsel %vm4907_vm6, %v1416_v36, %v1413_v53  ;;  %v1438_v39 = vadd.f32 1.0, %v3834_v8  ;;  %v1441_v22 = vmul.f32 -0.5, %v3834_v8  ;;  %v1545_v16 = vsel %vm1161_vm4, %v4797_v56, %v1401_v42  ;;  %v3539_v52 = vld [vmem:[%s5965_s5 + $0xb0] sm:$0xf]  ;;  %v3684_v53 = vld [vmem:[%s5965_s5 + $0xb4] sm:$0xf0] }
 0x1ea   : > { %3839 = vlog2.f32 %v1420_v54  ;;  %v1424_v43 = vadd.f32 1.0, %v1423_v58  ;;  %v1547_v62 = vsel %vm1163_vm7, %v4815_v30, %v1419_v12  ;;  %v1138_v63 = vmin.f32 %v4924_v20, 20.0 }
 0x1eb   : > { %v3836_v61 = vpop.eup %3835  ;;  %3841 = vlog2.f32 %v1438_v39  ;;  %v1442_v1 = vadd.f32 1.0, %v1441_v22  ;;  %v1444_v2 = vand.u32 2147483647, %v3834_v8  ;;  %vm1164_vm8 = vcmp.gt.f32.partialorder %v4851_v34, 20.0 }
 0x1ec   : > { %v3838_v0 = vpop.eup %3837  ;;  %v1429_v3 = vadd.f32 1.0, %v3836_v61  ;;  %v1432_v4 = vmul.f32 -0.5, %v3836_v61  ;;  %vm4938_vm9 = vcmp.lt.f32.partialorder %v1426_v59, 0.0004427343  ;;  %v1569_v56 = vpack.c.bf16 %v1547_v62, %v1545_v16 }
 0x1ed   : > { %v1447_v7 = vadd.f32 1.0, %v3838_v0  ;;  %v1450_v9 = vmul.f32 -0.5, %v3838_v0  ;;  %vm1166_vm10 = vcmp.gt.f32.partialorder %v4854_v40, 20.0  ;;  %v1425_v30 = vmul.f32 %v3832_v55, %v1424_v43 }
 0x1ee   : > { %3843 = vlog2.f32 %v1429_v3  ;;  %v1435_v5 = vand.u32 2147483647, %v3836_v61  ;;  %vm1165_vm11 = vcmp.gt.f32.partialorder %v4871_v57, 20.0  ;;  %v1433_v13 = vadd.f32 1.0, %v1432_v4 }
 0x1ef   : > { %3845 = vlog2.f32 %v1447_v7  ;;  %v1451_v14 = vadd.f32 1.0, %v1450_v9  ;;  %v1224_v17 = vmul.f32 1.442695, %v1136_v15  ;;  %v1443_v50 = vmul.f32 %v3834_v8, %v1442_v1 }
 0x1f0   : > { %v3840_v47 = vpop.eup %3839  ;;  %vm4944_vm12 = vcmp.lt.f32.partialorder %v1444_v2, 0.0004427343  ;;  %v1228_v21 = vmul.f32 1.442695, %v1138_v63  ;;  %v4949_v23 = vadd.f32 %v4546_v28, %v1067_v10  ;;  %v1453_v26 = vand.u32 2147483647, %v3838_v0 }
 0x1f1   : > { %1802 = vmatmul.bf16.gmra.mxu0 %v1568_v60  ;;  %1900 = vmatmul.bf16.gmra.mxu2 %v1568_v60  ;;  %v3842_v24 = vpop.eup %3841  ;;  %v1422_v25 = vmul.f32 0.6931472, %v3840_v47  ;;  %3847 = vpow2.f32 %v1224_v17  ;;  %v4952_v29 = vadd.f32 %v4546_v28, %v1069_v11  ;;  %vm4954_vm13 = vcmp.lt.f32.partialorder %v1435_v5, 0.0004427343  ;;  %v1071_v47 = vld [vmem:[#allocation2 + $0xf8] sm:$0xff] }
 0x1f2   : > { %v1440_v31 = vmul.f32 0.6931472, %v3842_v24  ;;  %3849 = vpow2.f32 %v1228_v21  ;;  %v1137_v33 = vmin.f32 %v4949_v23, 20.0  ;;  %v1434_v51 = vmul.f32 %v3836_v61, %v1433_v13  ;;  %v1073_v21 = vld [vmem:[#allocation2 + $0x98] sm:$0xff] }
 0x1f3   : > { %v1452_v36 = vmul.f32 %v3838_v0, %v1451_v14  ;;  %v1139_v37 = vmin.f32 %v4952_v29, 20.0  ;;  %v1428_v45 = vsel %vm4938_vm9, %v1425_v30, %v1422_v25  ;;  %v3476_v49 = vor.u32 %v3668_v38, %v3475_v18 }
 0x1f4   : > { %1851 = vmatmul.bf16.gmra.mxu1 %v1569_v56  ;;  %1949 = vmatmul.bf16.gmra.mxu3 %v1569_v56  ;;  %v3844_v44 = vpop.eup %3843  ;;  %v1226_v55 = vmul.f32 1.442695, %v1137_v33  ;;  %v4975_v8 = vadd.f32 %v4544_v27, %v1070_v6  ;;  %vm4977_vm14 = vcmp.lt.f32.partialorder %v1453_v26, 0.0004427343  ;;  %v3540_v59 = vor.u32 %v3684_v53, %v3539_v52 }
 0x1f5   : > { %v3846_v42 = vpop.eup %3845  ;;  %v1431_v54 = vmul.f32 0.6931472, %v3844_v44  ;;  %v1230_v12 = vmul.f32 1.442695, %v1139_v37  ;;  %v1446_v39 = vsel %vm4944_vm12, %v1443_v50, %v1440_v31  ;;  %vm1167_vm15 = vcmp.gt.f32.partialorder %v4877_v35, 20.0  ;;  %2636 = vmatpush.bf16.msrb.mxu0 %v3476_v49 }
 0x1f6   : > { %v1449_v22 = vmul.f32 0.6931472, %v3846_v42  ;;  %3851 = vpow2.f32 %v1226_v55  ;;  %v1548_v43 = vsel %vm1164_vm8, %v4851_v34, %v1428_v45  ;;  %2685 = vmatpush.bf16.msrb.mxu1 %v3540_v59  ;;  %v4990_v61 = vadd.f32 %v4544_v27, %v1072_v41  ;;  %v3467_v55 = vld [vmem:[%s5965_s5 + $0x20] sm:$0xf] }
 0x1f7   : > { %v3848_v60 = vpop.eup %3847  ;;  %v1437_v15 = vsel %vm4954_vm13, %v1434_v51, %v1431_v54  ;;  %3853 = vpow2.f32 %v1230_v12  ;;  %v1140_v1 = vmin.f32 %v4975_v8, 20.0  ;;  %v1550_v34 = vsel %vm1166_vm10, %v4854_v40, %v1446_v39 }
 0x1f8   : > { %v3850_v16 = vpop.eup %3849  ;;  %v1455_v62 = vsel %vm4977_vm14, %v1452_v36, %v1449_v22  ;;  %v1456_v63 = vadd.f32 1.0, %v3848_v60  ;;  %v1459_v0 = vmul.f32 -0.5, %v3848_v60  ;;  %v1462_v2 = vand.u32 2147483647, %v3848_v60 }
 0x1f9   : > { %v1474_v3 = vadd.f32 1.0, %v3850_v16  ;;  %v1477_v4 = vmul.f32 -0.5, %v3850_v16  ;;  %v1549_v27 = vsel %vm1165_vm11, %v4871_v57, %v1437_v15  ;;  %v1551_v46 = vsel %vm1167_vm15, %v4877_v35, %v1455_v62 }
 0x1fa   : > { %3855 = vlog2.f32 %v1456_v63  ;;  %v1460_v7 = vadd.f32 1.0, %v1459_v0  ;;  %v1480_v10 = vand.u32 2147483647, %v3850_v16  ;;  %v1142_v56 = vmin.f32 %v4990_v61, 20.0 }
 0x1fb   : > { %3857 = vlog2.f32 %v1474_v3  ;;  %v1478_v9 = vadd.f32 1.0, %v1477_v4  ;;  %v1570_v40 = vpack.c.bf16 %v1550_v34, %v1548_v43  ;;  %v1232_v5 = vmul.f32 1.442695, %v1140_v1  ;;  %v3682_v3 = vld [vmem:[%s5965_s5 + $0xa4] sm:$0xf0] }
 0x1fc   : > { %v3852_v30 = vpop.eup %3851  ;;  %v1571_v13 = vpack.c.bf16 %v1551_v46, %v1549_v27  ;;  %vm5005_vm0 = vcmp.lt.f32.partialorder %v1462_v2, 0.0004427343  ;;  %v1461_v35 = vmul.f32 %v3848_v60, %v1460_v7  ;;  %vm5009_vm1 = vcmp.lt.f32.partialorder %v1480_v10, 0.0004427343  ;;  %v3531_v2 = vld [vmem:[%s5965_s5 + $0xa0] sm:$0xf] }
 0x1fd   : > { %v3854_v11 = vpop.eup %3853  ;;  %v1465_v57 = vadd.f32 1.0, %v3852_v30  ;;  %v1468_v17 = vmul.f32 -0.5, %v3852_v30  ;;  %3859 = vpow2.f32 %v1232_v5  ;;  %v1479_v24 = vmul.f32 %v3850_v16, %v1478_v9 }
 0x1fe   : > { %v1483_v50 = vadd.f32 1.0, %v3854_v11  ;;  %v1486_v19 = vmul.f32 -0.5, %v3854_v11  ;;  %v1236_v26 = vmul.f32 1.442695, %v1142_v56  ;;  %v1471_v32 = vand.u32 2147483647, %v3852_v30 }
 0x1ff   : > { %3861 = vlog2.f32 %v1465_v57  ;;  %v1469_v31 = vadd.f32 1.0, %v1468_v17  ;;  %v5014_v33 = vadd.f32 %v4546_v28, %v1071_v47  ;;  %v5017_v18 = vadd.f32 %v4546_v28, %v1073_v21  ;;  %v3666_v28 = vld [vmem:[%s5965_s5 + $0x24] sm:$0xf0] }
 0x200   : > { %v3856_v6 = vpop.eup %3855  ;;  %3863 = vlog2.f32 %v1483_v50  ;;  %v1487_v37 = vadd.f32 1.0, %v1486_v19  ;;  %vm1168_vm2 = vcmp.gt.f32.partialorder %v4915_v48, 20.0  ;;  %v1489_v41 = vand.u32 2147483647, %v3854_v11 }
 0x201   : > { %1807 = vmatmul.bf16.gmra.mxu0 %v1570_v40  ;;  %1905 = vmatmul.bf16.gmra.mxu2 %v1570_v40  ;;  %v3858_v51 = vpop.eup %3857  ;;  %v1458_v36 = vmul.f32 0.6931472, %v3856_v6  ;;  %3865 = vpow2.f32 %v1236_v26  ;;  %v1141_v44 = vmin.f32 %v5014_v33, 20.0  ;;  %vm1170_vm3 = vcmp.gt.f32.partialorder %v4924_v20, 20.0  ;;  %v3461_v6 = vld [vmem:[%s5965_s5 + $0x18] sm:$0xf0] }
 0x202   : > { %v1476_v38 = vmul.f32 0.6931472, %v3858_v51  ;;  %v1143_v45 = vmin.f32 %v5017_v18, 20.0  ;;  %v1470_v52 = vmul.f32 %v3852_v30, %v1469_v31  ;;  %vm5029_vm4 = vcmp.lt.f32.partialorder %v1471_v32, 0.0004427343 }
 0x203   : > { %v3860_v49 = vpop.eup %3859  ;;  %v1234_v42 = vmul.f32 1.442695, %v1141_v44  ;;  %v3468_v54 = vor.u32 %v3666_v28, %v3467_v55  ;;  %v1464_v12 = vsel %vm5005_vm0, %v1461_v35, %v1458_v36  ;;  %v1488_v39 = vmul.f32 %v3854_v11, %v1487_v37  ;;  %v3509_v44 = vld [vmem:[%s5965_s5 + $0x78] sm:$0xf0] }
 0x204   : > { %1856 = vmatmul.bf16.gmra.mxu1 %v1571_v13  ;;  %1954 = vmatmul.bf16.gmra.mxu3 %v1571_v13  ;;  %v1482_v59 = vsel %vm5009_vm1, %v1479_v24, %v1476_v38  ;;  %v1492_v22 = vadd.f32 1.0, %v3860_v49  ;;  %vm5037_vm5 = vcmp.lt.f32.partialorder %v1489_v41, 0.0004427343  ;;  %v1238_v16 = vmul.f32 1.442695, %v1143_v45 }
 0x205   : > { %v3862_v58 = vpop.eup %3861  ;;  %3867 = vpow2.f32 %v1234_v42  ;;  %2637 = vmatpush.bf16.msrb.mxu0 %v3468_v54  ;;  %vm1169_vm6 = vcmp.gt.f32.partialorder %v4949_v23, 20.0  ;;  %vm1171_vm7 = vcmp.gt.f32.partialorder %v4952_v29, 20.0  ;;  %v1552_v0 = vsel %vm1168_vm2, %v4915_v48, %v1464_v12  ;;  %v3675_v41 = vld [vmem:[%s5965_s5 + $0x74] sm:$0xf]  ;;  %v3515_v38 = vld [vmem:[%s5965_s5 + $0x80] sm:$0xf] }
 0x206   : > { %v3864_v60 = vpop.eup %3863  ;;  %v1467_v43 = vmul.f32 0.6931472, %v3862_v58  ;;  %v1554_v1 = vsel %vm1170_vm3, %v4924_v20, %v1482_v59  ;;  %3869 = vlog2.f32 %v1492_v22  ;;  %v1495_v27 = vmul.f32 -0.5, %v3860_v49  ;;  %v3673_v59 = vld [vmem:[%s5965_s5 + $0x64] sm:$0xf] }
 0x207   : > { %v3866_v62 = vpop.eup %3865  ;;  %v1485_v63 = vmul.f32 0.6931472, %v3864_v60  ;;  %3871 = vpow2.f32 %v1238_v16  ;;  %v3532_v46 = vor.u32 %v3682_v3, %v3531_v2  ;;  %v1572_v9 = vpack.c.bf16 %v1554_v1, %v1552_v0  ;;  %v3493_v0 = vld [vmem:[%s5965_s5 + $0x58] sm:$0xf0]  ;;  %v3459_v2 = vld [vmem:[%s5965_s5 + $0x10] sm:$0xf] }
 0x208   : > { %v1510_v34 = vadd.f32 1.0, %v3866_v62  ;;  %v1473_v4 = vsel %vm5029_vm4, %v1470_v52, %v1467_v43  ;;  %v1513_v20 = vmul.f32 -0.5, %v3866_v62  ;;  %v1496_v30 = vadd.f32 1.0, %v1495_v27  ;;  %v3565_v27 = vld [vmem:[%s5965_s5 + $0xe8] sm:$0xf0] }
 0x209   : > { %v1491_v48 = vsel %vm5037_vm5, %v1488_v39, %v1485_v63  ;;  %v1553_v10 = vsel %vm1169_vm6, %v4949_v23, %v1473_v4  ;;  %2686 = vmatpush.bf16.msrb.mxu1 %v3532_v46  ;;  %v1498_v17 = vand.u32 2147483647, %v3860_v49  ;;  %v1516_v47 = vand.u32 2147483647, %v3866_v62  ;;  %v3501_v39 = vld [vmem:[%s5965_s5 + $0x68] sm:$0xf0] }
 0x20a   : > { %3873 = vlog2.f32 %v1510_v34  ;;  %v1555_v56 = vsel %vm1171_vm7, %v4952_v29, %v1491_v48  ;;  %v1514_v13 = vadd.f32 1.0, %v1513_v20  ;;  %v1497_v19 = vmul.f32 %v3860_v49, %v1496_v30  ;;  %v3671_v63 = vld [vmem:[%s5965_s5 + $0x54] sm:$0xf]  ;;  %v3680_v4 = vld [vmem:[%s5965_s5 + $0x94] sm:$0xf0] }
 0x20b   : > { %v3868_v7 = vpop.eup %3867  ;;  %v1573_v57 = vpack.c.bf16 %v1555_v56, %v1553_v10  ;;  %vm5065_vm8 = vcmp.lt.f32.partialorder %v1498_v17, 0.0004427343  ;;  %vm5069_vm9 = vcmp.lt.f32.partialorder %v1516_v47, 0.0004427343  ;;  %vm1172_vm10 = vcmp.gt.f32.partialorder %v4975_v8, 20.0 }
 0x20c   : > { %v1501_v40 = vadd.f32 1.0, %v3868_v7  ;;  %v1504_v5 = vmul.f32 -0.5, %v3868_v7  ;;  %v3870_v11 = vpop.eup %3869  ;;  %v1507_v24 = vand.u32 2147483647, %v3868_v7  ;;  %v1515_v26 = vmul.f32 %v3866_v62, %v1514_v13  ;;  %v3689_v48 = vld [vmem:[%s5965_s5 + $0xe4] sm:$0xf] }
 0x20d   : > { %v3872_v14 = vpop.eup %3871  ;;  %v1494_v29 = vmul.f32 0.6931472, %v3870_v11  ;;  %vm1174_vm11 = vcmp.gt.f32.partialorder %v4990_v61, 20.0  ;;  %v3512_v49 = vor.u32 %v3675_v41, %v3509_v44  ;;  %vm1173_vm13 = vcmp.gt.f32.partialorder %v5014_v33, 20.0  ;;  %v3687_v56 = vld [vmem:[%s5965_s5 + $0xd4] sm:$0xf] }
 0x20e   : > { %3875 = vlog2.f32 %v1501_v40  ;;  %v1519_v50 = vadd.f32 1.0, %v3872_v14  ;;  %v1522_v23 = vmul.f32 -0.5, %v3872_v14  ;;  %v1505_v21 = vadd.f32 1.0, %v1504_v5  ;;  %v3557_v30 = vld [vmem:[%s5965_s5 + $0xd8] sm:$0xf0] }
 0x20f   : > { %v1525_v51 = vand.u32 2147483647, %v3872_v14  ;;  %vm5075_vm12 = vcmp.lt.f32.partialorder %v1507_v24, 0.0004427343  ;;  %v1500_v45 = vsel %vm5065_vm8, %v1497_v19, %v1494_v29  ;;  %vm1175_vm14 = vcmp.gt.f32.partialorder %v5017_v18, 20.0  ;;  %2730 = vmatpush.bf16.msrb.mxu2 %v3512_v49 }
 0x210   : > { %v3874_v35 = vpop.eup %3873  ;;  %3877 = vlog2.f32 %v1519_v50  ;;  %v1523_v32 = vadd.f32 1.0, %v1522_v23  ;;  %v1506_v37 = vmul.f32 %v3868_v7, %v1505_v21  ;;  %v1556_v42 = vsel %vm1172_vm10, %v4975_v8, %v1500_v45  ;;  %v3691_v8 = vld [vmem:[%s5965_s5 + $0xf4] sm:$0xf]  ;;  %v3669_v7 = vld [vmem:[%s5965_s5 + $0x44] sm:$0xf] }
 0x211   : > { %1812 = vmatmul.bf16.gmra.mxu0 %v1572_v9  ;;  %1910 = vmatmul.bf16.gmra.mxu2 %v1572_v9  ;;  %v1512_v25 = vmul.f32 0.6931472, %v3874_v35  ;;  %vm1526_vm15 = vcmp.lt.f32.partialorder %v1525_v51, 0.0004427343  ;;  %v3504_v22 = vor.u32 %v3673_v59, %v3501_v39  ;;  %v3496_v1 = vor.u32 %v3671_v63, %v3493_v0  ;;  %v3485_v9 = vld [vmem:[%s5965_s5 + $0x48] sm:$0xf0] }
 0x212   : > { %v1524_v52 = vmul.f32 %v3872_v14, %v1523_v32  ;;  %v3568_v46 = vor.u32 %v3689_v48, %v3565_v27  ;;  %v3488_v10 = vor.u32 %v3669_v7, %v3485_v9  ;;  %v3560_v40 = vor.u32 %v3687_v56, %v3557_v30  ;;  %v3667_v5 = vld [vmem:[%s5965_s5 + $0x34] sm:$0xf]  ;;  %v3477_v11 = vld [vmem:[%s5965_s5 + $0x38] sm:$0xf0]  ;;  %v1608_v14 = vld [vmem:[%s5964_s4] sm:$0x3] }
 0x213   : > { %v1518_v55 = vsel %vm5069_vm9, %v1515_v26, %v1512_v25  ;;  %2731 = vmatpush.bf16.msrb.mxu2 %v3504_v22  ;;  %v3480_v13 = vor.u32 %v3667_v5, %v3477_v11  ;;  %v3549_v17 = vld [vmem:[%s5965_s5 + $0xc8] sm:$0xf0]  ;;  %v3665_v35 = vld [vmem:[%s5965_s5 + $0x24] sm:$0xf]  ;;  %v5170_v23 = vperm.slane %v1608_v14, 0  ;;  %v5185_v32 = vperm.slane %v1608_v14, 1 }
 0x214   : > { %1861 = vmatmul.bf16.gmra.mxu1 %v1573_v57  ;;  %1959 = vmatmul.bf16.gmra.mxu3 %v1573_v57  ;;  %v3876_v36 = vpop.eup %3875  ;;  %v1558_v54 = vsel %vm1174_vm11, %v4990_v61, %v1518_v55  ;;  %v3573_v61 = vld [vmem:[%s5965_s5 + $0xf8] sm:$0xf0]  ;;  %v3685_v57 = vld [vmem:[%s5965_s5 + $0xc4] sm:$0xf]  ;;  %v3469_v50 = vld [vmem:[%s5965_s5 + $0x28] sm:$0xf0] }
 0x215   : > { %v1503_v28 = vmul.f32 0.6931472, %v3876_v36  ;;  %v1574_v43 = vpack.c.bf16 %v1558_v54, %v1556_v42  ;;  %v3576_v62 = vor.u32 %v3691_v8, %v3573_v61  ;;  %v3552_v47 = vor.u32 %v3685_v57, %v3549_v17  ;;  %v3683_v21 = vld [vmem:[%s5965_s5 + $0xb4] sm:$0xf]  ;;  %v3541_v24 = vld [vmem:[%s5965_s5 + $0xb8] sm:$0xf0] }
 0x216   : > { %v3878_v53 = vpop.eup %3877  ;;  %v3472_v19 = vor.u32 %v3665_v35, %v3469_v50  ;;  %v3544_v29 = vor.u32 %v3683_v21, %v3541_v24  ;;  %v3663_v26 = vld [vmem:[%s5965_s5 + $0x14] sm:$0xf]  ;;  %v3451_v36 = vld [vmem:[%s5965_s5] sm:$0xf]  ;;  %v3678_v45 = vld [vmem:[%s5965_s5 + $0x84] sm:$0xf0] }
 0x217   : > { %v1509_v58 = vsel %vm5075_vm12, %v1506_v37, %v1503_v28  ;;  %v1521_v12 = vmul.f32 0.6931472, %v3878_v53  ;;  %2779 = vmatpush.bf16.msrb.mxu3 %v3576_v62  ;;  %2732 = vmatpush.bf16.msrb.mxu2 %v3496_v1  ;;  %v3464_v51 = vor.u32 %v3663_v26, %v3461_v6  ;;  %v3662_v37 = vld [vmem:[%s5965_s5 + $0x4] sm:$0xf0]  ;;  %v3681_v55 = vld [vmem:[%s5965_s5 + $0xa4] sm:$0xf] }
 0x218   : > { %v1557_v15 = vsel %vm1173_vm13, %v5014_v33, %v1509_v58  ;;  %v3664_v33 = vld [vmem:[%s5965_s5 + $0x14] sm:$0xf0]  ;;  %v3452_v44 = vor.u32 %v3662_v37, %v3451_v36  ;;  %v3533_v28 = vld [vmem:[%s5965_s5 + $0xa8] sm:$0xf0]  ;;  %v3661_v42 = vld [vmem:[%s5965_s5 + $0x4] sm:$0xf] }
 0x219   : > { %v1527_v60 = vsel %vm1526_vm15, %v1524_v52, %v1521_v12  ;;  %v3460_v3 = vor.u32 %v3664_v33, %v3459_v2  ;;  %v3516_v52 = vor.u32 %v3678_v45, %v3515_v38  ;;  %v3536_v53 = vor.u32 %v3681_v55, %v3533_v28  ;;  %v3453_v54 = vld [vmem:[%s5965_s5 + $0x8] sm:$0xf0]  ;;  %v3679_v39 = vld [vmem:[%s5965_s5 + $0x94] sm:$0xf]  ;;  %v3525_v22 = vld [vmem:[%s5965_s5 + $0x98] sm:$0xf0] }
 0x21a   : > { %v1559_v16 = vsel %vm1175_vm14, %v5017_v18, %v1527_v60  ;;  %v3523_v18 = vld [vmem:[%s5965_s5 + $0x90] sm:$0xf]  ;;  %v3456_v58 = vor.u32 %v3661_v42, %v3453_v54  ;;  %v3528_v8 = vor.u32 %v3679_v39, %v3525_v22  ;;  %v3677_v63 = vld [vmem:[%s5965_s5 + $0x84] sm:$0xf]  ;;  %v3517_v0 = vld [vmem:[%s5965_s5 + $0x88] sm:$0xf0] }
 0x21b   : > { %v1575_v34 = vpack.c.bf16 %v1559_v16, %v1557_v15  ;;  %v3524_v20 = vor.u32 %v3680_v4, %v3523_v18  ;;  %2638 = vmatpush.bf16.msrb.mxu0 %v3460_v3  ;;  %2780 = vmatpush.bf16.msrb.mxu3 %v3568_v46 }
 0x21c   : > { %2733 = vmatpush.bf16.msrb.mxu2 %v3488_v10 }
 0x21d   : > { %2687 = vmatpush.bf16.msrb.mxu1 %v3524_v20 }
 0x21f   : > { %2781 = vmatpush.bf16.msrb.mxu3 %v3560_v40  ;;  %2639 = vmatpush.bf16.msrb.mxu0 %v3452_v44 }
 0x220   : > { %2734 = vmatpush.bf16.msrb.mxu2 %v3480_v13 }
 0x221   : > { %1817 = vmatmul.bf16.gmra.mxu0 %v1574_v43  ;;  %1915 = vmatmul.bf16.gmra.mxu2 %v1574_v43 }
 0x222   : > { %2688 = vmatpush.bf16.msrb.mxu1 %v3516_v52 }
 0x223   : > { %2782 = vmatpush.bf16.msrb.mxu3 %v3552_v47 }
 0x224   : > { %1866 = vmatmul.bf16.gmra.mxu1 %v1575_v34  ;;  %1964 = vmatmul.bf16.gmra.mxu3 %v1575_v34  ;;  %v3520_v34 = vor.u32 %v3677_v63, %v3517_v0 }
 0x225   : > { %2735 = vmatpush.bf16.msrb.mxu2 %v3472_v19 }
 0x227   : > { %2783 = vmatpush.bf16.msrb.mxu3 %v3544_v29 }
 0x229   : > { %2736 = vmatpush.bf16.msrb.mxu2 %v3464_v51 }
 0x22b   : > { %2784 = vmatpush.bf16.msrb.mxu3 %v3536_v53 }
 0x22d   : > { %2737 = vmatpush.bf16.msrb.mxu2 %v3456_v58 }
 0x22e   : > { %v1783_v25 = vpop.f32.mrf.mxu0 }
 0x22f   : > { %v1784_v31 = vadd.f32 %v1783_v25, %v5170_v23  ;;  %2785 = vmatpush.bf16.msrb.mxu3 %v3528_v8 }
 0x231   : > { %v1832_v41 = vpop.f32.mrf.mxu1 }
 0x232   : > { %v5205_v49 = vadd.f32 %v1832_v41, %v1784_v31 }
 0x233   : > { %2786 = vmatpush.bf16.msrb.mxu3 %v3520_v34 }
 0x234   : > { %v1970_v12 = vmin.f32 %v5205_v49, 20.0  ;;  %v1881_v59 = vpop.f32.mrf.mxu2  ;;  %vm2002_vm0 = vcmp.gt.f32.partialorder %v5205_v49, 20.0 }
 0x235   : > { %v1882_v60 = vadd.f32 %v1881_v59, %v5185_v32 }
 0x236   : > { %v2034_v61 = vmul.f32 1.442695, %v1970_v12  ;;  %v1785_v43 = vpop.f32.mrf.mxu0 }
 0x237   : > { %v1930_v15 = vpop.f32.mrf.mxu3  ;;  %v1786_v16 = vadd.f32 %v1785_v43, %v5170_v23 }
 0x238   : > { %3879 = vpow2.f32 %v2034_v61  ;;  %v5222_v62 = vadd.f32 %v1930_v15, %v1882_v60 }
 0x239   : > { %v1834_v1 = vpop.f32.mrf.mxu1 }
 0x23a   : > { %v1971_v2 = vmin.f32 %v5222_v62, 20.0  ;;  %v5231_v33 = vadd.f32 %v1834_v1, %v1786_v16  ;;  %vm2003_vm3 = vcmp.gt.f32.partialorder %v5222_v62, 20.0 }
 0x23c   : > { %v2036_v18 = vmul.f32 1.442695, %v1971_v2  ;;  %v1972_v3 = vmin.f32 %v5231_v33, 20.0  ;;  %v1883_v4 = vpop.f32.mrf.mxu2  ;;  %vm2004_vm4 = vcmp.gt.f32.partialorder %v5231_v33, 20.0 }
 0x23d   : > { %v1884_v48 = vadd.f32 %v1883_v4, %v5185_v32 }
 0x23e   : > { %v3880_v27 = vpop.eup %3879  ;;  %3881 = vpow2.f32 %v2036_v18  ;;  %v2038_v20 = vmul.f32 1.442695, %v1972_v3  ;;  %v1788_v46 = vpop.f32.mrf.mxu0 }
 0x23f   : > { %v1932_v7 = vpop.f32.mrf.mxu3  ;;  %v1789_v9 = vadd.f32 %v1788_v46, %v5170_v23  ;;  %v2098_v10 = vadd.f32 1.0, %v3880_v27  ;;  %v2101_v17 = vmul.f32 -0.5, %v3880_v27  ;;  %v2104_v36 = vand.u32 2147483647, %v3880_v27 }
 0x240   : > { %3883 = vpow2.f32 %v2038_v20  ;;  %v5236_v56 = vadd.f32 %v1932_v7, %v1884_v48 }
 0x241   : > { %v1837_v30 = vpop.f32.mrf.mxu1  ;;  %3885 = vlog2.f32 %v2098_v10  ;;  %v2102_v51 = vadd.f32 1.0, %v2101_v17  ;;  %vm5255_vm1 = vcmp.lt.f32.partialorder %v2104_v36, 0.0004427343 }
 0x242   : > { %v1973_v40 = vmin.f32 %v5236_v56, 20.0  ;;  %v5239_v5 = vadd.f32 %v1837_v30, %v1789_v9  ;;  %vm2005_vm5 = vcmp.gt.f32.partialorder %v5236_v56, 20.0 }
 0x243   : > { %v2103_v58 = vmul.f32 %v3880_v27, %v2102_v51 }
 0x244   : > { %v5241_v11 = vpop.eup %3881  ;;  %v2040_v13 = vmul.f32 1.442695, %v1973_v40  ;;  %v1974_v14 = vmin.f32 %v5239_v5, 20.0  ;;  %v1886_v57 = vpop.f32.mrf.mxu2  ;;  %vm2006_vm8 = vcmp.gt.f32.partialorder %v5239_v5, 20.0 }
 0x245   : > { %v1887_v47 = vadd.f32 %v1886_v57, %v5185_v32  ;;  %v2107_v21 = vadd.f32 1.0, %v5241_v11  ;;  %v2110_v38 = vmul.f32 -0.5, %v5241_v11  ;;  %v2113_v39 = vand.u32 2147483647, %v5241_v11 }
 0x246   : > { %v3884_v35 = vpop.eup %3883  ;;  %3887 = vpow2.f32 %v2040_v13  ;;  %v2042_v50 = vmul.f32 1.442695, %v1974_v14  ;;  %v1790_v19 = vpop.f32.mrf.mxu0 }
 0x247   : > { %v1935_v24 = vpop.f32.mrf.mxu3  ;;  %v1791_v29 = vadd.f32 %v1790_v19, %v5170_v23  ;;  %v2116_v25 = vadd.f32 1.0, %v3884_v35  ;;  %v2119_v26 = vmul.f32 -0.5, %v3884_v35  ;;  %v3886_v6 = vpop.eup %3885  ;;  %v2122_v45 = vand.u32 2147483647, %v3884_v35 }
 0x248   : > { %3889 = vpow2.f32 %v2042_v50  ;;  %v5247_v31 = vadd.f32 %v1935_v24, %v1887_v47  ;;  %v2100_v55 = vmul.f32 0.6931472, %v3886_v6  ;;  %v2111_v16 = vadd.f32 1.0, %v2110_v38 }
 0x249   : > { %v1839_v37 = vpop.f32.mrf.mxu1  ;;  %3891 = vlog2.f32 %v2116_v25  ;;  %v2120_v28 = vadd.f32 1.0, %v2119_v26  ;;  %vm5263_vm2 = vcmp.lt.f32.partialorder %v2122_v45, 0.0004427343  ;;  %vm5285_vm6 = vcmp.lt.f32.partialorder %v2113_v39, 0.0004427343 }
 0x24a   : > { %v1975_v41 = vmin.f32 %v5247_v31, 20.0  ;;  %v5251_v44 = vadd.f32 %v1839_v37, %v1791_v29  ;;  %3893 = vlog2.f32 %v2107_v21  ;;  %v2106_v34 = vsel %vm5255_vm1, %v2103_v58, %v2100_v55 }
 0x24b   : > { %v2121_v2 = vmul.f32 %v3884_v35, %v2120_v28  ;;  %v2386_v40 = vsel %vm2002_vm0, %v5205_v49, %v2106_v34  ;;  %v2112_v19 = vmul.f32 %v5241_v11, %v2111_v16  ;;  %vm2007_vm12 = vcmp.gt.f32.partialorder %v5247_v31, 20.0 }
 0x24c   : > { %v3888_v52 = vpop.eup %3887  ;;  %v2044_v53 = vmul.f32 1.442695, %v1975_v41  ;;  %v1976_v42 = vmin.f32 %v5251_v44, 20.0  ;;  %v1888_v54 = vpop.f32.mrf.mxu2  ;;  %vm2008_vm9 = vcmp.gt.f32.partialorder %v5251_v44, 20.0 }
 0x24d   : > { %v1889_v59 = vadd.f32 %v1888_v54, %v5185_v32  ;;  %v2125_v22 = vadd.f32 1.0, %v3888_v52  ;;  %v2128_v60 = vmul.f32 -0.5, %v3888_v52  ;;  %v2131_v7 = vand.u32 2147483647, %v3888_v52 }
 0x24e   : > { %v5261_v8 = vpop.eup %3889  ;;  %3895 = vpow2.f32 %v2044_v53  ;;  %v2046_v61 = vmul.f32 1.442695, %v1976_v42  ;;  %v1793_v43 = vpop.f32.mrf.mxu0 }
 0x24f   : > { %v3892_v63 = vpop.eup %3891  ;;  %v1937_v0 = vpop.f32.mrf.mxu3  ;;  %v1794_v1 = vadd.f32 %v1793_v43, %v5170_v23  ;;  %3897 = vlog2.f32 %v2125_v22  ;;  %v2134_v48 = vadd.f32 1.0, %v5261_v8  ;;  %v2129_v46 = vadd.f32 1.0, %v2128_v60 }
 0x250   : > { %v3894_v18 = vpop.eup %3893  ;;  %3899 = vpow2.f32 %v2046_v61  ;;  %v5271_v3 = vadd.f32 %v1937_v0, %v1889_v59  ;;  %v2118_v4 = vmul.f32 0.6931472, %v3892_v63  ;;  %vm5294_vm7 = vcmp.lt.f32.partialorder %v2131_v7, 0.0004427343 }
 0x251   : > { %v1842_v27 = vpop.f32.mrf.mxu1  ;;  %v2109_v20 = vmul.f32 0.6931472, %v3894_v18  ;;  %3901 = vlog2.f32 %v2134_v48  ;;  %v2130_v29 = vmul.f32 %v3888_v52, %v2129_v46  ;;  %v2140_v38 = vand.u32 2147483647, %v5261_v8 }
 0x252   : > { %v1977_v9 = vmin.f32 %v5271_v3, 20.0  ;;  %v5276_v10 = vadd.f32 %v1842_v27, %v1794_v1  ;;  %v2124_v30 = vsel %vm5263_vm2, %v2121_v2, %v2118_v4  ;;  %vm2009_vm13 = vcmp.gt.f32.partialorder %v5271_v3, 20.0 }
 0x253   : > { %v2388_v13 = vsel %vm2004_vm4, %v5231_v33, %v2124_v30  ;;  %v2137_v33 = vmul.f32 -0.5, %v5261_v8  ;;  %v2115_v51 = vsel %vm5285_vm6, %v2112_v19, %v2109_v20  ;;  %vm5325_vm10 = vcmp.lt.f32.partialorder %v2140_v38, 0.0004427343 }
 0x254   : > { %v5289_v57 = vpop.eup %3895  ;;  %v2048_v17 = vmul.f32 1.442695, %v1977_v9  ;;  %v1978_v47 = vmin.f32 %v5276_v10, 20.0  ;;  %v1891_v35 = vpop.f32.mrf.mxu2  ;;  %v2418_v50 = vpack.c.bf16 %v2388_v13, %v2386_v40  ;;  %v2387_v54 = vsel %vm2003_vm3, %v5222_v62, %v2115_v51 }
 0x255   : > { %v3898_v21 = vpop.eup %3897  ;;  %v1892_v24 = vadd.f32 %v1891_v35, %v5185_v32  ;;  %v2143_v45 = vadd.f32 1.0, %v5289_v57  ;;  %v2138_v12 = vadd.f32 1.0, %v2137_v33  ;;  %v2146_v60 = vmul.f32 -0.5, %v5289_v57 }
 0x256   : > { %v3900_v25 = vpop.eup %3899  ;;  %3903 = vpow2.f32 %v2048_v17  ;;  %v2050_v26 = vmul.f32 1.442695, %v1978_v47  ;;  %2640 = vmatmul.bf16.vlgmr.msrb.gmra.mxu0 %v2418_v50  ;;  %2738 = vmatmul.bf16.vlgmr.msrb.gmra.mxu2 %v2418_v50  ;;  %v1795_v6 = vpop.f32.mrf.mxu0  ;;  %v2127_v11 = vmul.f32 0.6931472, %v3898_v21  ;;  %v2149_v35 = vand.u32 2147483647, %v5289_v57 }
 0x257   : > { %v1940_v36 = vpop.f32.mrf.mxu3  ;;  %v1796_v37 = vadd.f32 %v1795_v6, %v5170_v23  ;;  %v2152_v41 = vadd.f32 1.0, %v3900_v25  ;;  %v3902_v55 = vpop.eup %3901  ;;  %v2155_v53 = vmul.f32 -0.5, %v3900_v25  ;;  %v2158_v43 = vand.u32 2147483647, %v3900_v25 }
 0x258   : > { %3905 = vpow2.f32 %v2050_v26  ;;  %v5304_v28 = vadd.f32 %v1940_v36, %v1892_v24  ;;  %v2133_v52 = vsel %vm5294_vm7, %v2130_v29, %v2127_v11  ;;  %v2136_v61 = vmul.f32 0.6931472, %v3902_v55 }
 0x259   : > { %v1844_v42 = vpop.f32.mrf.mxu1  ;;  %v2389_v58 = vsel %vm2005_vm5, %v5236_v56, %v2133_v52  ;;  %3907 = vlog2.f32 %v2152_v41  ;;  %v2156_v63 = vadd.f32 1.0, %v2155_v53  ;;  %v2139_v1 = vmul.f32 %v5261_v8, %v2138_v12 }
 0x25a   : > { %v1979_v59 = vmin.f32 %v5304_v28, 20.0  ;;  %v5315_v39 = vadd.f32 %v1844_v42, %v1796_v37  ;;  %v2419_v22 = vpack.c.bf16 %v2389_v58, %v2387_v54  ;;  %3909 = vlog2.f32 %v2143_v45 }
 0x25b   : > { %v2147_v20 = vadd.f32 1.0, %v2146_v60  ;;  %v2142_v30 = vsel %vm5325_vm10, %v2139_v1, %v2136_v61  ;;  %vm5332_vm11 = vcmp.lt.f32.partialorder %v2158_v43, 0.0004427343  ;;  %v2157_v14 = vmul.f32 %v3900_v25, %v2156_v63 }
 0x25c   : > { %v3904_v15 = vpop.eup %3903  ;;  %v2052_v62 = vmul.f32 1.442695, %v1979_v59  ;;  %v1980_v16 = vmin.f32 %v5315_v39, 20.0  ;;  %2689 = vmatmul.bf16.vlgmr.msrb.gmra.mxu1 %v2419_v22  ;;  %2787 = vmatmul.bf16.vlgmr.msrb.gmra.mxu3 %v2419_v22  ;;  %v1893_v56 = vpop.f32.mrf.mxu2  ;;  %v2390_v25 = vsel %vm2006_vm8, %v5239_v5, %v2142_v30  ;;  %vm5359_vm14 = vcmp.lt.f32.partialorder %v2149_v35, 0.0004427343 }
 0x25d   : > { %v1894_v0 = vadd.f32 %v1893_v56, %v5185_v32  ;;  %v2161_v34 = vadd.f32 1.0, %v3904_v15  ;;  %v2164_v2 = vmul.f32 -0.5, %v3904_v15  ;;  %v2167_v19 = vand.u32 2147483647, %v3904_v15 }
 0x25e   : > { %v5323_v18 = vpop.eup %3905  ;;  %3911 = vpow2.f32 %v2052_v62  ;;  %v2054_v4 = vmul.f32 1.442695, %v1980_v16  ;;  %v1798_v48 = vpop.f32.mrf.mxu0  ;;  %v2148_v41 = vmul.f32 %v5289_v57, %v2147_v20  ;;  %vm2010_vm0 = vcmp.gt.f32.partialorder %v5276_v10, 20.0 }
 0x25f   : > { %v3908_v46 = vpop.eup %3907  ;;  %v1942_v7 = vpop.f32.mrf.mxu3  ;;  %v1799_v9 = vadd.f32 %v1798_v48, %v5170_v23  ;;  %3913 = vlog2.f32 %v2161_v34  ;;  %v2165_v50 = vadd.f32 1.0, %v2164_v2  ;;  %v2170_v21 = vadd.f32 1.0, %v5323_v18 }
 0x260   : > { %3915 = vpow2.f32 %v2054_v4  ;;  %v5336_v40 = vadd.f32 %v1942_v7, %v1894_v0  ;;  %v2154_v13 = vmul.f32 0.6931472, %v3908_v46  ;;  %v3910_v17 = vpop.eup %3909  ;;  %v2173_v6 = vmul.f32 -0.5, %v5323_v18 }
 0x261   : > { %v1847_v47 = vpop.f32.mrf.mxu1  ;;  %v2145_v33 = vmul.f32 0.6931472, %v3910_v17  ;;  %3917 = vlog2.f32 %v2170_v21  ;;  %vm5363_vm15 = vcmp.lt.f32.partialorder %v2167_v19, 0.0004427343  ;;  %v2176_v1 = vand.u32 2147483647, %v5323_v18 }
 0x262   : > { %v1981_v24 = vmin.f32 %v5336_v40, 20.0  ;;  %v5343_v29 = vadd.f32 %v1847_v47, %v1799_v9  ;;  %v2160_v49 = vsel %vm5332_vm11, %v2157_v14, %v2154_v13  ;;  %v2174_v22 = vadd.f32 1.0, %v2173_v6 }
 0x263   : > { %v2392_v26 = vsel %vm2008_vm9, %v5251_v44, %v2160_v49  ;;  %v2166_v44 = vmul.f32 %v3904_v15, %v2165_v50  ;;  %v2151_v57 = vsel %vm5359_vm14, %v2148_v41, %v2145_v33  ;;  %vm2012_vm1 = vcmp.gt.f32.partialorder %v5315_v39, 20.0 }
 0x264   : > { %v5354_v51 = vpop.eup %3911  ;;  %v2056_v11 = vmul.f32 1.442695, %v1981_v24  ;;  %v1982_v36 = vmin.f32 %v5343_v29, 20.0  ;;  %v1896_v37 = vpop.f32.mrf.mxu2  ;;  %v2420_v38 = vpack.c.bf16 %v2392_v26, %v2390_v25  ;;  %v2391_v63 = vsel %vm2007_vm12, %v5247_v31, %v2151_v57 }
 0x265   : > { %v3914_v45 = vpop.eup %3913  ;;  %v1897_v55 = vadd.f32 %v1896_v37, %v5185_v32  ;;  %v2179_v62 = vadd.f32 1.0, %v5354_v51  ;;  %vm5392_vm2 = vcmp.lt.f32.partialorder %v2176_v1, 0.0004427343  ;;  %v2185_v37 = vand.u32 2147483647, %v5354_v51 }
 0x266   : > { %v3916_v53 = vpop.eup %3915  ;;  %3919 = vpow2.f32 %v2056_v11  ;;  %v2058_v42 = vmul.f32 1.442695, %v1982_v36  ;;  %2645 = vmatmul.bf16.gmra.mxu0 %v2420_v38  ;;  %2743 = vmatmul.bf16.gmra.mxu2 %v2420_v38  ;;  %v1800_v54 = vpop.f32.mrf.mxu0  ;;  %v2163_v58 = vmul.f32 0.6931472, %v3914_v45  ;;  %vm2011_vm4 = vcmp.gt.f32.partialorder %v5304_v28, 20.0 }
 0x267   : > { %v1945_v12 = vpop.f32.mrf.mxu3  ;;  %v1801_v59 = vadd.f32 %v1800_v54, %v5170_v23  ;;  %v2188_v60 = vadd.f32 1.0, %v3916_v53  ;;  %v2191_v61 = vmul.f32 -0.5, %v3916_v53  ;;  %v3918_v16 = vpop.eup %3917  ;;  %v2194_v27 = vand.u32 2147483647, %v3916_v53 }
 0x268   : > { %3921 = vpow2.f32 %v2058_v42  ;;  %v5370_v43 = vadd.f32 %v1945_v12, %v1897_v55  ;;  %v2169_v15 = vsel %vm5363_vm15, %v2166_v44, %v2163_v58  ;;  %v2172_v48 = vmul.f32 0.6931472, %v3918_v16 }
 0x269   : > { %v1849_v56 = vpop.f32.mrf.mxu1  ;;  %v2393_v0 = vsel %vm2009_vm13, %v5271_v3, %v2169_v15  ;;  %3923 = vlog2.f32 %v2188_v60  ;;  %v2175_v3 = vmul.f32 %v5323_v18, %v2174_v22  ;;  %v2192_v9 = vadd.f32 1.0, %v2191_v61 }
 0x26a   : > { %v1983_v34 = vmin.f32 %v5370_v43, 20.0  ;;  %v5383_v2 = vadd.f32 %v1849_v56, %v1801_v59  ;;  %v2421_v4 = vpack.c.bf16 %v2393_v0, %v2391_v63  ;;  %3925 = vlog2.f32 %v2179_v62 }
 0x26b   : > { %v2178_v47 = vsel %vm5392_vm2, %v2175_v3, %v2172_v48  ;;  %v2182_v18 = vmul.f32 -0.5, %v5354_v51  ;;  %vm5403_vm3 = vcmp.lt.f32.partialorder %v2194_v27, 0.0004427343  ;;  %v2193_v26 = vmul.f32 %v3916_v53, %v2192_v9 }
 0x26c   : > { %v5385_v20 = vpop.eup %3919  ;;  %v2060_v46 = vmul.f32 1.442695, %v1983_v34  ;;  %v1984_v31 = vmin.f32 %v5383_v2, 20.0  ;;  %2694 = vmatmul.bf16.gmra.mxu1 %v2421_v4  ;;  %2792 = vmatmul.bf16.gmra.mxu3 %v2421_v4  ;;  %v1898_v7 = vpop.f32.mrf.mxu2  ;;  %v2394_v36 = vsel %vm2010_vm0, %v5276_v10, %v2178_v47  ;;  %vm2013_vm5 = vcmp.gt.f32.partialorder %v5336_v40, 20.0 }
 0x26d   : > { %v1899_v30 = vadd.f32 %v1898_v7, %v5185_v32  ;;  %v2197_v35 = vadd.f32 1.0, %v5385_v20  ;;  %v2200_v49 = vmul.f32 -0.5, %v5385_v20  ;;  %v2183_v5 = vadd.f32 1.0, %v2182_v18 }
 0x26e   : > { %v5396_v13 = vpop.eup %3921  ;;  %v2062_v14 = vmul.f32 1.442695, %v1984_v31  ;;  %v1803_v17 = vpop.f32.mrf.mxu0  ;;  %3927 = vpow2.f32 %v2060_v46  ;;  %v2203_v10 = vand.u32 2147483647, %v5385_v20  ;;  %vm5432_vm6 = vcmp.lt.f32.partialorder %v2185_v37, 0.0004427343 }
 0x26f   : > { %v3924_v50 = vpop.eup %3923  ;;  %v1947_v19 = vpop.f32.mrf.mxu3  ;;  %v1804_v21 = vadd.f32 %v1803_v17, %v5170_v23  ;;  %v2206_v38 = vadd.f32 1.0, %v5396_v13  ;;  %v2201_v52 = vadd.f32 1.0, %v2200_v49  ;;  %v2184_v15 = vmul.f32 %v5354_v51, %v2183_v5 }
 0x270   : > { %3929 = vpow2.f32 %v2062_v14  ;;  %v5408_v33 = vadd.f32 %v1947_v19, %v1899_v30  ;;  %v2190_v25 = vmul.f32 0.6931472, %v3924_v50  ;;  %v3926_v6 = vpop.eup %3925  ;;  %vm5437_vm7 = vcmp.lt.f32.partialorder %v2203_v10, 0.0004427343 }
 0x271   : > { %v1852_v11 = vpop.f32.mrf.mxu1  ;;  %3931 = vlog2.f32 %v2197_v35  ;;  %v2181_v58 = vmul.f32 0.6931472, %v3926_v6  ;;  %v2202_v27 = vmul.f32 %v5385_v20, %v2201_v52  ;;  %v2212_v3 = vand.u32 2147483647, %v5396_v13 }
 0x272   : > { %v1985_v41 = vmin.f32 %v5408_v33, 20.0  ;;  %v5416_v45 = vadd.f32 %v1852_v11, %v1804_v21  ;;  %v2196_v55 = vsel %vm5403_vm3, %v2193_v26, %v2190_v25  ;;  %3933 = vlog2.f32 %v2206_v38 }
 0x273   : > { %v2396_v44 = vsel %vm2012_vm1, %v5315_v39, %v2196_v55  ;;  %v2209_v39 = vmul.f32 -0.5, %v5396_v13  ;;  %v2187_v48 = vsel %vm5432_vm6, %v2184_v15, %v2181_v58  ;;  %vm2014_vm8 = vcmp.gt.f32.partialorder %v5343_v29, 20.0 }
 0x274   : > { %v2064_v53 = vmul.f32 1.442695, %v1985_v41  ;;  %v1986_v42 = vmin.f32 %v5416_v45, 20.0  ;;  %v1901_v54 = vpop.f32.mrf.mxu2  ;;  %v2422_v57 = vpack.c.bf16 %v2396_v44, %v2394_v36  ;;  %v5425_v12 = vpop.eup %3927  ;;  %v2395_v20 = vsel %vm2011_vm4, %v5304_v28, %v2187_v48 }
 0x275   : > { %v1902_v59 = vadd.f32 %v1901_v54, %v5185_v32  ;;  %v2210_v7 = vadd.f32 1.0, %v2209_v39  ;;  %v2215_v9 = vadd.f32 1.0, %v5425_v12  ;;  %vm5465_vm9 = vcmp.lt.f32.partialorder %v2212_v3, 0.0004427343 }
 0x276   : > { %v3930_v22 = vpop.eup %3929  ;;  %3935 = vpow2.f32 %v2064_v53  ;;  %v2066_v60 = vmul.f32 1.442695, %v1986_v42  ;;  %2650 = vmatmul.bf16.gmra.mxu0 %v2422_v57  ;;  %2748 = vmatmul.bf16.gmra.mxu2 %v2422_v57  ;;  %v1805_v61 = vpop.f32.mrf.mxu0  ;;  %v2218_v11 = vmul.f32 -0.5, %v5425_v12  ;;  %vm2016_vm10 = vcmp.gt.f32.partialorder %v5383_v2, 20.0 }
 0x277   : > { %v3932_v16 = vpop.eup %3931  ;;  %v1950_v56 = vpop.f32.mrf.mxu3  ;;  %v1806_v63 = vadd.f32 %v1805_v61, %v5170_v23  ;;  %v2224_v1 = vadd.f32 1.0, %v3930_v22  ;;  %v2227_v34 = vmul.f32 -0.5, %v3930_v22  ;;  %v2211_v25 = vmul.f32 %v5396_v13, %v2210_v7 }
 0x278   : > { %v5441_v4 = vadd.f32 %v1950_v56, %v1902_v59  ;;  %v2199_v51 = vmul.f32 0.6931472, %v3932_v16  ;;  %v3934_v46 = vpop.eup %3933  ;;  %v2230_v28 = vand.u32 2147483647, %v3930_v22  ;;  %v2221_v42 = vand.u32 2147483647, %v5425_v12 }
 0x279   : > { %v1854_v31 = vpop.f32.mrf.mxu1  ;;  %3937 = vlog2.f32 %v2224_v1  ;;  %v2228_v47 = vadd.f32 1.0, %v2227_v34  ;;  %v2208_v24 = vmul.f32 0.6931472, %v3934_v46  ;;  %vm2015_vm12 = vcmp.gt.f32.partialorder %v5370_v43, 20.0 }
 0x27a   : > { %3939 = vpow2.f32 %v2066_v60  ;;  %v1987_v30 = vmin.f32 %v5441_v4, 20.0  ;;  %v5449_v8 = vadd.f32 %v1854_v31, %v1806_v63  ;;  %v2205_v14 = vsel %vm5437_vm7, %v2202_v27, %v2199_v51 }
 0x27b   : > { %v2397_v17 = vsel %vm2013_vm5, %v5336_v40, %v2205_v14  ;;  %3941 = vlog2.f32 %v2215_v9  ;;  %v2229_v41 = vmul.f32 %v3930_v22, %v2228_v47  ;;  %v2214_v52 = vsel %vm5465_vm9, %v2211_v25, %v2208_v24 }
 0x27c   : > { %v5460_v18 = vpop.eup %3935  ;;  %v2068_v35 = vmul.f32 1.442695, %v1987_v30  ;;  %v1988_v50 = vmin.f32 %v5449_v8, 20.0  ;;  %v2423_v19 = vpack.c.bf16 %v2397_v17, %v2395_v20  ;;  %v1903_v21 = vpop.f32.mrf.mxu2  ;;  %vm2231_vm11 = vcmp.lt.f32.partialorder %v2230_v28, 0.0004427343 }
 0x27d   : > { %v1904_v49 = vadd.f32 %v1903_v21, %v5185_v32  ;;  %v2233_v13 = vadd.f32 1.0, %v5460_v18  ;;  %v2236_v55 = vmul.f32 -0.5, %v5460_v18  ;;  %v2219_v59 = vadd.f32 1.0, %v2218_v11 }
 0x27e   : > { %3943 = vpow2.f32 %v2068_v35  ;;  %v2070_v26 = vmul.f32 1.442695, %v1988_v50  ;;  %2699 = vmatmul.bf16.gmra.mxu1 %v2423_v19  ;;  %2797 = vmatmul.bf16.gmra.mxu3 %v2423_v19  ;;  %v1808_v40 = vpop.f32.mrf.mxu0  ;;  %v2398_v22 = vsel %vm2014_vm8, %v5343_v29, %v2214_v52  ;;  %v2239_v1 = vand.u32 2147483647, %v5460_v18 }
 0x27f   : > { %v3938_v36 = vpop.eup %3937  ;;  %v1952_v37 = vpop.f32.mrf.mxu3  ;;  %v1809_v38 = vadd.f32 %v1808_v40, %v5170_v23  ;;  %v2237_v61 = vadd.f32 1.0, %v2236_v55  ;;  %vm2017_vm13 = vcmp.gt.f32.partialorder %v5408_v33, 20.0  ;;  %v2220_v27 = vmul.f32 %v5425_v12, %v2219_v59 }
 0x280   : > { %v5473_v5 = vpop.eup %3939  ;;  %3945 = vpow2.f32 %v2070_v26  ;;  %v5475_v44 = vadd.f32 %v1952_v37, %v1904_v49  ;;  %v2226_v10 = vmul.f32 0.6931472, %v3938_v36  ;;  %vm5500_vm14 = vcmp.lt.f32.partialorder %v2221_v42, 0.0004427343 }
 0x281   : > { %v1857_v53 = vpop.f32.mrf.mxu1  ;;  %3947 = vlog2.f32 %v2233_v13  ;;  %v3942_v39 = vpop.eup %3941  ;;  %v2242_v15 = vadd.f32 1.0, %v5473_v5  ;;  %v2245_v29 = vmul.f32 -0.5, %v5473_v5  ;;  %v2238_v9 = vmul.f32 %v5460_v18, %v2237_v61 }
 0x282   : > { %v1989_v54 = vmin.f32 %v5475_v44, 20.0  ;;  %v5482_v57 = vadd.f32 %v1857_v53, %v1809_v38  ;;  %v2232_v58 = vsel %vm2231_vm11, %v2229_v41, %v2226_v10  ;;  %v2217_v48 = vmul.f32 0.6931472, %v3942_v39 }
 0x283   : > { %v2400_v60 = vsel %vm2016_vm10, %v5383_v2, %v2232_v58  ;;  %3949 = vlog2.f32 %v2242_v15  ;;  %vm2240_vm15 = vcmp.lt.f32.partialorder %v2239_v1, 0.0004427343  ;;  %v2246_v50 = vadd.f32 1.0, %v2245_v29 }
 0x284   : > { %v5490_v62 = vpop.eup %3943  ;;  %v2072_v16 = vmul.f32 1.442695, %v1989_v54  ;;  %v1990_v56 = vmin.f32 %v5482_v57, 20.0  ;;  %v1906_v63 = vpop.f32.mrf.mxu2  ;;  %v2424_v0 = vpack.c.bf16 %v2400_v60, %v2398_v22  ;;  %v2223_v12 = vsel %vm5500_vm14, %v2220_v27, %v2217_v48 }
 0x285   : > { %v1907_v34 = vadd.f32 %v1906_v63, %v5185_v32  ;;  %v2251_v14 = vadd.f32 1.0, %v5490_v62  ;;  %v2248_v49 = vand.u32 2147483647, %v5473_v5  ;;  %v2399_v28 = vsel %vm2015_vm12, %v5370_v43, %v2223_v12 }
 0x286   : > { %v5496_v51 = vpop.eup %3945  ;;  %3951 = vpow2.f32 %v2072_v16  ;;  %2655 = vmatmul.bf16.gmra.mxu0 %v2424_v0  ;;  %2753 = vmatmul.bf16.gmra.mxu2 %v2424_v0  ;;  %v1810_v2 = vpop.f32.mrf.mxu0  ;;  %v2074_v20 = vmul.f32 1.442695, %v1990_v56  ;;  %v2247_v55 = vmul.f32 %v5473_v5, %v2246_v50  ;;  %v2254_v42 = vmul.f32 -0.5, %v5490_v62 }
 0x287   : > { %v3948_v31 = vpop.eup %3947  ;;  %v1955_v7 = vpop.f32.mrf.mxu3  ;;  %v1811_v3 = vadd.f32 %v1810_v2, %v5170_v23  ;;  %v2260_v30 = vadd.f32 1.0, %v5496_v51  ;;  %v2263_v19 = vmul.f32 -0.5, %v5496_v51  ;;  %v2266_v43 = vand.u32 2147483647, %v5496_v51 }
 0x288   : > { %v5508_v17 = vadd.f32 %v1955_v7, %v1907_v34  ;;  %v2235_v47 = vmul.f32 0.6931472, %v3948_v31  ;;  %vm5529_vm0 = vcmp.lt.f32.partialorder %v2248_v49, 0.0004427343  ;;  %vm2018_vm1 = vcmp.gt.f32.partialorder %v5416_v45, 20.0 }
 0x289   : > { %v1859_v35 = vpop.f32.mrf.mxu1  ;;  %3953 = vlog2.f32 %v2260_v30  ;;  %v3950_v25 = vpop.eup %3949  ;;  %v2264_v40 = vadd.f32 1.0, %v2263_v19  ;;  %vm2020_vm2 = vcmp.gt.f32.partialorder %v5449_v8, 20.0  ;;  %vm2267_vm3 = vcmp.lt.f32.partialorder %v2266_v43, 0.0004427343 }
 0x28a   : > { %v1991_v21 = vmin.f32 %v5508_v17, 20.0  ;;  %v5514_v18 = vadd.f32 %v1859_v35, %v1811_v3  ;;  %v2241_v24 = vsel %vm2240_vm15, %v2238_v9, %v2235_v47  ;;  %3955 = vlog2.f32 %v2251_v14 }
 0x28b   : > { %v2401_v26 = vsel %vm2017_vm13, %v5408_v33, %v2241_v24  ;;  %3957 = vpow2.f32 %v2074_v20  ;;  %v2244_v13 = vmul.f32 0.6931472, %v3950_v25  ;;  %v2265_v53 = vmul.f32 %v5496_v51, %v2264_v40 }
 0x28c   : > { %v5523_v6 = vpop.eup %3951  ;;  %v2076_v11 = vmul.f32 1.442695, %v1991_v21  ;;  %v1992_v36 = vmin.f32 %v5514_v18, 20.0  ;;  %v2425_v37 = vpack.c.bf16 %v2401_v26, %v2399_v28  ;;  %v1908_v38 = vpop.f32.mrf.mxu2  ;;  %v2255_v34 = vadd.f32 1.0, %v2254_v42 }
 0x28d   : > { %v1909_v41 = vadd.f32 %v1908_v38, %v5185_v32  ;;  %v2269_v5 = vadd.f32 1.0, %v5523_v6  ;;  %v2272_v39 = vmul.f32 -0.5, %v5523_v6  ;;  %v2250_v60 = vsel %vm5529_vm0, %v2247_v55, %v2244_v13 }
 0x28e   : > { %v2078_v52 = vmul.f32 1.442695, %v1992_v36  ;;  %2704 = vmatmul.bf16.gmra.mxu1 %v2425_v37  ;;  %2802 = vmatmul.bf16.gmra.mxu3 %v2425_v37  ;;  %v1813_v33 = vpop.f32.mrf.mxu0  ;;  %3959 = vpow2.f32 %v2076_v11  ;;  %v2402_v48 = vsel %vm2018_vm1, %v5416_v45, %v2250_v60  ;;  %v2257_v51 = vand.u32 2147483647, %v5490_v62 }
 0x28f   : > { %v3954_v54 = vpop.eup %3953  ;;  %v1957_v58 = vpop.f32.mrf.mxu3  ;;  %v1814_v59 = vadd.f32 %v1813_v33, %v5170_v23  ;;  %v2273_v2 = vadd.f32 1.0, %v2272_v39  ;;  %v2275_v14 = vand.u32 2147483647, %v5523_v6  ;;  %v2256_v47 = vmul.f32 %v5490_v62, %v2255_v34 }
 0x290   : > { %3961 = vpow2.f32 %v2078_v52  ;;  %v5538_v22 = vadd.f32 %v1957_v58, %v1909_v41  ;;  %v2262_v61 = vmul.f32 0.6931472, %v3954_v54  ;;  %v3956_v15 = vpop.eup %3955  ;;  %vm2019_vm4 = vcmp.gt.f32.partialorder %v5441_v4, 20.0 }
 0x291   : > { %v1862_v16 = vpop.f32.mrf.mxu1  ;;  %3963 = vlog2.f32 %v2269_v5  ;;  %v5544_v56 = vpop.eup %3957  ;;  %v2253_v3 = vmul.f32 0.6931472, %v3956_v15  ;;  %vm5564_vm5 = vcmp.lt.f32.partialorder %v2257_v51, 0.0004427343  ;;  %v2274_v62 = vmul.f32 %v5523_v6, %v2273_v2 }
 0x292   : > { %v1993_v63 = vmin.f32 %v5538_v22, 20.0  ;;  %v5547_v0 = vadd.f32 %v1862_v16, %v1814_v59  ;;  %v2268_v1 = vsel %vm2267_vm3, %v2265_v53, %v2262_v61  ;;  %v2278_v20 = vadd.f32 1.0, %v5544_v56 }
 0x293   : > { %v2404_v29 = vsel %vm2020_vm2, %v5449_v8, %v2268_v1  ;;  %v2281_v35 = vmul.f32 -0.5, %v5544_v56  ;;  %v2259_v25 = vsel %vm5564_vm5, %v2256_v47, %v2253_v3  ;;  %vm2021_vm6 = vcmp.gt.f32.partialorder %v5475_v44, 20.0 }
 0x294   : > { %v2080_v27 = vmul.f32 1.442695, %v1993_v63  ;;  %v1994_v46 = vmin.f32 %v5547_v0, 20.0  ;;  %v1911_v31 = vpop.f32.mrf.mxu2  ;;  %v2426_v7 = vpack.c.bf16 %v2404_v29, %v2402_v48  ;;  %v5553_v9 = vpop.eup %3959  ;;  %vm2276_vm7 = vcmp.lt.f32.partialorder %v2275_v14, 0.0004427343 }
 0x295   : > { %v1912_v30 = vadd.f32 %v1911_v31, %v5185_v32  ;;  %v2282_v38 = vadd.f32 1.0, %v2281_v35  ;;  %vm2022_vm8 = vcmp.gt.f32.partialorder %v5482_v57, 20.0  ;;  %v2403_v6 = vsel %vm2019_vm4, %v5441_v4, %v2259_v25 }
 0x296   : > { %v5558_v45 = vpop.eup %3961  ;;  %3965 = vpow2.f32 %v2080_v27  ;;  %v2082_v8 = vmul.f32 1.442695, %v1994_v46  ;;  %2660 = vmatmul.bf16.gmra.mxu0 %v2426_v7  ;;  %2758 = vmatmul.bf16.gmra.mxu2 %v2426_v7  ;;  %v1815_v12 = vpop.f32.mrf.mxu0  ;;  %v2284_v10 = vand.u32 2147483647, %v5544_v56  ;;  %vm2024_vm9 = vcmp.gt.f32.partialorder %v5514_v18, 20.0 }
 0x297   : > { %v3964_v50 = vpop.eup %3963  ;;  %v1960_v19 = vpop.f32.mrf.mxu3  ;;  %v1816_v21 = vadd.f32 %v1815_v12, %v5170_v23  ;;  %3967 = vlog2.f32 %v2278_v20  ;;  %v2296_v40 = vadd.f32 1.0, %v5558_v45  ;;  %v2299_v11 = vmul.f32 -0.5, %v5558_v45 }
 0x298   : > { %v5568_v49 = vadd.f32 %v1960_v19, %v1912_v30  ;;  %v2271_v28 = vmul.f32 0.6931472, %v3964_v50  ;;  %3969 = vpow2.f32 %v2082_v8  ;;  %v2302_v58 = vand.u32 2147483647, %v5558_v45 }
 0x299   : > { %v1864_v26 = vpop.f32.mrf.mxu1  ;;  %3971 = vlog2.f32 %v2296_v40  ;;  %v2300_v53 = vadd.f32 1.0, %v2299_v11  ;;  %v2287_v4 = vadd.f32 1.0, %v5553_v9  ;;  %v2283_v39 = vmul.f32 %v5544_v56, %v2282_v38 }
 0x29a   : > { %v5576_v36 = vadd.f32 %v1864_v26, %v1816_v21  ;;  %v2277_v37 = vsel %vm2276_vm7, %v2274_v62, %v2271_v28  ;;  %v1995_v41 = vmin.f32 %v5568_v49, 20.0  ;;  %v2290_v60 = vmul.f32 -0.5, %v5553_v9 }
 0x29b   : > { %v2405_v13 = vsel %vm2021_vm6, %v5475_v44, %v2277_v37  ;;  %3973 = vlog2.f32 %v2287_v4  ;;  %vm5600_vm10 = vcmp.lt.f32.partialorder %v2284_v10, 0.0004427343  ;;  %v2301_v56 = vmul.f32 %v5558_v45, %v2300_v53 }
 0x29c   : > { %v5584_v55 = vpop.eup %3965  ;;  %v1996_v43 = vmin.f32 %v5576_v36, 20.0  ;;  %v2427_v52 = vpack.c.bf16 %v2405_v13, %v2403_v6  ;;  %v1913_v33 = vpop.f32.mrf.mxu2  ;;  %v2084_v61 = vmul.f32 1.442695, %v1995_v41  ;;  %v2291_v27 = vadd.f32 1.0, %v2290_v60 }
 0x29d   : > { %v3968_v42 = vpop.eup %3967  ;;  %v1914_v54 = vadd.f32 %v1913_v33, %v5185_v32  ;;  %v2305_v63 = vadd.f32 1.0, %v5584_v55  ;;  %v2308_v46 = vmul.f32 -0.5, %v5584_v55  ;;  %vm2303_vm11 = vcmp.lt.f32.partialorder %v2302_v58, 0.0004427343 }
 0x29e   : > { %v2086_v44 = vmul.f32 1.442695, %v1996_v43  ;;  %2709 = vmatmul.bf16.gmra.mxu1 %v2427_v52  ;;  %2807 = vmatmul.bf16.gmra.mxu3 %v2427_v52  ;;  %v1818_v59 = vpop.f32.mrf.mxu0  ;;  %v2280_v5 = vmul.f32 0.6931472, %v3968_v42  ;;  %v5596_v1 = vpop.eup %3969  ;;  %v2293_v30 = vand.u32 2147483647, %v5553_v9  ;;  %v2292_v24 = vmul.f32 %v5553_v9, %v2291_v27 }
 0x29f   : > { %v1962_v15 = vpop.f32.mrf.mxu3  ;;  %v1819_v16 = vadd.f32 %v1818_v59, %v5170_v23  ;;  %v3972_v29 = vpop.eup %3971  ;;  %v2309_v14 = vadd.f32 1.0, %v2308_v46  ;;  %v2314_v20 = vadd.f32 1.0, %v5596_v1  ;;  %v2311_v25 = vand.u32 2147483647, %v5584_v55 }
 0x2a0   : > { %3975 = vpow2.f32 %v2086_v44  ;;  %v5598_v34 = vadd.f32 %v1962_v15, %v1914_v54  ;;  %v2286_v2 = vsel %vm5600_vm10, %v2283_v39, %v2280_v5  ;;  %v2298_v3 = vmul.f32 0.6931472, %v3972_v29 }
 0x2a1   : > { %v1867_v51 = vpop.f32.mrf.mxu1  ;;  %3977 = vlog2.f32 %v2305_v63  ;;  %v2406_v35 = vsel %vm2022_vm8, %v5482_v57, %v2286_v2  ;;  %v3974_v50 = vpop.eup %3973  ;;  %vm5626_vm12 = vcmp.lt.f32.partialorder %v2293_v30, 0.0004427343  ;;  %v2317_v43 = vmul.f32 -0.5, %v5596_v1 }
 0x2a2   : > { %v1997_v31 = vmin.f32 %v5598_v34, 20.0  ;;  %v5609_v7 = vadd.f32 %v1867_v51, %v1819_v16  ;;  %3979 = vpow2.f32 %v2084_v61  ;;  %v2304_v47 = vsel %vm2303_vm11, %v2301_v56, %v2298_v3 }
 0x2a3   : > { %v2408_v21 = vsel %vm2024_vm9, %v5514_v18, %v2304_v47  ;;  %v2289_v11 = vmul.f32 0.6931472, %v3974_v50  ;;  %v2310_v18 = vmul.f32 %v5584_v55, %v2309_v14  ;;  %vm2023_vm13 = vcmp.gt.f32.partialorder %v5508_v17, 20.0 }
 0x2a4   : > { %v2088_v45 = vmul.f32 1.442695, %v1997_v31  ;;  %v1998_v8 = vmin.f32 %v5609_v7, 20.0  ;;  %v1916_v12 = vpop.f32.mrf.mxu2  ;;  %v2428_v26 = vpack.c.bf16 %v2408_v21, %v2406_v35  ;;  %vm2025_vm14 = vcmp.gt.f32.partialorder %v5538_v22, 20.0 }
 0x2a5   : > { %v1917_v19 = vadd.f32 %v1916_v12, %v5185_v32  ;;  %v2295_v6 = vsel %vm5626_vm12, %v2292_v24, %v2289_v11  ;;  %vm2312_vm15 = vcmp.lt.f32.partialorder %v2311_v25, 0.0004427343  ;;  %v2318_v60 = vadd.f32 1.0, %v2317_v43 }
 0x2a6   : > { %v5623_v28 = vpop.eup %3975  ;;  %3981 = vpow2.f32 %v2088_v45  ;;  %v2090_v62 = vmul.f32 1.442695, %v1998_v8  ;;  %v1820_v40 = vpop.f32.mrf.mxu0  ;;  %2665 = vmatmul.bf16.gmra.mxu0 %v2428_v26  ;;  %2763 = vmatmul.bf16.gmra.mxu2 %v2428_v26  ;;  %v2407_v42 = vsel %vm2023_vm13, %v5508_v17, %v2295_v6  ;;  %v2320_v16 = vand.u32 2147483647, %v5596_v1 }
 0x2a7   : > { %v3978_v37 = vpop.eup %3977  ;;  %v1965_v57 = vpop.f32.mrf.mxu3  ;;  %v1821_v38 = vadd.f32 %v1820_v40, %v5170_v23  ;;  %3983 = vlog2.f32 %v2314_v20  ;;  %v2332_v55 = vadd.f32 1.0, %v5623_v28  ;;  %v2335_v58 = vmul.f32 -0.5, %v5623_v28 }
 0x2a8   : > { %v5631_v9 = vadd.f32 %v1965_v57, %v1917_v19  ;;  %v2307_v13 = vmul.f32 0.6931472, %v3978_v37  ;;  %v5636_v52 = vpop.eup %3979  ;;  %3985 = vpow2.f32 %v2090_v62  ;;  %v2338_v29 = vand.u32 2147483647, %v5623_v28 }
 0x2a9   : > { %v1869_v23 = vpop.f32.mrf.mxu1  ;;  %3987 = vlog2.f32 %v2332_v55  ;;  %v2323_v17 = vadd.f32 1.0, %v5636_v52  ;;  %v2336_v48 = vadd.f32 1.0, %v2335_v58  ;;  %v2326_v27 = vmul.f32 -0.5, %v5636_v52 }
 0x2aa   : > { %v1999_v33 = vmin.f32 %v5631_v9, 20.0  ;;  %v5642_v10 = vadd.f32 %v1869_v23, %v1821_v38  ;;  %v2313_v53 = vsel %vm2312_vm15, %v2310_v18, %v2307_v13  ;;  %vm2026_vm0 = vcmp.gt.f32.partialorder %v5547_v0, 20.0 }
 0x2ab   : > { %v2409_v54 = vsel %vm2025_vm14, %v5538_v22, %v2313_v53  ;;  %vm5661_vm1 = vcmp.lt.f32.partialorder %v2320_v16, 0.0004427343  ;;  %vm2028_vm2 = vcmp.gt.f32.partialorder %v5576_v36, 20.0  ;;  %vm2339_vm3 = vcmp.lt.f32.partialorder %v2338_v29, 0.0004427343 }
 0x2ac   : > { %v5647_v4 = vpop.eup %3981  ;;  %v2092_v44 = vmul.f32 1.442695, %v1999_v33  ;;  %v2000_v59 = vmin.f32 %v5642_v10, 20.0  ;;  %v2429_v5 = vpack.c.bf16 %v2409_v54, %v2407_v42  ;;  %v1918_v39 = vpop.f32.mrf.mxu2  ;;  %v2327_v50 = vadd.f32 1.0, %v2326_v27 }
 0x2ad   : > { %v3984_v61 = vpop.eup %3983  ;;  %v1919_v15 = vadd.f32 %v1918_v39, %v5185_v32  ;;  %v2319_v32 = vmul.f32 %v5596_v1, %v2318_v60  ;;  %v2341_v3 = vadd.f32 1.0, %v5647_v4  ;;  %v2344_v30 = vmul.f32 -0.5, %v5647_v4 }
 0x2ae   : > { %3989 = vpow2.f32 %v2092_v44  ;;  %v2094_v22 = vmul.f32 1.442695, %v2000_v59  ;;  %2714 = vmatmul.bf16.gmra.mxu1 %v2429_v5  ;;  %2812 = vmatmul.bf16.gmra.mxu3 %v2429_v5  ;;  %v2316_v63 = vmul.f32 0.6931472, %v3984_v61  ;;  %v5654_v51 = vpop.eup %3985  ;;  %v2337_v1 = vmul.f32 %v5623_v28, %v2336_v48 }
 0x2af   : > { %v1967_v56 = vpop.f32.mrf.mxu3  ;;  %3991 = vlog2.f32 %v2323_v17  ;;  %v3988_v46 = vpop.eup %3987  ;;  %v2350_v8 = vadd.f32 1.0, %v5654_v51  ;;  %v2329_v19 = vand.u32 2147483647, %v5636_v52  ;;  %v2345_v28 = vadd.f32 1.0, %v2344_v30 }
 0x2b0   : > { %3993 = vpow2.f32 %v2094_v22  ;;  %v5656_v2 = vadd.f32 %v1967_v56, %v1919_v15  ;;  %v2322_v20 = vsel %vm5661_vm1, %v2319_v32, %v2316_v63  ;;  %v2334_v45 = vmul.f32 0.6931472, %v3988_v46 }
 0x2b1   : > { %3995 = vlog2.f32 %v2341_v3  ;;  %v2410_v24 = vsel %vm2026_vm0, %v5547_v0, %v2322_v20  ;;  %v2353_v11 = vmul.f32 -0.5, %v5654_v51  ;;  %v2347_v37 = vand.u32 2147483647, %v5647_v4 }
 0x2b2   : > { %v2001_v14 = vmin.f32 %v5656_v2, 20.0  ;;  %v2340_v35 = vsel %vm2339_vm3, %v2337_v1, %v2334_v45  ;;  %3997 = vlog2.f32 %v2350_v8  ;;  %v2328_v38 = vmul.f32 %v5636_v52, %v2327_v50  ;;  %v2466_v8 = vld [vmem:[%s5966_s6] sm:$0x3] }
 0x2b3   : > { %v2412_v25 = vsel %vm2028_vm2, %v5576_v36, %v2340_v35  ;;  %vm5684_vm4 = vcmp.lt.f32.partialorder %v2329_v19, 0.0004427343  ;;  %v2346_v43 = vmul.f32 %v5647_v4, %v2345_v28  ;;  %v2354_v23 = vadd.f32 1.0, %v2353_v11 }
 0x2b4   : > { %v5673_v12 = vpop.eup %3989  ;;  %v2096_v47 = vmul.f32 1.442695, %v2001_v14  ;;  %v2430_v26 = vpack.c.bf16 %v2412_v25, %v2410_v24  ;;  %vm2027_vm5 = vcmp.gt.f32.partialorder %v5568_v49, 20.0  ;;  %vm2348_vm6 = vcmp.lt.f32.partialorder %v2347_v37, 0.0004427343 }
 0x2b5   : > { %v3992_v21 = vpop.eup %3991  ;;  %v2359_v0 = vadd.f32 1.0, %v5673_v12  ;;  %v2356_v52 = vand.u32 2147483647, %v5654_v51  ;;  %vm2029_vm7 = vcmp.gt.f32.partialorder %v5598_v34, 20.0  ;;  %v2355_v39 = vmul.f32 %v5654_v51, %v2354_v23 }
 0x2b6   : > { %v3994_v62 = vpop.eup %3993  ;;  %3999 = vpow2.f32 %v2096_v47  ;;  %v2325_v40 = vmul.f32 0.6931472, %v3992_v21  ;;  %2670 = vmatmul.bf16.gmra.mxu0 %v2430_v26  ;;  %2768 = vmatmul.bf16.gmra.mxu2 %v2430_v26  ;;  %v2362_v60 = vmul.f32 -0.5, %v5673_v12  ;;  %vm2030_vm9 = vcmp.gt.f32.partialorder %v5609_v7, 20.0 }
 0x2b7   : > { %v2368_v57 = vadd.f32 1.0, %v3994_v62  ;;  %v2371_v41 = vmul.f32 -0.5, %v3994_v62  ;;  %v3996_v18 = vpop.eup %3995  ;;  %v2374_v59 = vand.u32 2147483647, %v3994_v62  ;;  %vm2357_vm8 = vcmp.lt.f32.partialorder %v2356_v52, 0.0004427343 }
 0x2b8   : > { %v2331_v6 = vsel %vm5684_vm4, %v2328_v38, %v2325_v40  ;;  %v2343_v13 = vmul.f32 0.6931472, %v3996_v18  ;;  %v3998_v55 = vpop.eup %3997  ;;  %vm2032_vm11 = vcmp.gt.f32.partialorder %v5642_v10, 20.0  ;;  %v2365_v51 = vand.u32 2147483647, %v5673_v12 }
 0x2b9   : > { %4001 = vlog2.f32 %v2368_v57  ;;  %v2352_v42 = vmul.f32 0.6931472, %v3998_v55  ;;  %v2372_v54 = vadd.f32 1.0, %v2371_v41  ;;  %v2411_v58 = vsel %vm2027_vm5, %v5568_v49, %v2331_v6 }
 0x2ba   : > { %4003 = vlog2.f32 %v2359_v0  ;;  %v2349_v53 = vsel %vm2348_vm6, %v2346_v43, %v2343_v13  ;;  %vm2375_vm10 = vcmp.lt.f32.partialorder %v2374_v59, 0.0004427343  ;;  %vm2366_vm12 = vcmp.lt.f32.partialorder %v2365_v51, 0.0004427343 }
 0x2bb   : > { %v2413_v44 = vsel %vm2029_vm7, %v5598_v34, %v2349_v53  ;;  %v2358_v16 = vsel %vm2357_vm8, %v2355_v39, %v2352_v42  ;;  %v2373_v22 = vmul.f32 %v3994_v62, %v2372_v54  ;;  %v2363_v34 = vadd.f32 1.0, %v2362_v60 }
 0x2bc   : > { %v4000_v33 = vpop.eup %3999  ;;  %v2431_v5 = vpack.c.bf16 %v2413_v44, %v2411_v58  ;;  %v2414_v56 = vsel %vm2030_vm9, %v5609_v7, %v2358_v16  ;;  %vm2033_vm14 = vcmp.gt.f32.partialorder %v5656_v2, 20.0  ;;  %vm2031_vm15 = vcmp.gt.f32.partialorder %v5631_v9, 20.0 }
 0x2bd   : > { %v2377_v4 = vadd.f32 1.0, %v4000_v33  ;;  %v2380_v61 = vmul.f32 -0.5, %v4000_v33  ;;  %v2383_v32 = vand.u32 2147483647, %v4000_v33  ;;  %v2364_v3 = vmul.f32 %v5673_v12, %v2363_v34 }
 0x2be   : > { %2719 = vmatmul.bf16.gmra.mxu1 %v2431_v5  ;;  %2817 = vmatmul.bf16.gmra.mxu3 %v2431_v5  ;;  %v5711_v47 = vperm.slane %v2466_v8, 0  ;;  %v5716_v21 = vperm.slane %v2466_v8, 1 }
 0x2bf   : > { %v4002_v15 = vpop.eup %4001  ;;  %4005 = vlog2.f32 %v2377_v4  ;;  %v2381_v48 = vadd.f32 1.0, %v2380_v61  ;;  %vm2384_vm13 = vcmp.lt.f32.partialorder %v2383_v32, 0.0004427343 }
 0x2c0   : > { %v2370_v17 = vmul.f32 0.6931472, %v4002_v15  ;;  %v4004_v63 = vpop.eup %4003 }
 0x2c1   : > { %v2361_v46 = vmul.f32 0.6931472, %v4004_v63  ;;  %v2382_v14 = vmul.f32 %v4000_v33, %v2381_v48 }
 0x2c2   : > { %v2376_v49 = vsel %vm2375_vm10, %v2373_v22, %v2370_v17 }
 0x2c3   : > { %v2416_v29 = vsel %vm2032_vm11, %v5642_v10, %v2376_v49  ;;  %v2367_v20 = vsel %vm2366_vm12, %v2364_v3, %v2361_v46 }
 0x2c4   : > { %v2432_v27 = vpack.c.bf16 %v2416_v29, %v2414_v56  ;;  %v2415_v45 = vsel %vm2031_vm15, %v5631_v9, %v2367_v20 }
 0x2c5   : > { %v4006_v31 = vpop.eup %4005 }
 0x2c6   : > { %v2379_v30 = vmul.f32 0.6931472, %v4006_v31  ;;  %2675 = vmatmul.bf16.gmra.mxu0 %v2432_v27  ;;  %2773 = vmatmul.bf16.gmra.mxu2 %v2432_v27 }
 0x2c8   : > { %v2385_v7 = vsel %vm2384_vm13, %v2382_v14, %v2379_v30 }
 0x2c9   : > { %v2417_v10 = vsel %vm2033_vm14, %v5656_v2, %v2385_v7 }
 0x2ca   : > { %v2433_v1 = vpack.c.bf16 %v2417_v10, %v2415_v45 }
 0x2ce   : > { %2724 = vmatmul.bf16.gmra.mxu1 %v2433_v1  ;;  %2822 = vmatmul.bf16.gmra.mxu3 %v2433_v1 }
 0x2d3   : > { %v2641_v12 = vpop.f32.mrf.mxu0 }
 0x2d4   : > { %v2642_v35 = vadd.f32 %v2641_v12, %v5711_v47 }
 0x2d9   : > { %v2690_v50 = vpop.f32.mrf.mxu1  ;;  %v2739_v2 = vpop.f32.mrf.mxu2 }
 0x2da   : > { %v5714_v19 = vadd.f32 %v2690_v50, %v2642_v35  ;;  %v2740_v24 = vadd.f32 %v2739_v2, %v5716_v21 }
 0x2db   : > { %v2643_v9 = vpop.f32.mrf.mxu0 }
 0x2dc   : > { %2988 = vst [vmem:[%s4259_s23 + $0x8] sm:$0xff] %v5714_v19  ;;  %2828 = vmax.xlane.f32.xlu0 %v5714_v19  ;;  %v2644_v28 = vadd.f32 %v2643_v9, %v5711_v47 }
 0x2df   : > { %v2788_v25 = vpop.f32.mrf.mxu3 }
 0x2e0   : > { %v2789_v62 = vadd.f32 %v2788_v25, %v2740_v24 }
 0x2e1   : > { %v2692_v26 = vpop.f32.mrf.mxu1  ;;  %v2741_v40 = vpop.f32.mrf.mxu2 }
 0x2e2   : > { %3004 = vst [vmem:[%s4259_s23 + $0x10] sm:$0xff] %v2789_v62  ;;  %v5724_v11 = vadd.f32 %v2692_v26, %v2644_v28  ;;  %v2742_v57 = vadd.f32 %v2741_v40, %v5716_v21 }
 0x2e3   : > { %v2646_v37 = vpop.f32.mrf.mxu0 }
 0x2e4   : > { %2989 = vst [vmem:[%s4259_s23 + $0x20] sm:$0xff] %v5724_v11  ;;  %2830 = vmax.xlane.f32.xlu0 %v5724_v11  ;;  %v2647_v41 = vadd.f32 %v2646_v37, %v5711_v47 }
 0x2e7   : > { %v2790_v38 = vpop.f32.mrf.mxu3 }
 0x2e8   : > { %v2791_v0 = vadd.f32 %v2790_v38, %v2742_v57 }
 0x2e9   : > { %v2695_v18 = vpop.f32.mrf.mxu1  ;;  %v2744_v36 = vpop.f32.mrf.mxu2 }
 0x2ea   : > { %3005 = vst [vmem:[%s4259_s23 + $0x28] sm:$0xff] %v2791_v0  ;;  %v5732_v6 = vadd.f32 %v2695_v18, %v2647_v41  ;;  %v2745_v43 = vadd.f32 %v2744_v36, %v5716_v21 }
 0x2eb   : > { %v2648_v13 = vpop.f32.mrf.mxu0 }
 0x2ec   : > { %2990 = vst [vmem:[%s4259_s23 + $0x38] sm:$0xff] %v5732_v6  ;;  %2832 = vmax.xlane.f32.xlu1 %v5732_v6  ;;  %v2649_v55 = vadd.f32 %v2648_v13, %v5711_v47 }
 0x2ef   : > { %v2793_v23 = vpop.f32.mrf.mxu3 }
 0x2f0   : > { %v2794_v52 = vadd.f32 %v2793_v23, %v2745_v43 }
 0x2f1   : > { %v2697_v33 = vpop.f32.mrf.mxu1  ;;  %v2746_v53 = vpop.f32.mrf.mxu2 }
 0x2f2   : > { %3006 = vst [vmem:[%s4259_s23 + $0x40] sm:$0xff] %v2794_v52  ;;  %v5740_v42 = vadd.f32 %v2697_v33, %v2649_v55  ;;  %v2747_v58 = vadd.f32 %v2746_v53, %v5716_v21 }
 0x2f3   : > { %v2651_v54 = vpop.f32.mrf.mxu0 }
 0x2f4   : > { %2991 = vst [vmem:[%s4259_s23 + $0x50] sm:$0xff] %v5740_v42  ;;  %2834 = vmax.xlane.f32.xlu1 %v5740_v42  ;;  %v2652_v5 = vadd.f32 %v2651_v54, %v5711_v47 }
 0x2f7   : > { %v2795_v44 = vpop.f32.mrf.mxu3 }
 0x2f8   : > { %v2796_v59 = vadd.f32 %v2795_v44, %v2747_v58 }
 0x2f9   : > { %v2749_v4 = vpop.f32.mrf.mxu2 }
 0x2fa   : > { %3007 = vst [vmem:[%s4259_s23 + $0x58] sm:$0xff] %v2796_v59  ;;  %v2750_v15 = vadd.f32 %v2749_v4, %v5716_v21 }
 0x2fb   : > { %v2700_v39 = vpop.f32.mrf.mxu1  ;;  %v2653_v60 = vpop.f32.mrf.mxu0 }
 0x2fc   : > { %v5748_v61 = vadd.f32 %v2700_v39, %v2652_v5  ;;  %v2654_v22 = vadd.f32 %v2653_v60, %v5711_v47 }
 0x2fe   : > { %2992 = vst [vmem:[%s4259_s23 + $0x68] sm:$0xff] %v5748_v61  ;;  %2836 = vmax.xlane.f32.xlu2 %v5748_v61 }
 0x301   : > { %v2798_v16 = vpop.f32.mrf.mxu3  ;;  %v2751_v17 = vpop.f32.mrf.mxu2 }
 0x302   : > { %v2799_v63 = vadd.f32 %v2798_v16, %v2750_v15  ;;  %v2752_v56 = vadd.f32 %v2751_v17, %v5716_v21 }
 0x303   : > { %v2702_v49 = vpop.f32.mrf.mxu1  ;;  %v2656_v34 = vpop.f32.mrf.mxu0 }
 0x304   : > { %3008 = vst [vmem:[%s4259_s23 + $0x70] sm:$0xff] %v2799_v63  ;;  %v5756_v48 = vadd.f32 %v2702_v49, %v2654_v22  ;;  %v2657_v32 = vadd.f32 %v2656_v34, %v5711_v47 }
 0x306   : > { %2993 = vst [vmem:[%s4259_s23 + $0x80] sm:$0xff] %v5756_v48  ;;  %2838 = vmax.xlane.f32.xlu2 %v5756_v48 }
 0x309   : > { %v2800_v29 = vpop.f32.mrf.mxu3  ;;  %v2754_v51 = vpop.f32.mrf.mxu2 }
 0x30a   : > { %v2801_v27 = vadd.f32 %v2800_v29, %v2752_v56  ;;  %v2755_v30 = vadd.f32 %v2754_v51, %v5716_v21 }
 0x30b   : > { %v2705_v46 = vpop.f32.mrf.mxu1  ;;  %v2658_v31 = vpop.f32.mrf.mxu0 }
 0x30c   : > { %3009 = vst [vmem:[%s4259_s23 + $0x88] sm:$0xff] %v2801_v27  ;;  %v5764_v3 = vadd.f32 %v2705_v46, %v2657_v32  ;;  %v2659_v7 = vadd.f32 %v2658_v31, %v5711_v47 }
 0x30e   : > { %2994 = vst [vmem:[%s4259_s23 + $0x98] sm:$0xff] %v5764_v3  ;;  %2840 = vmax.xlane.f32.xlu0 %v5764_v3 }
 0x311   : > { %v2803_v14 = vpop.f32.mrf.mxu3  ;;  %v2756_v20 = vpop.f32.mrf.mxu2 }
 0x312   : > { %v2804_v10 = vadd.f32 %v2803_v14, %v2755_v30  ;;  %v2757_v12 = vadd.f32 %v2756_v20, %v5716_v21 }
 0x313   : > { %v2707_v45 = vpop.f32.mrf.mxu1  ;;  %v2661_v1 = vpop.f32.mrf.mxu0 }
 0x314   : > { %3010 = vst [vmem:[%s4259_s23 + $0xa0] sm:$0xff] %v2804_v10  ;;  %v5772_v8 = vadd.f32 %v2707_v45, %v2659_v7  ;;  %v2662_v2 = vadd.f32 %v2661_v1, %v5711_v47 }
 0x316   : > { %2995 = vst [vmem:[%s4259_s23 + $0xb0] sm:$0xff] %v5772_v8  ;;  %2842 = vmax.xlane.f32.xlu1 %v5772_v8 }
 0x319   : > { %v2805_v35 = vpop.f32.mrf.mxu3  ;;  %v2759_v50 = vpop.f32.mrf.mxu2 }
 0x31a   : > { %v2806_v9 = vadd.f32 %v2805_v35, %v2757_v12  ;;  %v2760_v62 = vadd.f32 %v2759_v50, %v5716_v21 }
 0x31b   : > { %v2710_v24 = vpop.f32.mrf.mxu1  ;;  %v2663_v25 = vpop.f32.mrf.mxu0 }
 0x31c   : > { %3011 = vst [vmem:[%s4259_s23 + $0xb8] sm:$0xff] %v2806_v9  ;;  %v5780_v28 = vadd.f32 %v2710_v24, %v2662_v2  ;;  %v2664_v37 = vadd.f32 %v2663_v25, %v5711_v47 }
 0x31e   : > { %2996 = vst [vmem:[%s4259_s23 + $0xc8] sm:$0xff] %v5780_v28  ;;  %2844 = vmax.xlane.f32.xlu2 %v5780_v28 }
 0x321   : > { %v2808_v26 = vpop.f32.mrf.mxu3  ;;  %v2761_v40 = vpop.f32.mrf.mxu2 }
 0x322   : > { %v2809_v57 = vadd.f32 %v2808_v26, %v2760_v62  ;;  %v2762_v18 = vadd.f32 %v2761_v40, %v5716_v21 }
 0x323   : > { %v2712_v38 = vpop.f32.mrf.mxu1  ;;  %v2666_v0 = vpop.f32.mrf.mxu0 }
 0x324   : > { %3012 = vst [vmem:[%s4259_s23 + $0xd0] sm:$0xff] %v2809_v57  ;;  %v5788_v41 = vadd.f32 %v2712_v38, %v2664_v37  ;;  %v2667_v13 = vadd.f32 %v2666_v0, %v5711_v47 }
 0x326   : > { %2997 = vst [vmem:[%s4259_s23 + $0xe0] sm:$0xff] %v5788_v41  ;;  %2846 = vmax.xlane.f32.xlu0 %v5788_v41 }
 0x329   : > { %v2810_v36 = vpop.f32.mrf.mxu3  ;;  %v2764_v55 = vpop.f32.mrf.mxu2 }
 0x32a   : > { %v2811_v43 = vadd.f32 %v2810_v36, %v2762_v18  ;;  %v2765_v53 = vadd.f32 %v2764_v55, %v5716_v21 }
 0x32b   : > { %v2715_v23 = vpop.f32.mrf.mxu1  ;;  %v2668_v33 = vpop.f32.mrf.mxu0 }
 0x32c   : > { %3013 = vst [vmem:[%s4259_s23 + $0xe8] sm:$0xff] %v2811_v43  ;;  %v5796_v52 = vadd.f32 %v2715_v23, %v2667_v13  ;;  %v2669_v58 = vadd.f32 %v2668_v33, %v5711_v47 }
 0x32e   : > { %2998 = vst [vmem:[%s4259_s23 + $0xf8] sm:$0xff] %v5796_v52  ;;  %2848 = vmax.xlane.f32.xlu1 %v5796_v52 }
 0x331   : > { %v2813_v54 = vpop.f32.mrf.mxu3  ;;  %v2766_v4 = vpop.f32.mrf.mxu2 }
 0x332   : > { %v2814_v44 = vadd.f32 %v2813_v54, %v2765_v53  ;;  %v2767_v60 = vadd.f32 %v2766_v4, %v5716_v21 }
 0x333   : > { %v2717_v59 = vpop.f32.mrf.mxu1  ;;  %v2671_v39 = vpop.f32.mrf.mxu0 }
 0x334   : > { %3014 = vst [vmem:[%s4259_s23 + $0x100] sm:$0xff] %v2814_v44  ;;  %v5804_v5 = vadd.f32 %v2717_v59, %v2669_v58  ;;  %v2672_v22 = vadd.f32 %v2671_v39, %v5711_v47 }
 0x336   : > { %2999 = vst [vmem:[%s4259_s23 + $0x110] sm:$0xff] %v5804_v5  ;;  %2850 = vmax.xlane.f32.xlu2 %v5804_v5 }
 0x339   : > { %v2815_v15 = vpop.f32.mrf.mxu3  ;;  %v2769_v17 = vpop.f32.mrf.mxu2 }
 0x33a   : > { %v2816_v16 = vadd.f32 %v2815_v15, %v2767_v60  ;;  %v2770_v56 = vadd.f32 %v2769_v17, %v5716_v21 }
 0x33b   : > { %v2720_v63 = vpop.f32.mrf.mxu1  ;;  %v2673_v49 = vpop.f32.mrf.mxu0 }
 0x33c   : > { %3015 = vst [vmem:[%s4259_s23 + $0x118] sm:$0xff] %v2816_v16  ;;  %v5812_v34 = vadd.f32 %v2720_v63, %v2672_v22  ;;  %v2674_v32 = vadd.f32 %v2673_v49, %v5711_v47 }
 0x33e   : > { %3000 = vst [vmem:[%s4259_s23 + $0x128] sm:$0xff] %v5812_v34  ;;  %2852 = vmax.xlane.f32.xlu0 %v5812_v34 }
 0x341   : > { %v2818_v29 = vpop.f32.mrf.mxu3  ;;  %v2771_v51 = vpop.f32.mrf.mxu2 }
 0x342   : > { %v2819_v27 = vadd.f32 %v2818_v29, %v2770_v56  ;;  %v2772_v14 = vadd.f32 %v2771_v51, %v5716_v21 }
 0x343   : > { %v2722_v46 = vpop.f32.mrf.mxu1  ;;  %v2676_v30 = vpop.f32.mrf.mxu0 }
 0x344   : > { %3016 = vst [vmem:[%s4259_s23 + $0x130] sm:$0xff] %v2819_v27  ;;  %v5820_v31 = vadd.f32 %v2722_v46, %v2674_v32  ;;  %v2677_v7 = vadd.f32 %v2676_v30, %v5711_v47 }
 0x346   : > { %3001 = vst [vmem:[%s4259_s23 + $0x140] sm:$0xff] %v5820_v31  ;;  %2854 = vmax.xlane.f32.xlu1 %v5820_v31 }
 0x349   : > { %v2820_v20 = vpop.f32.mrf.mxu3  ;;  %v2774_v1 = vpop.f32.mrf.mxu2 }
 0x34a   : > { %v2821_v10 = vadd.f32 %v2820_v20, %v2772_v14  ;;  %v2775_v9 = vadd.f32 %v2774_v1, %v5716_v21 }
 0x34b   : > { %v2725_v45 = vpop.f32.mrf.mxu1  ;;  %v2678_v2 = vpop.f32.mrf.mxu0 }
 0x34c   : > { %3017 = vst [vmem:[%s4259_s23 + $0x148] sm:$0xff] %v2821_v10  ;;  %v5828_v12 = vadd.f32 %v2725_v45, %v2677_v7  ;;  %v2679_v62 = vadd.f32 %v2678_v2, %v5711_v47 }
 0x34e   : > { %3002 = vst [vmem:[%s4259_s23 + $0x158] sm:$0xff] %v5828_v12  ;;  %2856 = vmax.xlane.f32.xlu2 %v5828_v12 }
 0x34f   : > { %v2829_v35 = vpop.xlane.xlu0 %2828 }
 0x350   : > { %v2860_v50 = vsub.f32 %v5714_v19, %v2829_v35 }
 0x351   : > { %v2823_v25 = vpop.f32.mrf.mxu3  ;;  %v2776_v57 = vpop.f32.mrf.mxu2 }
 0x352   : > { %v2876_v24 = vmul.f32 1.442695, %v2860_v50  ;;  %v2824_v26 = vadd.f32 %v2823_v25, %v2775_v9  ;;  %v2777_v18 = vadd.f32 %v2776_v57, %v5716_v21 }
 0x353   : > { %v2727_v40 = vpop.f32.mrf.mxu1 }
 0x354   : > { %4007 = vpow2.f32 %v2876_v24  ;;  %3018 = vst [vmem:[%s4259_s23 + $0x160] sm:$0xff] %v2824_v26  ;;  %v5837_v37 = vadd.f32 %v2727_v40, %v2679_v62 }
 0x356   : > { %3003 = vst [vmem:[%s4259_s23 + $0x170] sm:$0xff] %v5837_v37  ;;  %2858 = vmax.xlane.f32.xlu0 %v5837_v37 }
 0x357   : > { %v2831_v38 = vpop.xlane.xlu0 %2830 }
 0x358   : > { %v2861_v19 = vsub.f32 %v5724_v11, %v2831_v38 }
 0x359   : > { %v2825_v36 = vpop.f32.mrf.mxu3 }
 0x35a   : > { %v5843_v0 = vpop.eup %4007  ;;  %v2878_v47 = vmul.f32 1.442695, %v2861_v19  ;;  %v2826_v13 = vadd.f32 %v2825_v36, %v2777_v18 }
 0x35b   : > { %2908 = vadd.xlane.f32.xlu1 %v5843_v0 }
 0x35c   : > { %4009 = vpow2.f32 %v2878_v47  ;;  %3019 = vst [vmem:[%s4259_s23 + $0x178] sm:$0xff] %v2826_v13 }
 0x35f   : > { %v2833_v43 = vpop.xlane.xlu1 %2832 }
 0x360   : > { %v2862_v23 = vsub.f32 %v5732_v6, %v2833_v43 }
 0x362   : > { %v5849_v55 = vpop.eup %4009  ;;  %v2880_v33 = vmul.f32 1.442695, %v2862_v23 }
 0x363   : > { %2910 = vadd.xlane.f32.xlu2 %v5849_v55 }
 0x364   : > { %4011 = vpow2.f32 %v2880_v33 }
 0x367   : > { %v2835_v11 = vpop.xlane.xlu1 %2834 }
 0x368   : > { %v2863_v53 = vsub.f32 %v5740_v42, %v2835_v11 }
 0x36a   : > { %v5853_v21 = vpop.eup %4011  ;;  %v2882_v54 = vmul.f32 1.442695, %v2863_v53 }
 0x36b   : > { %2912 = vadd.xlane.f32.xlu0 %v5853_v21 }
 0x36c   : > { %4013 = vpow2.f32 %v2882_v54 }
 0x371   : > { %v2837_v58 = vpop.xlane.xlu2 %2836 }
 0x372   : > { %v5856_v44 = vpop.eup %4013  ;;  %v2864_v6 = vsub.f32 %v5748_v61, %v2837_v58 }
 0x373   : > { %2914 = vadd.xlane.f32.xlu1 %v5856_v44 }
 0x374   : > { %v2884_v59 = vmul.f32 1.442695, %v2864_v6 }
 0x376   : > { %4015 = vpow2.f32 %v2884_v59 }
 0x379   : > { %v2839_v4 = vpop.xlane.xlu2 %2838 }
 0x37a   : > { %v2865_v39 = vsub.f32 %v5756_v48, %v2839_v4 }
 0x37c   : > { %v5861_v60 = vpop.eup %4015  ;;  %v2886_v42 = vmul.f32 1.442695, %v2865_v39 }
 0x37d   : > { %2916 = vadd.xlane.f32.xlu2 %v5861_v60 }
 0x37e   : > { %4017 = vpow2.f32 %v2886_v42 }
 0x381   : > { %v2841_v15 = vpop.xlane.xlu0 %2840 }
 0x382   : > { %v2866_v16 = vsub.f32 %v5764_v3, %v2841_v15 }
 0x384   : > { %v5865_v17 = vpop.eup %4017  ;;  %v2888_v22 = vmul.f32 1.442695, %v2866_v16 }
 0x385   : > { %2918 = vadd.xlane.f32.xlu0 %v5865_v17 }
 0x386   : > { %4019 = vpow2.f32 %v2888_v22 }
 0x389   : > { %v2843_v61 = vpop.xlane.xlu1 %2842 }
 0x38a   : > { %v2867_v63 = vsub.f32 %v5772_v8, %v2843_v61 }
 0x38c   : > { %v5869_v49 = vpop.eup %4019  ;;  %v2890_v48 = vmul.f32 1.442695, %v2867_v63 }
 0x38d   : > { %2920 = vadd.xlane.f32.xlu1 %v5869_v49 }
 0x38e   : > { %4021 = vpow2.f32 %v2890_v48 }
 0x391   : > { %v2845_v56 = vpop.xlane.xlu2 %2844 }
 0x392   : > { %v2868_v29 = vsub.f32 %v5780_v28, %v2845_v56 }
 0x394   : > { %v5873_v51 = vpop.eup %4021  ;;  %v2892_v3 = vmul.f32 1.442695, %v2868_v29 }
 0x395   : > { %2922 = vadd.xlane.f32.xlu2 %v5873_v51 }
 0x396   : > { %4023 = vpow2.f32 %v2892_v3 }
 0x399   : > { %v2847_v32 = vpop.xlane.xlu0 %2846 }
 0x39a   : > { %v2869_v27 = vsub.f32 %v5788_v41, %v2847_v32 }
 0x39c   : > { %v5877_v46 = vpop.eup %4023  ;;  %v2894_v8 = vmul.f32 1.442695, %v2869_v27 }
 0x39d   : > { %2924 = vadd.xlane.f32.xlu0 %v5877_v46 }
 0x39e   : > { %4025 = vpow2.f32 %v2894_v8 }
 0x3a1   : > { %v2849_v30 = vpop.xlane.xlu1 %2848 }
 0x3a2   : > { %v2870_v14 = vsub.f32 %v5796_v52, %v2849_v30 }
 0x3a4   : > { %v5881_v20 = vpop.eup %4025  ;;  %v2896_v28 = vmul.f32 1.442695, %v2870_v14 }
 0x3a5   : > { %2926 = vadd.xlane.f32.xlu1 %v5881_v20 }
 0x3a6   : > { %4027 = vpow2.f32 %v2896_v28 }
 0x3a9   : > { %v2851_v7 = vpop.xlane.xlu2 %2850 }
 0x3aa   : > { %v2871_v10 = vsub.f32 %v5804_v5, %v2851_v7 }
 0x3ac   : > { %v5885_v45 = vpop.eup %4027  ;;  %v2898_v41 = vmul.f32 1.442695, %v2871_v10 }
 0x3ad   : > { %2928 = vadd.xlane.f32.xlu2 %v5885_v45 }
 0x3ae   : > { %4029 = vpow2.f32 %v2898_v41 }
 0x3b1   : > { %v2853_v1 = vpop.xlane.xlu0 %2852 }
 0x3b2   : > { %v2872_v52 = vsub.f32 %v5812_v34, %v2853_v1 }
 0x3b4   : > { %v5888_v35 = vpop.eup %4029  ;;  %v2900_v50 = vmul.f32 1.442695, %v2872_v52 }
 0x3b5   : > { %2930 = vadd.xlane.f32.xlu0 %v5888_v35 }
 0x3b6   : > { %4031 = vpow2.f32 %v2900_v50 }
 0x3b9   : > { %v2855_v2 = vpop.xlane.xlu1 %2854 }
 0x3ba   : > { %v2873_v9 = vsub.f32 %v5820_v31, %v2855_v2 }
 0x3bc   : > { %v5893_v24 = vpop.eup %4031  ;;  %v2902_v5 = vmul.f32 1.442695, %v2873_v9 }
 0x3bd   : > { %2932 = vadd.xlane.f32.xlu1 %v5893_v24 }
 0x3be   : > { %4033 = vpow2.f32 %v2902_v5 }
 0x3c1   : > { %v2857_v25 = vpop.xlane.xlu2 %2856 }
 0x3c2   : > { %v2874_v62 = vsub.f32 %v5828_v12, %v2857_v25 }
 0x3c4   : > { %v5897_v26 = vpop.eup %4033  ;;  %v2904_v40 = vmul.f32 1.442695, %v2874_v62 }
 0x3c5   : > { %2934 = vadd.xlane.f32.xlu2 %v5897_v26 }
 0x3c6   : > { %4035 = vpow2.f32 %v2904_v40 }
 0x3c9   : > { %v2859_v34 = vpop.xlane.xlu0 %2858 }
 0x3ca   : > { %v2875_v57 = vsub.f32 %v5837_v37, %v2859_v34 }
 0x3cc   : > { %v5901_v31 = vpop.eup %4035  ;;  %v2906_v38 = vmul.f32 1.442695, %v2875_v57 }
 0x3cd   : > { %2936 = vadd.xlane.f32.xlu0 %v5901_v31 }
 0x3ce   : > { %v2909_v19 = vpop.xlane.xlu1 %2908 }
 0x3cf   : > { %4037 = vrcp.f32 %v2909_v19 }
 0x3d0   : > { %4039 = vpow2.f32 %v2906_v38 }
 0x3d5   : > { %v4038_v12 = vpop.eup %4037 }
 0x3d6   : > { %v5904_v18 = vpop.eup %4039  ;;  %v2956_v47 = vmul.f32 %v4038_v12, %v5843_v0  ;;  %v2911_v36 = vpop.xlane.xlu2 %2910 }
 0x3d7   : > { %2938 = vadd.xlane.f32.xlu1 %v5904_v18  ;;  %4041 = vrcp.f32 %v2911_v36 }
 0x3d8   : > { %2972 = vst [vmem:[%s4259_s23] sm:$0xff] %v2956_v47 }
 0x3dd   : > { %v4042_v37 = vpop.eup %4041 }
 0x3de   : > { %v2957_v13 = vmul.f32 %v4042_v37, %v5849_v55  ;;  %v2913_v43 = vpop.xlane.xlu0 %2912 }
 0x3df   : > { %4043 = vrcp.f32 %v2913_v43 }
 0x3e0   : > { %2973 = vst [vmem:[%s4259_s23 + $0x18] sm:$0xff] %v2957_v13 }
 0x3e5   : > { %v4044_v23 = vpop.eup %4043 }
 0x3e6   : > { %v2958_v33 = vmul.f32 %v4044_v23, %v5853_v21  ;;  %v2915_v11 = vpop.xlane.xlu1 %2914 }
 0x3e7   : > { %4045 = vrcp.f32 %v2915_v11 }
 0x3e8   : > { %2974 = vst [vmem:[%s4259_s23 + $0x30] sm:$0xff] %v2958_v33 }
 0x3ed   : > { %v4046_v0 = vpop.eup %4045 }
 0x3ee   : > { %v2959_v53 = vmul.f32 %v4046_v0, %v5856_v44 }
 0x3f0   : > { %2975 = vst [vmem:[%s4259_s23 + $0x48] sm:$0xff] %v2959_v53  ;;  %v2917_v54 = vpop.xlane.xlu2 %2916 }
 0x3f1   : > { %4047 = vrcp.f32 %v2917_v54 }
 0x3f7   : > { %v4048_v58 = vpop.eup %4047 }
 0x3f8   : > { %v2960_v55 = vmul.f32 %v4048_v58, %v5861_v60  ;;  %v2919_v6 = vpop.xlane.xlu0 %2918 }
 0x3f9   : > { %4049 = vrcp.f32 %v2919_v6 }
 0x3fa   : > { %2976 = vst [vmem:[%s4259_s23 + $0x60] sm:$0xff] %v2960_v55 }
 0x3ff   : > { %v4050_v59 = vpop.eup %4049 }
 0x400   : > { %v2961_v21 = vmul.f32 %v4050_v59, %v5865_v17  ;;  %v2921_v4 = vpop.xlane.xlu1 %2920 }
 0x401   : > { %4051 = vrcp.f32 %v2921_v4 }
 0x402   : > { %2977 = vst [vmem:[%s4259_s23 + $0x78] sm:$0xff] %v2961_v21 }
 0x407   : > { %v4052_v39 = vpop.eup %4051 }
 0x408   : > { %v2962_v44 = vmul.f32 %v4052_v39, %v5869_v49  ;;  %v2923_v42 = vpop.xlane.xlu2 %2922 }
 0x409   : > { %4053 = vrcp.f32 %v2923_v42 }
 0x40a   : > { %2978 = vst [vmem:[%s4259_s23 + $0x90] sm:$0xff] %v2962_v44 }
 0x40f   : > { %v4054_v15 = vpop.eup %4053 }
 0x410   : > { %v2963_v60 = vmul.f32 %v4054_v15, %v5873_v51  ;;  %v2925_v16 = vpop.xlane.xlu0 %2924 }
 0x411   : > { %4055 = vrcp.f32 %v2925_v16 }
 0x412   : > { %2979 = vst [vmem:[%s4259_s23 + $0xa8] sm:$0xff] %v2963_v60 }
 0x417   : > { %v4056_v22 = vpop.eup %4055 }
 0x418   : > { %v2964_v17 = vmul.f32 %v4056_v22, %v5877_v46  ;;  %v2927_v61 = vpop.xlane.xlu1 %2926 }
 0x419   : > { %4057 = vrcp.f32 %v2927_v61 }
 0x41a   : > { %2980 = vst [vmem:[%s4259_s23 + $0xc0] sm:$0xff] %v2964_v17 }
 0x41f   : > { %v4058_v63 = vpop.eup %4057 }
 0x420   : > { %v2965_v49 = vmul.f32 %v4058_v63, %v5881_v20  ;;  %v2929_v48 = vpop.xlane.xlu2 %2928 }
 0x421   : > { %4059 = vrcp.f32 %v2929_v48 }
 0x422   : > { %2981 = vst [vmem:[%s4259_s23 + $0xd8] sm:$0xff] %v2965_v49 }
 0x427   : > { %v4060_v56 = vpop.eup %4059 }
 0x428   : > { %v2966_v29 = vmul.f32 %v4060_v56, %v5885_v45  ;;  %v2931_v51 = vpop.xlane.xlu0 %2930 }
 0x429   : > { %4061 = vrcp.f32 %v2931_v51 }
 0x42a   : > { %2982 = vst [vmem:[%s4259_s23 + $0xf0] sm:$0xff] %v2966_v29 }
 0x42f   : > { %v4062_v3 = vpop.eup %4061 }
 0x430   : > { %v2967_v32 = vmul.f32 %v4062_v3, %v5888_v35  ;;  %v2933_v27 = vpop.xlane.xlu1 %2932 }
 0x431   : > { %4063 = vrcp.f32 %v2933_v27 }
 0x432   : > { %2983 = vst [vmem:[%s4259_s23 + $0x108] sm:$0xff] %v2967_v32 }
 0x437   : > { %v4064_v46 = vpop.eup %4063 }
 0x438   : > { %v2968_v8 = vmul.f32 %v4064_v46, %v5893_v24  ;;  %v2935_v30 = vpop.xlane.xlu2 %2934 }
 0x439   : > { %4065 = vrcp.f32 %v2935_v30 }
 0x43a   : > { %2984 = vst [vmem:[%s4259_s23 + $0x120] sm:$0xff] %v2968_v8 }
 0x43f   : > { %v4066_v14 = vpop.eup %4065 }
 0x440   : > { %v2969_v20 = vmul.f32 %v4066_v14, %v5897_v26  ;;  %v2937_v28 = vpop.xlane.xlu0 %2936 }
 0x441   : > { %4067 = vrcp.f32 %v2937_v28 }
 0x442   : > { %2985 = vst [vmem:[%s4259_s23 + $0x138] sm:$0xff] %v2969_v20 }
 0x447   : > { %v4068_v7 = vpop.eup %4067 }
 0x448   : > { %v2970_v10 = vmul.f32 %v4068_v7, %v5901_v31 }
 0x44a   : > { %v2939_v45 = vpop.xlane.xlu1 %2938  ;;  %2986 = vst [vmem:[%s4259_s23 + $0x150] sm:$0xff] %v2970_v10 }
 0x44b   : > { %4069 = vrcp.f32 %v2939_v45 }
 0x451   : > { %v4070_v41 = vpop.eup %4069 }
 0x452   : > { %v2971_v1 = vmul.f32 %v4070_v41, %v5904_v18 }
 0x454   : > { %2987 = vst [vmem:[%s4259_s23 + $0x168] sm:$0xff] %v2971_v1 }
 0x455 PF: > { %s17_s30 = sadd.s32 1, %s4125_s30   ;;  %s6070_s24 = smov %s4105_s25 }
 0x456   : > { %p14_p0 = scmp.ge.s32.totalorder %s17_s30, 6   ;;  %s6071_s25 = smov %s4219_s14 }
 0x457   : > { %s6072_s26 = smov %s4117_s28  ;;  %s6073_s27 = smov %s4121_s29 }
 0x458   : > { %s6074_s28 = smov %s6077_s8  ;;  %s6075_s29 = smov %s6081_s9 }
 0x459   :  { %16 = sbr.rel (!%p14_p0) target bundleno = 4 (0x4), region = 132 }

</bundles_post_ra>
